<compile_context>
chip_gen: v7x
topology: tpu7x:2x2x1
jax: 0.10.0
libtpu: 0.0.40
codegen_flags: <defaults>
</compile_context>

<pallas_src>
import functools

import numpy as np
import jax
import jax.numpy as jnp
from jax.experimental import pallas as pl
from jax.experimental.pallas import tpu as pltpu

EPS = 1e-5           # BatchNorm2d default eps
NEG_SLOPE = 0.01     # LeakyReLU default negative_slope


def _conv_bn_lrelu(x, w_ref, g_ref, b_ref, edge_masks, *, H, W, HW):
    """3x3 same-pad conv + fused BN(batch stats) + LeakyReLU in (C, HW) layout.

    x          : (C, HW) f32 value (channels on sublanes, flat spatial on lanes).
    w_ref      : (3, Cout, 3*Cin) weights, indexed [ky][co, kx*Cin + ci].
    g_ref/b_ref: (C, 1) BN affine params.
    edge_masks : (not_top, not_bot, not_left, not_right) (C, HW) bool masks.
    Returns an f32 (C, HW) value.
    """
    not_top, not_bot, not_lft, not_rgt = edge_masks
    C = x.shape[0]

    acc = jnp.zeros((C, HW), jnp.float32)
    for oy in (-1, 0, 1):
        m_y = not_top if oy == -1 else (not_bot if oy == 1 else None)
        taps = []
        for ox in (-1, 0, 1):
            m_x = not_lft if ox == -1 else (not_rgt if ox == 1 else None)
            d = oy * W + ox                       # flat-index offset of this tap
            # tap[p] = x[p + d]; roll(x, s)[p] = x[(p - s) mod HW] => s = -d.
            t = x if d == 0 else pltpu.roll(x, shift=(-d) % HW, axis=1)
            if m_y is not None and m_x is not None:
                m = jnp.logical_and(m_y, m_x)
            else:
                m = m_y if m_y is not None else m_x
            if m is not None:                     # zero the wrapped-around lanes
                t = jnp.where(m, t, 0.0)
            taps.append(t)
        taps3 = jnp.concatenate(taps, axis=0)     # (3C, HW), sublane-aligned
        acc = acc + jnp.dot(w_ref[oy + 1], taps3,
                            preferred_element_type=jnp.float32,
                            precision=jax.lax.Precision.HIGHEST)

    # Fused BatchNorm (training mode, batch of one image => stats over HW).
    inv_n = 1.0 / HW
    mean = jnp.sum(acc, axis=1, keepdims=True) * inv_n        # (C, 1)
    cent = acc - mean
    var = jnp.sum(cent * cent, axis=1, keepdims=True) * inv_n  # centered form
    scale = g_ref[...] * jax.lax.rsqrt(var + EPS)
    y = cent * scale + b_ref[...]

    # LeakyReLU
    return jnp.where(y >= 0, y, NEG_SLOPE * y)


def block_resnet1_kernel(x_ref, w1_ref, g1_ref, be1_ref,
                         w2_ref, g2_ref, be2_ref, o_ref, *, H, W):
    C, HW = x_ref.shape[1], x_ref.shape[2]
    x = x_ref[0].astype(jnp.float32)              # (C, HW)

    # Edge masks for the rolled taps (W is a power of two; checked in wrapper).
    pos = jax.lax.broadcasted_iota(jnp.int32, (C, HW), 1)
    col = pos & (W - 1)
    row = pos >> (W.bit_length() - 1)
    edge_masks = (row > 0, row < H - 1, col > 0, col < W - 1)

    h1 = _conv_bn_lrelu(x, w1_ref, g1_ref, be1_ref, edge_masks, H=H, W=W, HW=HW)
    h2 = _conv_bn_lrelu(h1, w2_ref, g2_ref, be2_ref, edge_masks, H=H, W=W, HW=HW)
    o_ref[0] = h2.astype(o_ref.dtype)


def prepare_params(params, C):
    """One-time layout plumbing for the parameters (hoisted out of the hot path)."""
    w1, b1, g1, be1, w2, b2, g2, be2 = params
    del b1, b2   # conv bias cancels exactly under training-mode BatchNorm

    def prep_w(w):   # (3, 3, Cin, Cout) -> (ky, Cout, kx*Cin + ci)
        return jnp.asarray(w, jnp.float32).transpose(0, 3, 1, 2).reshape(3, C, 3 * C)

    return (prep_w(w1), g1.reshape(C, 1).astype(jnp.float32),
            be1.reshape(C, 1).astype(jnp.float32),
            prep_w(w2), g2.reshape(C, 1).astype(jnp.float32),
            be2.reshape(C, 1).astype(jnp.float32))


def block_resnet1_core(x_bcp, prepped, *, H, W):
    """x_bcp: (B, C, H*W) f32.  Each image gets its own BN batch statistics
    (equivalent to one Block_ResNet_1.forward call per image)."""
    B, C, HW = x_bcp.shape
    wk1, g1c, be1c, wk2, g2c, be2c = prepped
    vmem = pl.BlockSpec(memory_space=pltpu.MemorySpace.VMEM)

    flops = int(B * 2 * (2 * C * C * 9 * HW))
    bytes_accessed = int((2 * B * C * HW + 2 * 3 * C * 3 * C + 4 * C) * 4)

    return pl.pallas_call(
        functools.partial(block_resnet1_kernel, H=H, W=W),
        out_shape=jax.ShapeDtypeStruct((B, C, HW), jnp.float32),
        grid=(B,),
        in_specs=[pl.BlockSpec((1, C, HW), lambda b: (b, 0, 0)),   # x (pipelined)
                  vmem, vmem, vmem, vmem, vmem, vmem],             # params, resident
        out_specs=pl.BlockSpec((1, C, HW), lambda b: (b, 0, 0)),
        input_output_aliases={0: 0},        # x block is dead once its step ran
        compiler_params=pltpu.CompilerParams(
            dimension_semantics=("parallel",),          # shard batch on v7x's 2 TCs
            vmem_limit_bytes=32 * 1024 * 1024),
        cost_estimate=pl.CostEstimate(flops=flops, transcendentals=int(2 * B * C),
                                      bytes_accessed=bytes_accessed),
    )(x_bcp, wk1, g1c, be1c, wk2, g2c, be2c)


@jax.jit
def block_resnet1_nhwc(pair, prepped):
    """pair: (B, H, W, C) batch of independent tiles, or a single (H, W, C) tile.
    In a real network keep activations in (B, C, HW) and call block_resnet1_core
    directly to avoid the NHWC round trip per block."""
    squeeze = pair.ndim == 3
    if squeeze:
        pair = pair[None]
    B, H, W, C = pair.shape
    assert W & (W - 1) == 0, "in-kernel edge masks assume power-of-two W"
    assert (H * W) % 128 == 0, "lane-dense layout wants H*W to be a multiple of 128"

    x_bcp = jnp.transpose(pair.astype(jnp.float32), (0, 3, 1, 2)).reshape(B, C, H * W)
    out = block_resnet1_core(x_bcp, prepped, H=H, W=W)
    out = out.reshape(B, C, H, W).transpose(0, 2, 3, 1).astype(pair.dtype)
    return out[0] if squeeze else out


# ---------------- pure-JAX reference (for correctness check) ----------------
def _reference_single(pair, params):
    w1, b1, g1, be1, w2, b2, g2, be2 = params

    def conv(x, w, b):
        y = jax.lax.conv_general_dilated(
            x[None].astype(jnp.float32), w, window_strides=(1, 1),
            padding="SAME", dimension_numbers=("NHWC", "HWIO", "NHWC"),
            precision=jax.lax.Precision.HIGHEST)[0]
        return y + b[0]

    def bn_lrelu(x, g, be):
        mean = x.mean(axis=(0, 1), keepdims=True)
        var = ((x - mean) ** 2).mean(axis=(0, 1), keepdims=True)
        y = g[0] * (x - mean) * jax.lax.rsqrt(var + EPS) + be[0]
        return jnp.where(y >= 0, y, NEG_SLOPE * y)

    h = bn_lrelu(conv(pair, w1, b1), g1, be1)
    return bn_lrelu(conv(h, w2, b2), g2, be2)


reference = jax.vmap(_reference_single, in_axes=(0, None))


if __name__ == "__main__":
    B, H, W, C = 8, 16, 16, 32       # d_module = 32, spatial 16x16, 8 tiles
    key = jax.random.PRNGKey(0)
    k = jax.random.split(key, 5)

    pair = jax.random.normal(k[0], (B, H, W, C), jnp.float32)

    # Conv2d params (kaiming-uniform-style deterministic init, fan_in = 9*C).
    bound = 1.0 / np.sqrt(9 * C)
    w1 = jax.random.uniform(k[1], (3, 3, C, C), jnp.float32, -bound, bound)
    b1 = jax.random.uniform(k[2], (1, C), jnp.float32, -bound, bound)
    w2 = jax.random.uniform(k[3], (3, 3, C, C), jnp.float32, -bound, bound)
    b2 = jax.random.uniform(k[4], (1, C), jnp.float32, -bound, bound)
    # BatchNorm2d affine params: PyTorch init (weight=1, bias=0).
    g1 = jnp.ones((1, C), jnp.float32)
    be1 = jnp.zeros((1, C), jnp.float32)
    g2 = jnp.ones((1, C), jnp.float32)
    be2 = jnp.zeros((1, C), jnp.float32)

    params = (w1, b1, g1, be1, w2, b2, g2, be2)

    prepped = prepare_params(params, C)      # hoisted: done once per parameter set

    out = jax.block_until_ready(block_resnet1_nhwc(pair, prepped))
    ref = jax.block_until_ready(reference(pair, params))

    assert out.shape == (B, H, W, C)
    np.testing.assert_allclose(np.asarray(out), np.asarray(ref),
                               atol=1e-3, rtol=1e-3)
    # TODO(synk): BatchNorm running_mean/running_var side-effect updates are not
    # emulated (forward output only).
    print("KERNEL_OK")
</pallas_src>

<mosaic_0001>
module attributes {stable_mosaic.version = 11 : i64} {
  func.func @block_resnet1_kernel(%arg0: i32, %arg1: memref<1x32x256xf32, #tpu.memory_space<vmem>>, %arg2: memref<3x32x96xf32, #tpu.memory_space<vmem>>, %arg3: memref<32x1xf32, #tpu.memory_space<vmem>>, %arg4: memref<32x1xf32, #tpu.memory_space<vmem>>, %arg5: memref<3x32x96xf32, #tpu.memory_space<vmem>>, %arg6: memref<32x1xf32, #tpu.memory_space<vmem>>, %arg7: memref<32x1xf32, #tpu.memory_space<vmem>>, %arg8: memref<1x32x256xf32, #tpu.memory_space<vmem>>) attributes {dimension_semantics = [#tpu.dimension_semantics<parallel>], iteration_bounds = array<i64: 8>, scalar_prefetch = 0 : i64, scratch_operands = 0 : i64, tpu.core_type = #tpu.core_type<tc>, window_params = [{transform_indices = @transform_0, window_bounds = array<i64: 1, 32, 256>}, {pipeline_mode = #tpu.pipeline_mode<synchronous>, transform_indices = @transform_1, window_bounds = array<i64: 3, 32, 96>}, {pipeline_mode = #tpu.pipeline_mode<synchronous>, transform_indices = @transform_2, window_bounds = array<i64: 32, 1>}, {pipeline_mode = #tpu.pipeline_mode<synchronous>, transform_indices = @transform_3, window_bounds = array<i64: 32, 1>}, {pipeline_mode = #tpu.pipeline_mode<synchronous>, transform_indices = @transform_4, window_bounds = array<i64: 3, 32, 96>}, {pipeline_mode = #tpu.pipeline_mode<synchronous>, transform_indices = @transform_5, window_bounds = array<i64: 32, 1>}, {pipeline_mode = #tpu.pipeline_mode<synchronous>, transform_indices = @transform_6, window_bounds = array<i64: 32, 1>}, {transform_indices = @transform_7, window_bounds = array<i64: 1, 32, 256>}]} {
    %c0 = arith.constant 0 : index
    %c0_0 = arith.constant 0 : index
    %c0_1 = arith.constant 0 : index
    %0 = vector.load %arg1[%c0, %c0_0, %c0_1] : memref<1x32x256xf32, #tpu.memory_space<vmem>>, vector<1x32x256xf32>
    %1 = vector.shape_cast %0 : vector<1x32x256xf32> to vector<32x256xf32>
    %2 = tpu.iota {dimensions = array<i32: 1>} : vector<32x256xi32>
    %c15_i32 = arith.constant 15 : i32
    %3 = vector.broadcast %c15_i32 : i32 to vector<32x256xi32>
    %4 = arith.andi %2, %3 : vector<32x256xi32>
    %c4_i32 = arith.constant 4 : i32
    %5 = vector.broadcast %c4_i32 : i32 to vector<32x256xi32>
    %6 = arith.shrsi %2, %5 : vector<32x256xi32>
    %c0_i32 = arith.constant 0 : i32
    %7 = vector.broadcast %c0_i32 : i32 to vector<32x256xi32>
    %8 = arith.cmpi sgt, %6, %7 : vector<32x256xi32>
    %c15_i32_2 = arith.constant 15 : i32
    %9 = vector.broadcast %c15_i32_2 : i32 to vector<32x256xi32>
    %10 = arith.cmpi slt, %6, %9 : vector<32x256xi32>
    %c0_i32_3 = arith.constant 0 : i32
    %11 = vector.broadcast %c0_i32_3 : i32 to vector<32x256xi32>
    %12 = arith.cmpi sgt, %4, %11 : vector<32x256xi32>
    %c15_i32_4 = arith.constant 15 : i32
    %13 = vector.broadcast %c15_i32_4 : i32 to vector<32x256xi32>
    %14 = arith.cmpi slt, %4, %13 : vector<32x256xi32>
    %cst = arith.constant 0.000000e+00 : f32
    %15 = vector.broadcast %cst : f32 to vector<32x256xf32>
    %c17_i32 = arith.constant 17 : i32
    %16 = tpu.dynamic_rotate %1 by %c17_i32 dim 1 : vector<32x256xf32>, i32 -> vector<32x256xf32>
    %17 = arith.andi %8, %12 : vector<32x256xi1>
    %cst_5 = arith.constant 0.000000e+00 : f32
    %18 = vector.broadcast %cst_5 : f32 to vector<32x256xf32>
    %19 = arith.select %17, %16, %18 : vector<32x256xi1>, vector<32x256xf32>
    %c16_i32 = arith.constant 16 : i32
    %20 = tpu.dynamic_rotate %1 by %c16_i32 dim 1 : vector<32x256xf32>, i32 -> vector<32x256xf32>
    %cst_6 = arith.constant 0.000000e+00 : f32
    %21 = vector.broadcast %cst_6 : f32 to vector<32x256xf32>
    %22 = arith.select %8, %20, %21 : vector<32x256xi1>, vector<32x256xf32>
    %c15_i32_7 = arith.constant 15 : i32
    %23 = tpu.dynamic_rotate %1 by %c15_i32_7 dim 1 : vector<32x256xf32>, i32 -> vector<32x256xf32>
    %24 = arith.andi %8, %14 : vector<32x256xi1>
    %cst_8 = arith.constant 0.000000e+00 : f32
    %25 = vector.broadcast %cst_8 : f32 to vector<32x256xf32>
    %26 = arith.select %24, %23, %25 : vector<32x256xi1>, vector<32x256xf32>
    %27 = tpu.concatenate %19, %22, %26 in 0 : vector<32x256xf32>, vector<32x256xf32>, vector<32x256xf32> -> vector<96x256xf32>
    %c0_9 = arith.constant 0 : index
    %c0_10 = arith.constant 0 : index
    %c0_11 = arith.constant 0 : index
    %28 = vector.load %arg2[%c0_9, %c0_10, %c0_11] : memref<3x32x96xf32, #tpu.memory_space<vmem>>, vector<1x32x96xf32>
    %29 = vector.shape_cast %28 : vector<1x32x96xf32> to vector<32x96xf32>
    %cst_12 = arith.constant dense<0.000000e+00> : vector<32x256xf32>
    %30 = tpu.matmul %29, %27, %cst_12 {dimension_numbers = #tpu.dot_dimension_numbers<[1], [0], [0], [1], [0, 0, 1, 1], [], []>, precision = #tpu.contract_precision<fp32>} : vector<32x96xf32>, vector<96x256xf32>, vector<32x256xf32> -> vector<32x256xf32>
    %31 = arith.addf %15, %30 : vector<32x256xf32>
    %c1_i32 = arith.constant 1 : i32
    %32 = tpu.dynamic_rotate %1 by %c1_i32 dim 1 : vector<32x256xf32>, i32 -> vector<32x256xf32>
    %cst_13 = arith.constant 0.000000e+00 : f32
    %33 = vector.broadcast %cst_13 : f32 to vector<32x256xf32>
    %34 = arith.select %12, %32, %33 : vector<32x256xi1>, vector<32x256xf32>
    %c255_i32 = arith.constant 255 : i32
    %35 = tpu.dynamic_rotate %1 by %c255_i32 dim 1 : vector<32x256xf32>, i32 -> vector<32x256xf32>
    %cst_14 = arith.constant 0.000000e+00 : f32
    %36 = vector.broadcast %cst_14 : f32 to vector<32x256xf32>
    %37 = arith.select %14, %35, %36 : vector<32x256xi1>, vector<32x256xf32>
    %38 = tpu.concatenate %34, %1, %37 in 0 : vector<32x256xf32>, vector<32x256xf32>, vector<32x256xf32> -> vector<96x256xf32>
    %c1 = arith.constant 1 : index
    %c0_15 = arith.constant 0 : index
    %c0_16 = arith.constant 0 : index
    %39 = vector.load %arg2[%c1, %c0_15, %c0_16] : memref<3x32x96xf32, #tpu.memory_space<vmem>>, vector<1x32x96xf32>
    %40 = vector.shape_cast %39 : vector<1x32x96xf32> to vector<32x96xf32>
    %cst_17 = arith.constant dense<0.000000e+00> : vector<32x256xf32>
    %41 = tpu.matmul %40, %38, %cst_17 {dimension_numbers = #tpu.dot_dimension_numbers<[1], [0], [0], [1], [0, 0, 1, 1], [], []>, precision = #tpu.contract_precision<fp32>} : vector<32x96xf32>, vector<96x256xf32>, vector<32x256xf32> -> vector<32x256xf32>
    %42 = arith.addf %31, %41 : vector<32x256xf32>
    %c241_i32 = arith.constant 241 : i32
    %43 = tpu.dynamic_rotate %1 by %c241_i32 dim 1 : vector<32x256xf32>, i32 -> vector<32x256xf32>
    %44 = arith.andi %10, %12 : vector<32x256xi1>
    %cst_18 = arith.constant 0.000000e+00 : f32
    %45 = vector.broadcast %cst_18 : f32 to vector<32x256xf32>
    %46 = arith.select %44, %43, %45 : vector<32x256xi1>, vector<32x256xf32>
    %c240_i32 = arith.constant 240 : i32
    %47 = tpu.dynamic_rotate %1 by %c240_i32 dim 1 : vector<32x256xf32>, i32 -> vector<32x256xf32>
    %cst_19 = arith.constant 0.000000e+00 : f32
    %48 = vector.broadcast %cst_19 : f32 to vector<32x256xf32>
    %49 = arith.select %10, %47, %48 : vector<32x256xi1>, vector<32x256xf32>
    %c239_i32 = arith.constant 239 : i32
    %50 = tpu.dynamic_rotate %1 by %c239_i32 dim 1 : vector<32x256xf32>, i32 -> vector<32x256xf32>
    %51 = arith.andi %10, %14 : vector<32x256xi1>
    %cst_20 = arith.constant 0.000000e+00 : f32
    %52 = vector.broadcast %cst_20 : f32 to vector<32x256xf32>
    %53 = arith.select %51, %50, %52 : vector<32x256xi1>, vector<32x256xf32>
    %54 = tpu.concatenate %46, %49, %53 in 0 : vector<32x256xf32>, vector<32x256xf32>, vector<32x256xf32> -> vector<96x256xf32>
    %c2 = arith.constant 2 : index
    %c0_21 = arith.constant 0 : index
    %c0_22 = arith.constant 0 : index
    %55 = vector.load %arg2[%c2, %c0_21, %c0_22] : memref<3x32x96xf32, #tpu.memory_space<vmem>>, vector<1x32x96xf32>
    %56 = vector.shape_cast %55 : vector<1x32x96xf32> to vector<32x96xf32>
    %cst_23 = arith.constant dense<0.000000e+00> : vector<32x256xf32>
    %57 = tpu.matmul %56, %54, %cst_23 {dimension_numbers = #tpu.dot_dimension_numbers<[1], [0], [0], [1], [0, 0, 1, 1], [], []>, precision = #tpu.contract_precision<fp32>} : vector<32x96xf32>, vector<96x256xf32>, vector<32x256xf32> -> vector<32x256xf32>
    %58 = arith.addf %42, %57 : vector<32x256xf32>
    %cst_24 = arith.constant dense<0.000000e+00> : vector<32xf32>
    %59 = vector.multi_reduction <add>, %58, %cst_24 [1] : vector<32x256xf32> to vector<32xf32>
    %60 = vector.shape_cast %59 : vector<32xf32> to vector<32x1xf32>
    %cst_25 = arith.constant 3.906250e-03 : f32
    %61 = vector.broadcast %cst_25 : f32 to vector<32x1xf32>
    %62 = arith.mulf %60, %61 : vector<32x1xf32>
    %63 = vector.broadcast %62 : vector<32x1xf32> to vector<32x256xf32>
    %64 = arith.subf %58, %63 : vector<32x256xf32>
    %65 = arith.mulf %64, %64 : vector<32x256xf32>
    %cst_26 = arith.constant dense<0.000000e+00> : vector<32xf32>
    %66 = vector.multi_reduction <add>, %65, %cst_26 [1] : vector<32x256xf32> to vector<32xf32>
    %67 = vector.shape_cast %66 : vector<32xf32> to vector<32x1xf32>
    %cst_27 = arith.constant 3.906250e-03 : f32
    %68 = vector.broadcast %cst_27 : f32 to vector<32x1xf32>
    %69 = arith.mulf %67, %68 : vector<32x1xf32>
    %c0_28 = arith.constant 0 : index
    %c0_29 = arith.constant 0 : index
    %70 = vector.load %arg3[%c0_28, %c0_29] : memref<32x1xf32, #tpu.memory_space<vmem>>, vector<32x1xf32>
    %cst_30 = arith.constant 9.99999974E-6 : f32
    %71 = vector.broadcast %cst_30 : f32 to vector<32x1xf32>
    %72 = arith.addf %69, %71 : vector<32x1xf32>
    %73 = math.rsqrt %72 : vector<32x1xf32>
    %74 = arith.mulf %70, %73 : vector<32x1xf32>
    %75 = vector.broadcast %74 : vector<32x1xf32> to vector<32x256xf32>
    %76 = arith.mulf %64, %75 : vector<32x256xf32>
    %c0_31 = arith.constant 0 : index
    %c0_32 = arith.constant 0 : index
    %77 = vector.load %arg4[%c0_31, %c0_32] : memref<32x1xf32, #tpu.memory_space<vmem>>, vector<32x1xf32>
    %78 = vector.broadcast %77 : vector<32x1xf32> to vector<32x256xf32>
    %79 = arith.addf %76, %78 : vector<32x256xf32>
    %cst_33 = arith.constant 0.000000e+00 : f32
    %80 = vector.broadcast %cst_33 : f32 to vector<32x256xf32>
    %81 = arith.cmpf oge, %79, %80 : vector<32x256xf32>
    %cst_34 = arith.constant 0.00999999977 : f32
    %82 = vector.broadcast %cst_34 : f32 to vector<32x256xf32>
    %83 = arith.mulf %82, %79 : vector<32x256xf32>
    %84 = arith.select %81, %79, %83 : vector<32x256xi1>, vector<32x256xf32>
    %cst_35 = arith.constant 0.000000e+00 : f32
    %85 = vector.broadcast %cst_35 : f32 to vector<32x256xf32>
    %c17_i32_36 = arith.constant 17 : i32
    %86 = tpu.dynamic_rotate %84 by %c17_i32_36 dim 1 : vector<32x256xf32>, i32 -> vector<32x256xf32>
    %87 = arith.andi %8, %12 : vector<32x256xi1>
    %cst_37 = arith.constant 0.000000e+00 : f32
    %88 = vector.broadcast %cst_37 : f32 to vector<32x256xf32>
    %89 = arith.select %87, %86, %88 : vector<32x256xi1>, vector<32x256xf32>
    %c16_i32_38 = arith.constant 16 : i32
    %90 = tpu.dynamic_rotate %84 by %c16_i32_38 dim 1 : vector<32x256xf32>, i32 -> vector<32x256xf32>
    %cst_39 = arith.constant 0.000000e+00 : f32
    %91 = vector.broadcast %cst_39 : f32 to vector<32x256xf32>
    %92 = arith.select %8, %90, %91 : vector<32x256xi1>, vector<32x256xf32>
    %c15_i32_40 = arith.constant 15 : i32
    %93 = tpu.dynamic_rotate %84 by %c15_i32_40 dim 1 : vector<32x256xf32>, i32 -> vector<32x256xf32>
    %94 = arith.andi %8, %14 : vector<32x256xi1>
    %cst_41 = arith.constant 0.000000e+00 : f32
    %95 = vector.broadcast %cst_41 : f32 to vector<32x256xf32>
    %96 = arith.select %94, %93, %95 : vector<32x256xi1>, vector<32x256xf32>
    %97 = tpu.concatenate %89, %92, %96 in 0 : vector<32x256xf32>, vector<32x256xf32>, vector<32x256xf32> -> vector<96x256xf32>
    %c0_42 = arith.constant 0 : index
    %c0_43 = arith.constant 0 : index
    %c0_44 = arith.constant 0 : index
    %98 = vector.load %arg5[%c0_42, %c0_43, %c0_44] : memref<3x32x96xf32, #tpu.memory_space<vmem>>, vector<1x32x96xf32>
    %99 = vector.shape_cast %98 : vector<1x32x96xf32> to vector<32x96xf32>
    %cst_45 = arith.constant dense<0.000000e+00> : vector<32x256xf32>
    %100 = tpu.matmul %99, %97, %cst_45 {dimension_numbers = #tpu.dot_dimension_numbers<[1], [0], [0], [1], [0, 0, 1, 1], [], []>, precision = #tpu.contract_precision<fp32>} : vector<32x96xf32>, vector<96x256xf32>, vector<32x256xf32> -> vector<32x256xf32>
    %101 = arith.addf %85, %100 : vector<32x256xf32>
    %c1_i32_46 = arith.constant 1 : i32
    %102 = tpu.dynamic_rotate %84 by %c1_i32_46 dim 1 : vector<32x256xf32>, i32 -> vector<32x256xf32>
    %cst_47 = arith.constant 0.000000e+00 : f32
    %103 = vector.broadcast %cst_47 : f32 to vector<32x256xf32>
    %104 = arith.select %12, %102, %103 : vector<32x256xi1>, vector<32x256xf32>
    %c255_i32_48 = arith.constant 255 : i32
    %105 = tpu.dynamic_rotate %84 by %c255_i32_48 dim 1 : vector<32x256xf32>, i32 -> vector<32x256xf32>
    %cst_49 = arith.constant 0.000000e+00 : f32
    %106 = vector.broadcast %cst_49 : f32 to vector<32x256xf32>
    %107 = arith.select %14, %105, %106 : vector<32x256xi1>, vector<32x256xf32>
    %108 = tpu.concatenate %104, %84, %107 in 0 : vector<32x256xf32>, vector<32x256xf32>, vector<32x256xf32> -> vector<96x256xf32>
    %c1_50 = arith.constant 1 : index
    %c0_51 = arith.constant 0 : index
    %c0_52 = arith.constant 0 : index
    %109 = vector.load %arg5[%c1_50, %c0_51, %c0_52] : memref<3x32x96xf32, #tpu.memory_space<vmem>>, vector<1x32x96xf32>
    %110 = vector.shape_cast %109 : vector<1x32x96xf32> to vector<32x96xf32>
    %cst_53 = arith.constant dense<0.000000e+00> : vector<32x256xf32>
    %111 = tpu.matmul %110, %108, %cst_53 {dimension_numbers = #tpu.dot_dimension_numbers<[1], [0], [0], [1], [0, 0, 1, 1], [], []>, precision = #tpu.contract_precision<fp32>} : vector<32x96xf32>, vector<96x256xf32>, vector<32x256xf32> -> vector<32x256xf32>
    %112 = arith.addf %101, %111 : vector<32x256xf32>
    %c241_i32_54 = arith.constant 241 : i32
    %113 = tpu.dynamic_rotate %84 by %c241_i32_54 dim 1 : vector<32x256xf32>, i32 -> vector<32x256xf32>
    %114 = arith.andi %10, %12 : vector<32x256xi1>
    %cst_55 = arith.constant 0.000000e+00 : f32
    %115 = vector.broadcast %cst_55 : f32 to vector<32x256xf32>
    %116 = arith.select %114, %113, %115 : vector<32x256xi1>, vector<32x256xf32>
    %c240_i32_56 = arith.constant 240 : i32
    %117 = tpu.dynamic_rotate %84 by %c240_i32_56 dim 1 : vector<32x256xf32>, i32 -> vector<32x256xf32>
    %cst_57 = arith.constant 0.000000e+00 : f32
    %118 = vector.broadcast %cst_57 : f32 to vector<32x256xf32>
    %119 = arith.select %10, %117, %118 : vector<32x256xi1>, vector<32x256xf32>
    %c239_i32_58 = arith.constant 239 : i32
    %120 = tpu.dynamic_rotate %84 by %c239_i32_58 dim 1 : vector<32x256xf32>, i32 -> vector<32x256xf32>
    %121 = arith.andi %10, %14 : vector<32x256xi1>
    %cst_59 = arith.constant 0.000000e+00 : f32
    %122 = vector.broadcast %cst_59 : f32 to vector<32x256xf32>
    %123 = arith.select %121, %120, %122 : vector<32x256xi1>, vector<32x256xf32>
    %124 = tpu.concatenate %116, %119, %123 in 0 : vector<32x256xf32>, vector<32x256xf32>, vector<32x256xf32> -> vector<96x256xf32>
    %c2_60 = arith.constant 2 : index
    %c0_61 = arith.constant 0 : index
    %c0_62 = arith.constant 0 : index
    %125 = vector.load %arg5[%c2_60, %c0_61, %c0_62] : memref<3x32x96xf32, #tpu.memory_space<vmem>>, vector<1x32x96xf32>
    %126 = vector.shape_cast %125 : vector<1x32x96xf32> to vector<32x96xf32>
    %cst_63 = arith.constant dense<0.000000e+00> : vector<32x256xf32>
    %127 = tpu.matmul %126, %124, %cst_63 {dimension_numbers = #tpu.dot_dimension_numbers<[1], [0], [0], [1], [0, 0, 1, 1], [], []>, precision = #tpu.contract_precision<fp32>} : vector<32x96xf32>, vector<96x256xf32>, vector<32x256xf32> -> vector<32x256xf32>
    %128 = arith.addf %112, %127 : vector<32x256xf32>
    %cst_64 = arith.constant dense<0.000000e+00> : vector<32xf32>
    %129 = vector.multi_reduction <add>, %128, %cst_64 [1] : vector<32x256xf32> to vector<32xf32>
    %130 = vector.shape_cast %129 : vector<32xf32> to vector<32x1xf32>
    %cst_65 = arith.constant 3.906250e-03 : f32
    %131 = vector.broadcast %cst_65 : f32 to vector<32x1xf32>
    %132 = arith.mulf %130, %131 : vector<32x1xf32>
    %133 = vector.broadcast %132 : vector<32x1xf32> to vector<32x256xf32>
    %134 = arith.subf %128, %133 : vector<32x256xf32>
    %135 = arith.mulf %134, %134 : vector<32x256xf32>
    %cst_66 = arith.constant dense<0.000000e+00> : vector<32xf32>
    %136 = vector.multi_reduction <add>, %135, %cst_66 [1] : vector<32x256xf32> to vector<32xf32>
    %137 = vector.shape_cast %136 : vector<32xf32> to vector<32x1xf32>
    %cst_67 = arith.constant 3.906250e-03 : f32
    %138 = vector.broadcast %cst_67 : f32 to vector<32x1xf32>
    %139 = arith.mulf %137, %138 : vector<32x1xf32>
    %c0_68 = arith.constant 0 : index
    %c0_69 = arith.constant 0 : index
    %140 = vector.load %arg6[%c0_68, %c0_69] : memref<32x1xf32, #tpu.memory_space<vmem>>, vector<32x1xf32>
    %cst_70 = arith.constant 9.99999974E-6 : f32
    %141 = vector.broadcast %cst_70 : f32 to vector<32x1xf32>
    %142 = arith.addf %139, %141 : vector<32x1xf32>
    %143 = math.rsqrt %142 : vector<32x1xf32>
    %144 = arith.mulf %140, %143 : vector<32x1xf32>
    %145 = vector.broadcast %144 : vector<32x1xf32> to vector<32x256xf32>
    %146 = arith.mulf %134, %145 : vector<32x256xf32>
    %c0_71 = arith.constant 0 : index
    %c0_72 = arith.constant 0 : index
    %147 = vector.load %arg7[%c0_71, %c0_72] : memref<32x1xf32, #tpu.memory_space<vmem>>, vector<32x1xf32>
    %148 = vector.broadcast %147 : vector<32x1xf32> to vector<32x256xf32>
    %149 = arith.addf %146, %148 : vector<32x256xf32>
    %cst_73 = arith.constant 0.000000e+00 : f32
    %150 = vector.broadcast %cst_73 : f32 to vector<32x256xf32>
    %151 = arith.cmpf oge, %149, %150 : vector<32x256xf32>
    %cst_74 = arith.constant 0.00999999977 : f32
    %152 = vector.broadcast %cst_74 : f32 to vector<32x256xf32>
    %153 = arith.mulf %152, %149 : vector<32x256xf32>
    %154 = arith.select %151, %149, %153 : vector<32x256xi1>, vector<32x256xf32>
    %c0_75 = arith.constant 0 : index
    %c0_76 = arith.constant 0 : index
    %c0_77 = arith.constant 0 : index
    %155 = vector.load %arg8[%c0_75, %c0_76, %c0_77] : memref<1x32x256xf32, #tpu.memory_space<vmem>>, vector<1x32x256xf32>
    %156 = vector.shape_cast %155 : vector<1x32x256xf32> to vector<32x256xf32>
    %157 = vector.shape_cast %154 : vector<32x256xf32> to vector<1x32x256xf32>
    tpu.vector_store %arg8[%c0_75, %c0_76, %c0_77], %157 {strides = array<i32>} : memref<1x32x256xf32, #tpu.memory_space<vmem>>, vector<1x32x256xf32>,
    return
  }
  func.func @transform_0(%arg0: i32) -> (i32, i32, i32) {
    %c0_i32 = arith.constant 0 : i32
    %c0_i32_0 = arith.constant 0 : i32
    %c0_i32_1 = arith.constant 0 : i32
    return %arg0, %c0_i32, %c0_i32_0 : i32, i32, i32
  }
  func.func @transform_1(%arg0: i32) -> (i32, i32, i32) {
    %c0_i32 = arith.constant 0 : i32
    %c0_i32_0 = arith.constant 0 : i32
    %c0_i32_1 = arith.constant 0 : i32
    %c0_i32_2 = arith.constant 0 : i32
    return %c0_i32, %c0_i32_0, %c0_i32_1 : i32, i32, i32
  }
  func.func @transform_2(%arg0: i32) -> (i32, i32) {
    %c0_i32 = arith.constant 0 : i32
    %c0_i32_0 = arith.constant 0 : i32
    %c0_i32_1 = arith.constant 0 : i32
    return %c0_i32, %c0_i32_0 : i32, i32
  }
  func.func @transform_3(%arg0: i32) -> (i32, i32) {
    %c0_i32 = arith.constant 0 : i32
    %c0_i32_0 = arith.constant 0 : i32
    %c0_i32_1 = arith.constant 0 : i32
    return %c0_i32, %c0_i32_0 : i32, i32
  }
  func.func @transform_4(%arg0: i32) -> (i32, i32, i32) {
    %c0_i32 = arith.constant 0 : i32
    %c0_i32_0 = arith.constant 0 : i32
    %c0_i32_1 = arith.constant 0 : i32
    %c0_i32_2 = arith.constant 0 : i32
    return %c0_i32, %c0_i32_0, %c0_i32_1 : i32, i32, i32
  }
  func.func @transform_5(%arg0: i32) -> (i32, i32) {
    %c0_i32 = arith.constant 0 : i32
    %c0_i32_0 = arith.constant 0 : i32
    %c0_i32_1 = arith.constant 0 : i32
    return %c0_i32, %c0_i32_0 : i32, i32
  }
  func.func @transform_6(%arg0: i32) -> (i32, i32) {
    %c0_i32 = arith.constant 0 : i32
    %c0_i32_0 = arith.constant 0 : i32
    %c0_i32_1 = arith.constant 0 : i32
    return %c0_i32, %c0_i32_0 : i32, i32
  }
  func.func @transform_7(%arg0: i32) -> (i32, i32, i32) {
    %c0_i32 = arith.constant 0 : i32
    %c0_i32_0 = arith.constant 0 : i32
    %c0_i32_1 = arith.constant 0 : i32
    return %arg0, %c0_i32, %c0_i32_0 : i32, i32, i32
  }
}

</mosaic_0001>

<bundles_post_ra>
// kernel: block_resnet1_nhwc.1
= control target key start
LH: loop header
LB: loop body
LE: loop exit
PB: predicated region body
PF: predicated region fallthrough
CT: control target
= control target key end

     0   :  { %s7953_s24 = smov 0   ;;  %s12690_s0 = inlined_call_operand.vmem [shape: f32[8,32,256], index: 0, kind: input, shape index: {}, may-alias: {0,7}]   ;;  %s12691_s1 = inlined_call_operand.vmem [shape: f32[3,32,96], index: 1, kind: input, shape index: {}]   ;;  %s12692_s2 = inlined_call_operand.vmem [shape: f32[32,1], index: 2, kind: input, shape index: {}]   ;;  %s12693_s3 = inlined_call_operand.vmem [shape: f32[32,1], index: 3, kind: input, shape index: {}]   ;;  %s12694_s4 = inlined_call_operand.vmem [shape: f32[3,32,96], index: 4, kind: input, shape index: {}]   ;;  %s12695_s5 = inlined_call_operand.vmem [shape: f32[32,1], index: 5, kind: input, shape index: {}]   ;;  %s12696_s6 = inlined_call_operand.vmem [shape: f32[32,1], index: 6, kind: input, shape index: {}]   ;;  %s12697_s7 = inlined_call_operand.vmem [shape: f32[8,32,256], index: 7, kind: output, shape index: {}, may-alias: {0,7}]  }
   0x1 LB: > { %s6694_s25 = sadd.s32 4294967295, %s7901_s24   ;;  %p6698_p0 = scmp.ge.s32.totalorder %s7901_s24, 1  ;;  %s7901_s24 = sphi %s7953_s24, %s17_s24  }
   0x2   : > { %p237_p1 = scmp.lt.s32.totalorder %s7901_s24, 9 }
   0x4   : > { %p238_p2 = pnand %p6698_p0, %p237_p1 }
   0x6   : > { %241 = sbr.rel (%p238_p2) target bundleno = 2511 (0x9cf), region = 48 }
   0xd   : > { %p269_p3 = scmp.lt.s32.totalorder %s6694_s25, 7  ;;  %s7903_s30 = smov 1   ;;  %v12703_v8 = vmov 0.0   ;;  %v287_v9 = vlaneseq  ;;  %v6703_v12 = vld [vmem:[%s12691_s1 + $0x20] sm:$0xff]  ;;  %vm12853_vm0 = vcmask 785408   ;;  %v13100_v19 = vmov 0 }
   0xe   : > { %s7904_s8 = smov 127   ;;  %581 = vmatprep.mubr.f32.mxu0 %v12703_v8  ;;  %3744 = vmatprep.mubr.f32.mxu1 %v12703_v8  ;;  %s7906_s9 = smov 17   ;;  %v482_v15 = vsel %vm12853_vm0, %v6703_v12, 0  ;;  %v13103_v20 = vmov 0  ;;  %v6704_v62 = vld [vmem:[%s12691_s1 + $0x28] sm:$0xff] }
   0xf   : > { %s14222_s25 = smov (!%p269_p3, %s6694_s25), 7  ;;  %s7907_s10 = smov 16   ;;  %v8067_v10 = vand.u32 127, %v287_v9  ;;  %v8080_v18 = vand.u32 4294901760, %v482_v15 }
  0x10   : > { %s6721_s26 = sshll.u32 %s14222_s25, 6  ;;  %s7908_s11 = smov 15  }
  0x11   : > { %s273_s29 = scalar_lea.vmem %s12690_s0, %s6721_s26  ;;  %13097 = vst [vmem:[#allocation2_spill] sm:$0xff] %v8067_v10  ;;  %v8070_v11 = vadd.s32 128, %v8067_v10  ;;  %v290_v13 = vand.u32 15, %v8067_v10  ;;  %13099 = vst [vmem:[#allocation4_spill] sm:$0xff] %v8080_v18  ;;  %vm12846_vm3 = vcmp.lt.s32.totalorder %v8067_v10, 1  ;;  %v8104_v29 = vsub.f32 %v482_v15, %v8080_v18  ;;  %s7909_s20 = smov 113  }
  0x12   : > { %v7969_v0 = vld [vmem:[%s273_s29 + $0x8] sm:$0xff]  ;;  %v7971_v1 = vld [vmem:[%s273_s29] sm:$0xff]  ;;  %v7977_v2 = vld [vmem:[%s273_s29 + $0x18] sm:$0xff]  ;;  %vm12843_vm4 = vcmp.lt.s32.totalorder %v8067_v10, 127  ;;  %s7910_s21 = smov 112   ;;  %s7911_s22 = smov 111  }
  0x13   : > { %417 = vrot.lane.b32.xlu1 %v7969_v0, %s7903_s30  ;;  %409 = vrot.lane.b32.xlu0 %v7971_v1, %s7903_s30  ;;  %v7979_v3 = vld [vmem:[%s273_s29 + $0x10] sm:$0xff]  ;;  %v7987_v5 = vld [vmem:[%s273_s29 + $0x20] sm:$0xff]  ;;  %13098 = vst [vmem:[#allocation3_spill] sm:$0xff] %v8070_v11  ;;  %v291_v14 = vand.u32 15, %v8070_v11  ;;  %v509_v16 = vand.u32 4294901760, %v7969_v0  ;;  %v513_v17 = vand.u32 4294901760, %v7977_v2 }
  0x14   : > { %v7985_v4 = vld [vmem:[%s273_s29 + $0x30] sm:$0xff]  ;;  %v7993_v6 = vld [vmem:[%s273_s29 + $0x38] sm:$0xff]  ;;  %v7995_v7 = vld [vmem:[%s273_s29 + $0x28] sm:$0xff]  ;;  %vm8082_vm1 = vcmp.gt.s32.totalorder %v290_v13, 0  ;;  %v511_v23 = vand.u32 4294901760, %v7971_v1  ;;  %v515_v24 = vand.u32 4294901760, %v7979_v3 }
  0x15   : > { %v13101_v19 = vsel %vm8082_vm1, 4294967295, %v13100_v19  ;;  %vm8086_vm2 = vcmp.gt.s32.totalorder %v291_v14, 0  ;;  %v8092_v21 = vsub.f32 %v7969_v0, %v509_v16  ;;  %v8095_v22 = vsub.f32 %v7977_v2, %v513_v17  ;;  %13108 = vst [vmem:[#allocation9_spill] sm:$0xff] %v8104_v29 }
  0x16   : > { %13102 = vst [vmem:[#allocation5_spill] sm:$0xff] %v13101_v19  ;;  %v13104_v20 = vsel %vm8086_vm2, 4294967295, %v13103_v20  ;;  %v8111_v32 = vsub.f32 %v7971_v1, %v511_v23  ;;  %v8114_v33 = vsub.f32 %v7979_v3, %v515_v24  ;;  %v8116_v34 = vpack.c.bf16 %v513_v17, %v509_v16 }
  0x17   : > { %419 = vrot.lane.b32.xlu1 %v7977_v2, %s7903_s30  ;;  %411 = vrot.lane.b32.xlu0 %v7979_v3, %s7903_s30  ;;  %13105 = vst [vmem:[#allocation6_spill] sm:$0xff] %v13104_v20  ;;  %13106 = vst [vmem:[#allocation7_spill] sm:$0xff] %v8092_v21  ;;  %v8118_v35 = vpack.c.bf16 %v515_v24, %v511_v23  ;;  %v12701_v36 = vand.u32 4294901760, %v8092_v21  ;;  %v12700_v37 = vand.u32 4294901760, %v8095_v22  ;;  %v517_v42 = vand.u32 4294901760, %v7995_v7 }
  0x18   : > { %13107 = vst [vmem:[#allocation8_spill] sm:$0xff] %v8095_v22  ;;  %13109 = vst [vmem:[#allocation10_spill] sm:$0xff] %v8111_v32  ;;  %v521_v43 = vand.u32 4294901760, %v7993_v6  ;;  %v519_v46 = vand.u32 4294901760, %v7987_v5  ;;  %v12702_v47 = vand.u32 4294901760, %v8104_v29  ;;  %v12699_v50 = vand.u32 4294901760, %v8111_v32 }
  0x19   : > { %13110 = vst [vmem:[#allocation11_spill] sm:$0xff] %v8114_v33  ;;  %13111 = vst [vmem:[#allocation12_spill] sm:$0xff] %v8116_v34  ;;  %v12698_v51 = vand.u32 4294901760, %v8114_v33  ;;  %v677_v54 = vsub.f32 %v8092_v21, %v12701_v36  ;;  %v689_v55 = vsub.f32 %v8095_v22, %v12700_v37  ;;  %v8149_v60 = vsub.f32 %v7995_v7, %v517_v42 }
  0x1a   : > { %13112 = vst [vmem:[#allocation13_spill] sm:$0xff] %v8118_v35  ;;  %v523_v61 = vand.u32 4294901760, %v7985_v4  ;;  %v8165_v16 = vsub.f32 %v7993_v6, %v521_v43  ;;  %v8168_v17 = vsub.f32 %v7987_v5, %v519_v46  ;;  %v8173_v23 = vsub.f32 %v8104_v29, %v12702_v47 }
  0x1b   : > { %415 = vrot.lane.b32.xlu1 %v7985_v4, %s7903_s30  ;;  %413 = vrot.lane.b32.xlu0 %v7987_v5, %s7903_s30  ;;  %13113 = vst [vmem:[#allocation14_spill] sm:$0xff] %v8149_v60  ;;  %v8178_v24 = vsub.f32 %v8111_v32, %v12699_v50  ;;  %vm8181_vm5 = vcmp.lt.s32.totalorder %v290_v13, 15  ;;  %vm8185_vm6 = vcmp.lt.s32.totalorder %v291_v14, 15  ;;  %vm12835_vm8 = vcmp.lt.s32.totalorder %v8067_v10, 17 }
  0x1c   : > { %13116 = vst [vmem:[#allocation17_spill] sm:$0xff] %v8165_v16  ;;  %13117 = vst [vmem:[#allocation18_spill] sm:$0xff] %v8168_v17  ;;  %v8238_v36 = vpack.c.bf16 %v523_v61, %v519_v46  ;;  %v8241_v47 = vsub.f32 %v7985_v4, %v523_v61  ;;  %vm12842_vm12 = vcmp.lt.s32.totalorder %v8067_v10, 16  ;;  %vm12837_vm13 = vcmp.lt.s32.totalorder %v8067_v10, 15 }
  0x1e   : > { %13128 = vst [vmem:[#allocation25_spill] sm:$0xff] %v8238_v36 }
  0x1f   : > { %423 = vrot.lane.b32.xlu1 %v7993_v6, %s7903_s30  ;;  %421 = vrot.lane.b32.xlu0 %v7995_v7, %s7903_s30 }
  0x23   : > { %444 = vrot.lane.b32.xlu1 %v7979_v3, %s7904_s8  ;;  %442 = vrot.lane.b32.xlu0 %v7971_v1, %s7904_s8 }
  0x27   : > { %452 = vrot.lane.b32.xlu1 %v7977_v2, %s7904_s8  ;;  %450 = vrot.lane.b32.xlu0 %v7969_v0, %s7904_s8 }
  0x2b   : > { %448 = vrot.lane.b32.xlu1 %v7985_v4, %s7904_s8  ;;  %446 = vrot.lane.b32.xlu0 %v7987_v5, %s7904_s8 }
  0x2f   : > { %456 = vrot.lane.b32.xlu1 %v7993_v6, %s7904_s8  ;;  %454 = vrot.lane.b32.xlu0 %v7995_v7, %s7904_s8 }
  0x33   : > { %304 = vrot.lane.b32.xlu1 %v7979_v3, %s7906_s9  ;;  %302 = vrot.lane.b32.xlu0 %v7971_v1, %s7906_s9 }
  0x37   : > { %312 = vrot.lane.b32.xlu1 %v7977_v2, %s7906_s9  ;;  %310 = vrot.lane.b32.xlu0 %v7969_v0, %s7906_s9 }
  0x3b   : > { %308 = vrot.lane.b32.xlu1 %v7985_v4, %s7906_s9  ;;  %306 = vrot.lane.b32.xlu0 %v7987_v5, %s7906_s9 }
  0x3f   : > { %316 = vrot.lane.b32.xlu1 %v7993_v6, %s7906_s9  ;;  %314 = vrot.lane.b32.xlu0 %v7995_v7, %s7906_s9 }
  0x43   : > { %339 = vrot.lane.b32.xlu1 %v7979_v3, %s7907_s10  ;;  %337 = vrot.lane.b32.xlu0 %v7971_v1, %s7907_s10 }
  0x47   : > { %347 = vrot.lane.b32.xlu1 %v7977_v2, %s7907_s10  ;;  %345 = vrot.lane.b32.xlu0 %v7969_v0, %s7907_s10 }
  0x4b   : > { %343 = vrot.lane.b32.xlu1 %v7985_v4, %s7907_s10  ;;  %341 = vrot.lane.b32.xlu0 %v7987_v5, %s7907_s10 }
  0x4f   : > { %351 = vrot.lane.b32.xlu1 %v7993_v6, %s7907_s10  ;;  %349 = vrot.lane.b32.xlu0 %v7995_v7, %s7907_s10 }
  0x53   : > { %372 = vrot.lane.b32.xlu1 %v7979_v3, %s7908_s11  ;;  %370 = vrot.lane.b32.xlu0 %v7971_v1, %s7908_s11 }
  0x57   : > { %380 = vrot.lane.b32.xlu1 %v7977_v2, %s7908_s11  ;;  %378 = vrot.lane.b32.xlu0 %v7969_v0, %s7908_s11 }
  0x5b   : > { %376 = vrot.lane.b32.xlu1 %v7985_v4, %s7908_s11  ;;  %374 = vrot.lane.b32.xlu0 %v7987_v5, %s7908_s11 }
  0x5f   : > { %384 = vrot.lane.b32.xlu1 %v7993_v6, %s7908_s11  ;;  %382 = vrot.lane.b32.xlu0 %v7995_v7, %s7908_s11 }
  0x63   : > { %2303 = vrot.lane.b32.xlu1 %v7979_v3, %s7909_s20  ;;  %2301 = vrot.lane.b32.xlu0 %v7971_v1, %s7909_s20 }
  0x67   : > { %2311 = vrot.lane.b32.xlu1 %v7977_v2, %s7909_s20  ;;  %2309 = vrot.lane.b32.xlu0 %v7969_v0, %s7909_s20 }
  0x6b   : > { %2307 = vrot.lane.b32.xlu1 %v7985_v4, %s7909_s20  ;;  %2305 = vrot.lane.b32.xlu0 %v7987_v5, %s7909_s20 }
  0x6f   : > { %2315 = vrot.lane.b32.xlu1 %v7993_v6, %s7909_s20  ;;  %2313 = vrot.lane.b32.xlu0 %v7995_v7, %s7909_s20 }
  0x73   : > { %2338 = vrot.lane.b32.xlu1 %v7979_v3, %s7910_s21  ;;  %2336 = vrot.lane.b32.xlu0 %v7971_v1, %s7910_s21 }
  0x77   : > { %2346 = vrot.lane.b32.xlu1 %v7977_v2, %s7910_s21  ;;  %2344 = vrot.lane.b32.xlu0 %v7969_v0, %s7910_s21 }
  0x7b   : > { %2342 = vrot.lane.b32.xlu1 %v7985_v4, %s7910_s21  ;;  %2340 = vrot.lane.b32.xlu0 %v7987_v5, %s7910_s21 }
  0x7f   : > { %2350 = vrot.lane.b32.xlu1 %v7993_v6, %s7910_s21  ;;  %2348 = vrot.lane.b32.xlu0 %v7995_v7, %s7910_s21 }
  0x83   : > { %2371 = vrot.lane.b32.xlu1 %v7979_v3, %s7911_s22  ;;  %2369 = vrot.lane.b32.xlu0 %v7971_v1, %s7911_s22  ;;  %v13161_v3 = vmov 0 }
  0x85   : > { %v418_v25 = vpop.permute.xlu1 %417  ;;  %v410_v26 = vpop.permute.xlu0 %409 }
  0x86   : > { %v426_v27 = vsel %vm12846_vm3, %v410_v26, %v418_v25  ;;  %v430_v28 = vsel %vm12846_vm3, %v418_v25, %v410_v26  ;;  %v13118_v25 = vmov 0  ;;  %v13121_v26 = vmov 0 }
  0x87   : > { %v434_v30 = vsel %vm8082_vm1, %v430_v28, 0.0  ;;  %v435_v31 = vsel %vm8086_vm2, %v426_v27, 0.0  ;;  %v13119_v25 = vsel %vm8181_vm5, 4294967295, %v13118_v25  ;;  %v13122_v26 = vsel %vm8185_vm6, 4294967295, %v13121_v26  ;;  %2379 = vrot.lane.b32.xlu1 %v7977_v2, %s7911_s22  ;;  %2377 = vrot.lane.b32.xlu0 %v7969_v0, %s7911_s22 }
  0x88   : > { %v493_v38 = vand.u32 4294901760, %v435_v31  ;;  %v495_v39 = vand.u32 4294901760, %v434_v30  ;;  %13120 = vst [vmem:[#allocation19_spill] sm:$0xff] %v13119_v25  ;;  %13123 = vst [vmem:[#allocation20_spill] sm:$0xff] %v13122_v26  ;;  %v678_v27 = vand.u32 4294901760, %v677_v54  ;;  %v690_v28 = vand.u32 4294901760, %v689_v55 }
  0x89   : > { %v420_v40 = vpop.permute.xlu1 %419  ;;  %v412_v41 = vpop.permute.xlu0 %411  ;;  %v13164_v0 = vmov 0 }
  0x8a   : > { %v427_v44 = vsel %vm12846_vm3, %v412_v41, %v420_v40  ;;  %v431_v45 = vsel %vm12846_vm3, %v420_v40, %v412_v41  ;;  %v8142_v56 = vsub.f32 %v435_v31, %v493_v38  ;;  %v8144_v57 = vsub.f32 %v434_v30, %v495_v39 }
  0x8b   : > { %v436_v48 = vsel %vm8082_vm1, %v431_v45, 0.0  ;;  %v437_v49 = vsel %vm8086_vm2, %v427_v44, 0.0  ;;  %v8192_v30 = vsub.f32 %v8114_v33, %v12698_v51  ;;  %v485_v31 = vsel %vm12853_vm0, %v6704_v62, 0  ;;  %2375 = vrot.lane.b32.xlu1 %v7985_v4, %s7911_s22  ;;  %2373 = vrot.lane.b32.xlu0 %v7987_v5, %s7911_s22 }
  0x8c   : > { %v497_v52 = vand.u32 4294901760, %v437_v49  ;;  %v499_v53 = vand.u32 4294901760, %v436_v48  ;;  %v12706_v40 = vand.u32 4294901760, %v8142_v56  ;;  %v8220_v37 = vand.u32 4294901760, %v485_v31 }
  0x8d   : > { %v416_v58 = vpop.permute.xlu1 %415  ;;  %v414_v59 = vpop.permute.xlu0 %413 }
  0x8e   : > { %v8155_v63 = vsub.f32 %v437_v49, %v497_v52  ;;  %v8157_v9 = vsub.f32 %v436_v48, %v499_v53  ;;  %v8159_v12 = vpack.c.bf16 %v497_v52, %v493_v38  ;;  %v8161_v15 = vpack.c.bf16 %v499_v53, %v495_v39  ;;  %13124 = vst [vmem:[#allocation21_spill] sm:$0xff] %v8220_v37 }
  0x8f   : > { %v12708_v38 = vand.u32 4294901760, %v8144_v57  ;;  %2383 = vrot.lane.b32.xlu1 %v7993_v6, %s7911_s22  ;;  %2381 = vrot.lane.b32.xlu0 %v7995_v7, %s7911_s22 }
  0x90   : > { %13114 = vst [vmem:[#allocation15_spill] sm:$0xff] %v8159_v12  ;;  %13115 = vst [vmem:[#allocation16_spill] sm:$0xff] %v8161_v15  ;;  %6724 = vmatprep.subr.bf16.mxu0 %v8159_v12  ;;  %v12707_v13 = vand.u32 4294901760, %v8157_v9  ;;  %v12705_v41 = vand.u32 4294901760, %v8155_v63  ;;  %v6771_v1 = vpack.c.bf16 %v8155_v63, %v8142_v56  ;;  %v6773_v2 = vpack.c.bf16 %v8157_v9, %v8144_v57 }
  0x91   : > { %v424_v39 = vpop.permute.xlu1 %423  ;;  %6726 = vmatpush1.bf16.msra.mxu0 %v8161_v15  ;;  %v422_v14 = vpop.permute.xlu0 %421  ;;  %v13139_v15 = vand.u32 4294901760, %v8144_v57 }
  0x92   : > { %v429_v44 = vsel %vm12846_vm3, %v416_v58, %v424_v39  ;;  %v433_v45 = vsel %vm12846_vm3, %v424_v39, %v416_v58  ;;  %v428_v48 = vsel %vm12846_vm3, %v414_v59, %v422_v14  ;;  %v432_v49 = vsel %vm12846_vm3, %v422_v14, %v414_v59  ;;  %v6705_v58 = vld [vmem:[%s12691_s1 + $0x30] sm:$0xff] }
  0x93   : > { %v440_v52 = vsel %vm8082_vm1, %v433_v45, 0.0  ;;  %v441_v53 = vsel %vm8086_vm2, %v429_v44, 0.0  ;;  %v438_v54 = vsel %vm8082_vm1, %v432_v49, 0.0  ;;  %v439_v55 = vsel %vm8086_vm2, %v428_v48, 0.0 }
  0x94   : > { %v505_v62 = vand.u32 4294901760, %v441_v53  ;;  %v507_v39 = vand.u32 4294901760, %v440_v52  ;;  %v501_v51 = vand.u32 4294901760, %v439_v55  ;;  %v503_v59 = vand.u32 4294901760, %v438_v54 }
  0x95   : > { %v445_v14 = vpop.permute.xlu1 %444  ;;  %v443_v50 = vpop.permute.xlu0 %442  ;;  %v8226_v44 = vpack.c.bf16 %v12705_v41, %v12706_v40  ;;  %v8232_v48 = vpack.c.bf16 %v12707_v13, %v12708_v38  ;;  %v8236_v49 = vpack.c.bf16 %v521_v43, %v517_v42  ;;  %v488_v8 = vsel %vm12853_vm0, %v6705_v58, 0  ;;  %v6706_v43 = vld [vmem:[%s12691_s1 + $0x38] sm:$0xff] }
  0x96   : > { %v8244_v45 = vpack.c.bf16 %v505_v62, %v501_v51  ;;  %v8246_v41 = vpack.c.bf16 %v507_v39, %v503_v59  ;;  %v8250_v38 = vpack.c.bf16 %v690_v28, %v678_v27  ;;  %v8255_v61 = vsub.f32 %v441_v53, %v505_v62 }
  0x97   : > { %13125 = vst [vmem:[#allocation22_spill] sm:$0xff] %v8226_v44  ;;  %13126 = vst [vmem:[#allocation23_spill] sm:$0xff] %v8232_v48  ;;  %v13132_v44 = vand.u32 4294901760, %v8149_v60  ;;  %v8264_v27 = vsub.f32 %v485_v31, %v8220_v37  ;;  %v8266_v28 = vand.u32 4294901760, %v488_v8 }
  0x98   : > { %13127 = vst [vmem:[#allocation24_spill] sm:$0xff] %v8236_v49  ;;  %13129 = vst [vmem:[#allocation26_spill] sm:$0xff] %v8244_v45  ;;  %6728 = vmatprep.subr.bf16.mxu0 %v8244_v45  ;;  %v13138_v45 = vand.u32 4294901760, %v8142_v56 }
  0x99   : > { %13130 = vst [vmem:[#allocation27_spill] sm:$0xff] %v8246_v41  ;;  %13131 = vst [vmem:[#allocation28_spill] sm:$0xff] %v8255_v61  ;;  %v453_v58 = vpop.permute.xlu1 %452  ;;  %v451_v48 = vpop.permute.xlu0 %450  ;;  %v8261_v40 = vsub.f32 %v8149_v60, %v13132_v44  ;;  %6730 = vmatpush1.bf16.msra.mxu0 %v8246_v41 }
  0x9a   : > { %13133 = vst [vmem:[#allocation29_spill] sm:$0xff] %v8264_v27  ;;  %13134 = vst [vmem:[#allocation30_spill] sm:$0xff] %v8266_v28  ;;  %v460_v53 = vsel %vm12843_vm4, %v445_v14, %v453_v58  ;;  %v464_v62 = vsel %vm12843_vm4, %v453_v58, %v445_v14  ;;  %v459_v44 = vsel %vm12843_vm4, %v443_v50, %v451_v48  ;;  %6732 = vmatprep.subr.bf16.mxu0 %v8116_v34 }
  0x9b   : > { %v463_v31 = vsel %vm12843_vm4, %v451_v48, %v443_v50  ;;  %v8282_v42 = vsel %vm8181_vm5, %v460_v53, 0.0  ;;  %v8286_v46 = vsel %vm8185_vm6, %v464_v62, 0.0  ;;  %v8290_v13 = vsel %vm8181_vm5, %v459_v44, 0.0 }
  0x9c   : > { %v8294_v14 = vsel %vm8185_vm6, %v463_v31, 0.0  ;;  %v8297_v58 = vsub.f32 %v440_v52, %v507_v39  ;;  %v8299_v50 = vsub.f32 %v439_v55, %v501_v51  ;;  %v8301_v48 = vsub.f32 %v438_v54, %v503_v59 }
  0x9d   : > { %v491_v53 = vsel %vm12853_vm0, %v6706_v43, 0  ;;  %v529_v62 = vand.u32 4294901760, %v8286_v46  ;;  %v531_v44 = vand.u32 4294901760, %v8282_v42  ;;  %v525_v52 = vand.u32 4294901760, %v8294_v14  ;;  %v449_v55 = vpop.permute.xlu1 %448  ;;  %v447_v54 = vpop.permute.xlu0 %446  ;;  %6734 = vmatpush1.bf16.msra.mxu0 %v8118_v35 }
  0x9e   : > { %13135 = vst [vmem:[#allocation31_spill] sm:$0xff] %v8299_v50  ;;  %v527_v51 = vand.u32 4294901760, %v8290_v13  ;;  %v13136_v39 = vand.u32 4294901760, %v8165_v16  ;;  %v13137_v31 = vand.u32 4294901760, %v8168_v17  ;;  %6736 = vmatprep.subr.bf16.mxu0 %v8236_v49  ;;  %v629_v35 = vsub.f32 %v8142_v56, %v13138_v45 }
  0x9f   : > { %v8335_v43 = vsub.f32 %v488_v8, %v8266_v28  ;;  %v8337_v29 = vand.u32 4294901760, %v491_v53  ;;  %v13140_v49 = vand.u32 4294901760, %v8155_v63  ;;  %v13141_v45 = vand.u32 4294901760, %v8157_v9 }
  0xa0   : > { %v8316_v59 = vsub.f32 %v8165_v16, %v13136_v39  ;;  %v8322_v34 = vsub.f32 %v8168_v17, %v13137_v31  ;;  %v8332_v39 = vsub.f32 %v8144_v57, %v13139_v15  ;;  %v8351_v28 = vpack.c.bf16 %v529_v62, %v525_v52  ;;  %v13170_v57 = vld [vmem:[#allocation4_spill] sm:$0xff] }
  0xa1   : > { %v641_v12 = vsub.f32 %v8155_v63, %v13140_v49  ;;  %v647_v17 = vsub.f32 %v8157_v9, %v13141_v45  ;;  %v457_v8 = vpop.permute.xlu1 %456  ;;  %v455_v15 = vpop.permute.xlu0 %454  ;;  %v8353_v31 = vpack.c.bf16 %v531_v44, %v527_v51  ;;  %v652_v41 = vand.u32 4294901760, %v8299_v50  ;;  %6738 = vmatpush1.bf16.msra.mxu0 %v8238_v36 }
  0xa2   : > { %13142 = vst [vmem:[#allocation32_spill] sm:$0xff] %v8351_v28  ;;  %v664_v49 = vand.u32 4294901760, %v8255_v61  ;;  %v462_v37 = vsel %vm12843_vm4, %v449_v55, %v457_v8  ;;  %v466_v45 = vsel %vm12843_vm4, %v457_v8, %v449_v55  ;;  %v461_v16 = vsel %vm12843_vm4, %v447_v54, %v455_v15  ;;  %6740 = vmatprep.subr.bf16.mxu0 %v8351_v28 }
  0xa3   : > { %13143 = vst [vmem:[#allocation33_spill] sm:$0xff] %v8353_v31  ;;  %v465_v60 = vsel %vm12843_vm4, %v455_v15, %v447_v54  ;;  %v8368_v33 = vsel %vm8181_vm5, %v462_v37, 0.0  ;;  %v474_v32 = vsel %vm8185_vm6, %v466_v45, 0.0  ;;  %v471_v22 = vsel %vm8181_vm5, %v461_v16, 0.0 }
  0xa4   : > { %v472_v55 = vsel %vm8185_vm6, %v465_v60, 0.0  ;;  %v537_v8 = vand.u32 4294901760, %v474_v32  ;;  %v539_v54 = vand.u32 4294901760, %v8368_v33  ;;  %v535_v36 = vand.u32 4294901760, %v471_v22 }
  0xa5   : > { %v533_v15 = vand.u32 4294901760, %v472_v55  ;;  %v642_v37 = vand.u32 4294901760, %v641_v12  ;;  %v653_v45 = vsub.f32 %v8299_v50, %v652_v41  ;;  %v665_v16 = vsub.f32 %v8255_v61, %v664_v49  ;;  %v8389_v26 = vpop.permute.xlu1 %304  ;;  %v8391_v25 = vpop.permute.xlu0 %302  ;;  %6742 = vmatpush1.bf16.msra.mxu0 %v8353_v31  ;;  %v13171_v9 = vld [vmem:[#allocation31_spill] sm:$0xff] }
  0xa6   : > { %v13144_v60 = vand.u32 4294901760, %v8264_v27  ;;  %13145 = vst [vmem:[#allocation34_spill] sm:$0xff] %v8391_v25  ;;  %v630_v21 = vand.u32 4294901760, %v629_v35  ;;  %v648_v20 = vand.u32 4294901760, %v647_v17  ;;  %v13146_v18 = vand.u32 4294901760, %v8301_v48 }
  0xa7   : > { %v8398_v50 = vsub.f32 %v491_v53, %v8337_v29  ;;  %v8401_v61 = vsub.f32 %v8282_v42, %v531_v44  ;;  %v8408_v25 = vpack.c.bf16 %v539_v54, %v535_v36  ;;  %v8411_v35 = vsub.f32 %v8286_v46, %v529_v62 }
  0xa8   : > { %v8387_v28 = vsub.f32 %v8264_v27, %v13144_v60  ;;  %v659_v12 = vsub.f32 %v8301_v48, %v13146_v18  ;;  %v8404_v60 = vsub.f32 %v8290_v13, %v527_v51  ;;  %v8406_v27 = vpack.c.bf16 %v537_v8, %v533_v15 }
  0xa9   : > { %v8414_v17 = vsub.f32 %v8294_v14, %v525_v52  ;;  %v636_v18 = vand.u32 4294901760, %v8332_v39  ;;  %v13148_v53 = vand.u32 4294901760, %v8297_v58  ;;  %v6747_v13 = vpack.c.bf16 %v642_v37, %v630_v21  ;;  %v8426_v44 = vpop.permute.xlu1 %312  ;;  %v8428_v52 = vpop.permute.xlu0 %310 }
  0xaa   : > { %13147 = vst [vmem:[#allocation35_spill] sm:$0xff] %v8406_v27  ;;  %6744 = vmatprep.subr.bf16.mxu0 %v8406_v27  ;;  %v654_v46 = vand.u32 4294901760, %v653_v45  ;;  %v666_v62 = vand.u32 4294901760, %v665_v16  ;;  %v8430_v51 = vsub.f32 %v474_v32, %v537_v8  ;;  %v8432_v39 = vsub.f32 %v472_v55, %v533_v15 }
  0xab   : > { %v671_v42 = vsub.f32 %v8297_v58, %v13148_v53  ;;  %6746 = vmatpush1.bf16.msra.mxu0 %v8408_v25  ;;  %v6749_v53 = vpack.c.bf16 %v648_v20, %v636_v18  ;;  %v742_v27 = vand.u32 4294901760, %v8401_v61  ;;  %v730_v21 = vand.u32 4294901760, %v8404_v60 }
  0xac   : > { %6748 = vmatprep.subr.bf16.mxu0 %v6747_v13  ;;  %v660_v37 = vand.u32 4294901760, %v659_v12  ;;  %v8438_v45 = vpack.c.bf16 %v664_v49, %v652_v41  ;;  %v724_v14 = vand.u32 4294901760, %v8414_v17  ;;  %v736_v32 = vand.u32 4294901760, %v8411_v35 }
  0xad   : > { %v672_v16 = vand.u32 4294901760, %v671_v42  ;;  %v13150_v55 = vand.u32 4294901760, %v8301_v48  ;;  %v13151_v8 = vand.u32 4294901760, %v8297_v58  ;;  %v13153_v41 = vand.u32 4294901760, %v8173_v23 }
  0xae   : > { %13149 = vst [vmem:[#allocation36_spill] sm:$0xff] %v8438_v45  ;;  %v6751_v49 = vpack.c.bf16 %v666_v62, %v654_v46  ;;  %v597_v15 = vand.u32 4294901760, %v8387_v28  ;;  %v13154_v12 = vand.u32 4294901760, %v8241_v47  ;;  %v13155_v42 = vand.u32 4294901760, %v8335_v43 }
  0xaf   : > { %v8446_v20 = vpack.c.bf16 %v13151_v8, %v13150_v55  ;;  %587 = vmatmul.mubr.f32.vlgmr.msra.gmra.mrb[0].mxu0 %v13153_v41  ;;  %v8461_v55 = vpop.permute.xlu1 %308  ;;  %v8463_v8 = vpop.permute.xlu0 %306  ;;  %v8466_v31 = vsub.f32 %v8368_v33, %v539_v54  ;;  %v8468_v23 = vsub.f32 %v471_v22, %v535_v36  ;;  %v13156_v46 = vmov 0.0  }
  0xb0   : > { %v719_v18 = vsub.f32 %v8241_v47, %v13154_v12  ;;  %v607_v13 = vsub.f32 %v8335_v43, %v13155_v42  ;;  %6750 = vmatpush1.bf16.msra.mxu0 %v6749_v53  ;;  %592 = vmatprep.mubr.f32.mxu0 %v13156_v46  ;;  %v748_v28 = vand.u32 4294901760, %v8432_v39  ;;  %v760_v62 = vand.u32 4294901760, %v8430_v51 }
  0xb1   : > { %13152 = vst [vmem:[#allocation37_spill] sm:$0xff] %v8446_v20  ;;  %6752 = vmatprep.subr.bf16.mxu0 %v6751_v49  ;;  %v13157_v41 = vand.u32 4294901760, %v8178_v24  ;;  %v13158_v12 = vand.u32 4294901760, %v8192_v30  ;;  %v702_v20 = vand.u32 4294901760, %v8261_v40  ;;  %v714_v33 = vand.u32 4294901760, %v8316_v59 }
  0xb2   : > { %v13159_v22 = vand.u32 4294901760, %v8398_v50  ;;  %v6753_v54 = vpack.c.bf16 %v672_v16, %v660_v37  ;;  %v8482_v53 = vpack.c.bf16 %v736_v32, %v724_v14  ;;  %v8484_v45 = vpack.c.bf16 %v742_v27, %v730_v21 }
  0xb3   : > { %v6757_v42 = vpack.c.bf16 %v13158_v12, %v13157_v41  ;;  %598 = vmatmul.mubr.f32.gmra.mrb[2].mxu0 %v597_v15  ;;  %v708_v24 = vand.u32 4294901760, %v8322_v34  ;;  %v725_v30 = vsub.f32 %v8414_v17, %v724_v14  ;;  %v737_v40 = vsub.f32 %v8411_v35, %v736_v32  ;;  %v8493_v49 = vpop.permute.xlu1 %316  ;;  %v8495_v37 = vpop.permute.xlu0 %314 }
  0xb4   : > { %v618_v36 = vsub.f32 %v8398_v50, %v13159_v22  ;;  %v608_v59 = vand.u32 4294901760, %v607_v13  ;;  %v766_v16 = vand.u32 4294901760, %v8466_v31  ;;  %v754_v41 = vand.u32 4294901760, %v8468_v23  ;;  %6754 = vmatpush1.bf16.msra.mxu0 %v6753_v54  ;;  %603 = vmatprep.mubr.f32.mxu0 %v13156_v46 }
  0xb5   : > { %v720_v12 = vand.u32 4294901760, %v719_v18  ;;  %v8500_v15 = vpack.c.bf16 %v760_v62, %v748_v28  ;;  %6756 = vmatprep.subr.bf16.mxu0 %v8250_v38  ;;  %v6759_v34 = vpack.c.bf16 %v714_v33, %v702_v20  ;;  %v731_v14 = vsub.f32 %v8404_v60, %v730_v21 }
  0xb6   : > { %v743_v32 = vsub.f32 %v8401_v61, %v742_v27  ;;  %v619_v13 = vand.u32 4294901760, %v618_v36  ;;  %v726_v22 = vand.u32 4294901760, %v725_v30  ;;  %v738_v18 = vand.u32 4294901760, %v737_v40 }
  0xb7   : > { %13160 = vst [vmem:[#allocation38_spill] sm:$0xff] %v8500_v15  ;;  %609 = vmatmul.mubr.f32.gmra.mrb[4].mxu0 %v608_v59  ;;  %v749_v54 = vsub.f32 %v8432_v39, %v748_v28  ;;  %v761_v15 = vsub.f32 %v8430_v51, %v760_v62  ;;  %v8511_v38 = vpop.permute.xlu1 %339  ;;  %v8513_v20 = vpop.permute.xlu0 %337  ;;  %v6761_v27 = vpack.c.bf16 %v720_v12, %v708_v24  ;;  %v732_v33 = vand.u32 4294901760, %v731_v14 }
  0xb8   : > { %6758 = vmatpush1.bf16.msra.mxu0 %v6757_v42  ;;  %614 = vmatprep.mubr.f32.mxu0 %v13156_v46  ;;  %v8516_v21 = vpack.c.bf16 %v766_v16, %v754_v41  ;;  %v744_v36 = vand.u32 4294901760, %v743_v32  ;;  %v755_v30 = vsub.f32 %v8468_v23, %v754_v41  ;;  %v767_v40 = vsub.f32 %v8466_v31, %v766_v16 }
  0xb9   : > { %6760 = vmatprep.subr.bf16.mxu0 %v6759_v34  ;;  %v6763_v28 = vpack.c.bf16 %v738_v18, %v726_v22  ;;  %v750_v62 = vand.u32 4294901760, %v749_v54  ;;  %v762_v42 = vand.u32 4294901760, %v761_v15  ;;  %v12765_v34 = vshra.s32 %v8067_v10, 4 }
  0xba   : > { %v6765_v41 = vpack.c.bf16 %v744_v36, %v732_v33  ;;  %v756_v16 = vand.u32 4294901760, %v755_v30  ;;  %v768_v12 = vand.u32 4294901760, %v767_v40  ;;  %v13167_v56 = vmov 0  ;;  %v13177_v40 = vld [vmem:[#allocation34_spill] sm:$0xff] }
  0xbb   : > { %620 = vmatmul.mubr.f32.gmra.mrb[6].mxu0 %v619_v13  ;;  %v8524_v24 = vpop.permute.xlu1 %347  ;;  %v8526_v59 = vpop.permute.xlu0 %345  ;;  %v6767_v15 = vpack.c.bf16 %v762_v42, %v750_v62  ;;  %v12764_v13 = vshra.s32 %v8070_v11, 4  ;;  %vm8547_vm7 = vcmp.gt.s32.totalorder %v12765_v34, 0  ;;  %v324_v63 = vsel %vm12835_vm8, %v8426_v44, %v8389_v26 }
  0xbc   : > { %6762 = vmatpush1.bf16.msra.mxu0 %v6761_v27  ;;  %810 = vmatprep.mubr.f32.mxu0 %v13156_v46  ;;  %v6769_v22 = vpack.c.bf16 %v768_v12, %v756_v16  ;;  %v13162_v3 = vsel %vm8547_vm7, 4294967295, %v13161_v3  ;;  %vm8568_vm10 = vmand %vm8547_vm7, %vm8082_vm1  ;;  %v13172_v27 = vld [vmem:[#allocation28_spill] sm:$0xff]  ;;  %v13174_v30 = vmov 0  ;;  %v319_v4 = vsel %vm12835_vm8, %v13177_v40, %v8428_v52 }
  0xbd   : > { %6764 = vmatprep.subr.bf16.mxu0 %v6763_v28  ;;  %13163 = vst [vmem:[#allocation39_spill] sm:$0xff] %v13162_v3  ;;  %vm8558_vm9 = vcmp.gt.s32.totalorder %v12764_v13, 0  ;;  %v13168_v56 = vsel %vm8568_vm10, 4294967295, %v13167_v56  ;;  %v6775_v33 = vpack.c.bf16 %v13172_v27, %v13171_v9  ;;  %v323_v5 = vsel %vm12835_vm8, %v8428_v52, %v13177_v40  ;;  %v13179_v16 = vld [vmem:[#allocation8_spill] sm:$0xff]  ;;  %v13187_v27 = vld [vmem:[#allocation17_spill] sm:$0xff]  ;;  %vm8805_vm14 = vmand %vm8547_vm7, %vm8181_vm5 }
  0xbe   : > { %v13165_v0 = vsel %vm8558_vm9, 4294967295, %v13164_v0  ;;  %13169 = vst [vmem:[#allocation41_spill] sm:$0xff] %v13168_v56  ;;  %vm8587_vm11 = vmand %vm8558_vm9, %vm8086_vm2  ;;  %v326_v28 = vsel %vm12835_vm8, %v8493_v49, %v8461_v55  ;;  %v320_v52 = vsel %vm12835_vm8, %v8389_v26, %v8426_v44  ;;  %v13184_v44 = vld [vmem:[#allocation10_spill] sm:$0xff]  ;;  %v13188_v40 = vld [vmem:[#allocation21_spill] sm:$0xff] }
  0xbf   : > { %v8534_v14 = vpop.permute.xlu1 %343  ;;  %v8536_v32 = vpop.permute.xlu0 %341  ;;  %13166 = vst [vmem:[#allocation40_spill] sm:$0xff] %v13165_v0  ;;  %v13175_v30 = vsel %vm8587_vm11, 4294967295, %v13174_v30  ;;  %v8630_v9 = vsel %vm8587_vm11, %v319_v4, 0.0  ;;  %v8634_v26 = vsel %vm8568_vm10, %v326_v28, 0.0  ;;  %v322_v4 = vsel %vm12835_vm8, %v8461_v55, %v8493_v49  ;;  %v13193_v49 = vld [vmem:[#allocation18_spill] sm:$0xff]  ;;  %vm8833_vm15 = vmand %vm8558_vm9, %vm8185_vm6 }
  0xc0   : > { %6766 = vmatpush1.bf16.msra.mxu0 %v6765_v41  ;;  %13176 = vst [vmem:[#allocation4_spill] sm:$0xff] %v13175_v30  ;;  %v13178_v41 = vld [vmem:[#allocation7_spill] sm:$0xff]  ;;  %13182 = vst [vmem:[#allocation34_spill] sm:$0xff] %v8630_v9  ;;  %v8656_v6 = vsel %vm8587_vm11, %v320_v52, 0.0  ;;  %v321_v52 = vsel %vm12835_vm8, %v8463_v8, %v8495_v37  ;;  %v8673_v34 = vsel %vm8587_vm11, %v322_v4, 0.0  ;;  %v6785_v55 = vpack.c.bf16 %v8241_v47, %v13193_v49 }
  0xc1   : > { %6768 = vmatprep.subr.bf16.mxu0 %v6767_v15  ;;  %v6779_v12 = vpack.c.bf16 %v13179_v16, %v13178_v41  ;;  %v8616_v15 = vsel %vm8568_vm10, %v324_v63, 0.0  ;;  %13183 = vst [vmem:[#allocation7_spill] sm:$0xff] %v8634_v26  ;;  %v13186_v63 = vld [vmem:[#allocation14_spill] sm:$0xff]  ;;  %13189 = vst [vmem:[#allocation8_spill] sm:$0xff] %v8656_v6 }
  0xc2   : > { %13180 = vst [vmem:[#allocation31_spill] sm:$0xff] %v8616_v15 }
  0xc3   : > { %v8552_v18 = vpop.permute.xlu1 %351  ;;  %v8554_v54 = vpop.permute.xlu0 %349 }
  0xc4   : > { %6770 = vmatpush1.bf16.msra.mxu0 %v6769_v22  ;;  %v325_v22 = vsel %vm12835_vm8, %v8495_v37, %v8463_v8  ;;  %v6787_v8 = vpack.c.bf16 %v8411_v35, %v8414_v17  ;;  %v13194_v37 = vand.u32 4294901760, %v8616_v15  ;;  %v6789_v17 = vpack.c.bf16 %v8401_v61, %v8404_v60 }
  0xc5   : > { %6772 = vmatprep.subr.bf16.mxu0 %v6771_v1  ;;  %v6777_v1 = vpack.c.bf16 %v8297_v58, %v8301_v48  ;;  %v13185_v58 = vld [vmem:[#allocation11_spill] sm:$0xff]  ;;  %v8661_v13 = vsel %vm8568_vm10, %v325_v22, 0.0  ;;  %v13192_v22 = vld [vmem:[#allocation30_spill] sm:$0xff]  ;;  %v6793_v61 = vpack.c.bf16 %v8466_v31, %v8468_v23 }
  0xc6   : > { %v6781_v48 = vpack.c.bf16 %v13185_v58, %v13184_v44  ;;  %13190 = vst [vmem:[#allocation10_spill] sm:$0xff] %v8661_v13  ;;  %13191 = vst [vmem:[#allocation11_spill] sm:$0xff] %v8673_v34  ;;  %v8690_v4 = vsub.f32 %v8616_v15, %v13194_v37  ;;  %v13201_v37 = vand.u32 4294901760, %v8634_v26  ;;  %v13206_v19 = vand.u32 4294901760, %v8661_v13 }
  0xc7   : > { %812 = vmatmul.mubr.f32.vlgmr.msra.gmra.mrb[0].mxu0 %v13170_v57  ;;  %v8603_v62 = vpop.permute.xlu1 %372  ;;  %v8605_v42 = vpop.permute.xlu0 %370 }
  0xc8   : > { %6774 = vmatpush1.bf16.msra.mxu0 %v6773_v2  ;;  %817 = vmatprep.mubr.f32.mxu0 %v13156_v46  ;;  %v8626_v2 = vsel %vm8568_vm10, %v323_v5, 0.0  ;;  %13195 = vst [vmem:[#allocation14_spill] sm:$0xff] %v8690_v4  ;;  %v8710_v36 = vsub.f32 %v8634_v26, %v13201_v37  ;;  %v358_v37 = vsel %vm12842_vm12, %v8526_v59, %v8513_v20 }
  0xc9   : > { %6776 = vmatprep.subr.bf16.mxu0 %v6775_v33  ;;  %13181 = vst [vmem:[#allocation28_spill] sm:$0xff] %v8626_v2  ;;  %v6783_v33 = vpack.c.bf16 %v13187_v27, %v13186_v63  ;;  %v13199_v56 = vand.u32 4294901760, %v8626_v2  ;;  %v8740_v11 = vsub.f32 %v8661_v13, %v13206_v19 }
  0xca   : > { %13202 = vst [vmem:[#allocation18_spill] sm:$0xff] %v8710_v36 }
  0xcb   : > { %819 = vmatmul.mubr.f32.gmra.mrb[2].mxu0 %v13188_v40  ;;  %v8649_v5 = vpop.permute.xlu1 %380  ;;  %v8651_v28 = vpop.permute.xlu0 %378  ;;  %v8704_v35 = vsub.f32 %v8626_v2, %v13199_v56  ;;  %v354_v56 = vsel %vm12842_vm12, %v8513_v20, %v8526_v59  ;;  %13207 = vst [vmem:[#allocation44_spill] sm:$0xff] %v8740_v11  ;;  %v6791_v20 = vpack.c.bf16 %v8430_v51, %v8432_v39  ;;  %v13211_v39 = vand.u32 4294901760, %v8673_v34 }
  0xcc   : > { %6778 = vmatpush1.bf16.msra.mxu0 %v6777_v1  ;;  %824 = vmatprep.mubr.f32.mxu0 %v13156_v46  ;;  %v359_v1 = vsel %vm12842_vm12, %v8524_v24, %v8511_v38  ;;  %v8760_v31 = vsel %vm8558_vm9, %v354_v56, 0.0  ;;  %v357_v56 = vsel %vm12842_vm12, %v8534_v14, %v8552_v18 }
  0xcd   : > { %6780 = vmatprep.subr.bf16.mxu0 %v6779_v12  ;;  %v8694_v12 = vsel %vm8587_vm11, %v321_v52, 0.0  ;;  %13200 = vst [vmem:[#allocation30_spill] sm:$0xff] %v8704_v35  ;;  %13210 = vst [vmem:[#allocation47_spill] sm:$0xff] %v8760_v31  ;;  %v8766_v23 = vsub.f32 %v8673_v34, %v13211_v39  ;;  %v360_v39 = vsel %vm12842_vm12, %v8554_v54, %v8536_v32 }
  0xce   : > { %13196 = vst [vmem:[#allocation17_spill] sm:$0xff] %v8694_v12 }
  0xcf   : > { %826 = vmatmul.mubr.f32.gmra.mrb[4].mxu0 %v13192_v22  ;;  %v377_v52 = vpop.permute.xlu1 %376  ;;  %v375_v30 = vpop.permute.xlu0 %374  ;;  %13212 = vst [vmem:[#allocation48_spill] sm:$0xff] %v8766_v23 }
  0xd0   : > { %6782 = vmatpush1.bf16.msra.mxu0 %v6781_v48  ;;  %831 = vmatprep.mubr.f32.mxu0 %v13156_v46  ;;  %v13197_v48 = vand.u32 4294901760, %v8630_v9 }
  0xd1   : > { %6784 = vmatprep.subr.bf16.mxu0 %v6783_v33  ;;  %v355_v33 = vsel %vm12842_vm12, %v8511_v38, %v8524_v24  ;;  %v13204_v38 = vand.u32 4294901760, %v8656_v6 }
  0xd2   : > { %v8699_v7 = vsub.f32 %v8630_v9, %v13197_v48  ;;  %v8718_v48 = vsel %vm8547_vm7, %v359_v1, 0.0  ;;  %v12773_v1 = vand.u32 4294901760, %v8694_v12  ;;  %v8751_v59 = vsel %vm8558_vm9, %v355_v33, 0.0 }
  0xd3   : > { %13203 = vst [vmem:[#allocation42_spill] sm:$0xff] %v8718_v48  ;;  %833 = vmatmul.mubr.f32.gmra.mrb[6].mxu0 %v8337_v29  ;;  %v8734_v24 = vsub.f32 %v8656_v6, %v13204_v38  ;;  %13208 = vst [vmem:[#allocation45_spill] sm:$0xff] %v8751_v59  ;;  %v385_v60 = vpop.permute.xlu1 %384  ;;  %v383_v51 = vpop.permute.xlu0 %382  ;;  %v13214_v38 = vand.u32 4294901760, %v8718_v48  ;;  %v388_v33 = vsel %vm12837_vm13, %v8603_v62, %v8649_v5  ;;  %v13279_v9 = vand.u32 4294901760, %v8710_v36 }
  0xd4   : > { %13198 = vst [vmem:[#allocation21_spill] sm:$0xff] %v8699_v7  ;;  %6786 = vmatpush1.bf16.msra.mxu0 %v6785_v55  ;;  %951 = vmatprep.mubr.f32.mxu0 %v13156_v46  ;;  %v8756_v55 = vsel %vm8547_vm7, %v358_v37, 0.0  ;;  %v8773_v37 = vsub.f32 %v8694_v12, %v12773_v1  ;;  %v361_v1 = vsel %vm12842_vm12, %v8552_v18, %v8534_v14  ;;  %v13217_v14 = vmov 0  ;;  %v13268_v12 = vld [vmem:[#allocation24_spill] sm:$0xff] }
  0xd5   : > { %13205 = vst [vmem:[#allocation43_spill] sm:$0xff] %v8734_v24  ;;  %6788 = vmatprep.subr.bf16.mxu0 %v6787_v8  ;;  %13209 = vst [vmem:[#allocation46_spill] sm:$0xff] %v8756_v55  ;;  %v8791_v26 = vsub.f32 %v8718_v48, %v13214_v38  ;;  %v13218_v14 = vsel %vm8805_vm14, 4294967295, %v13217_v14  ;;  %v392_v18 = vsel %vm12837_vm13, %v8649_v5, %v8603_v62  ;;  %v8827_v19 = vsel %vm8547_vm7, %v361_v1, 0.0 }
  0xd6   : > { %13213 = vst [vmem:[#allocation49_spill] sm:$0xff] %v8773_v37  ;;  %13219 = vst [vmem:[#allocation51_spill] sm:$0xff] %v13218_v14  ;;  %v393_v38 = vsel %vm12837_vm13, %v383_v51, %v375_v30  ;;  %v387_v48 = vsel %vm12837_vm13, %v8605_v42, %v8651_v28  ;;  %v389_v1 = vsel %vm12837_vm13, %v375_v30, %v383_v51  ;;  %v8849_v8 = vsel %vm8547_vm7, %v360_v39, 0.0  ;;  %v13238_v30 = vld [vmem:[#allocation16_spill] sm:$0xff] }
  0xd7   : > { %13215 = vst [vmem:[#allocation50_spill] sm:$0xff] %v8791_v26  ;;  %13221 = vst [vmem:[#allocation53_spill] sm:$0xff] %v8827_v19  ;;  %v8857_v62 = vsel %vm8805_vm14, %v392_v18, 0.0  ;;  %v390_v5 = vsel %vm12837_vm13, %v377_v52, %v385_v60  ;;  %v8873_v51 = vsel %vm8805_vm14, %v393_v38, 0.0  ;;  %v13236_v18 = vld [vmem:[#allocation9_spill] sm:$0xff]  ;;  %v13241_v38 = vld [vmem:[#allocation26_spill] sm:$0xff] }
  0xd8   : > { %6790 = vmatpush1.bf16.msra.mxu0 %v6789_v17  ;;  %v356_v17 = vsel %vm12842_vm12, %v8536_v32, %v8554_v54  ;;  %v391_v32 = vsel %vm12837_vm13, %v8651_v28, %v8605_v42  ;;  %v394_v54 = vsel %vm12837_vm13, %v385_v60, %v377_v52  ;;  %13226 = vst [vmem:[#allocation55_spill] sm:$0xff] %v8849_v8  ;;  %13228 = vst [vmem:[#allocation57_spill] sm:$0xff] %v8857_v62  ;;  %v13229_v42 = vld [vmem:[#allocation15_spill] sm:$0xff] }
  0xd9   : > { %6792 = vmatprep.subr.bf16.mxu0 %v6791_v20  ;;  %v8815_v20 = vsel %vm8558_vm9, %v357_v56, 0.0  ;;  %v13223_v56 = vmov 0  ;;  %v8853_v13 = vsel %vm8558_vm9, %v356_v17, 0.0  ;;  %v8865_v28 = vsel %vm8805_vm14, %v391_v32, 0.0  ;;  %13232 = vst [vmem:[#allocation59_spill] sm:$0xff] %v8873_v51 }
  0xda   : > { %13220 = vst [vmem:[#allocation52_spill] sm:$0xff] %v8815_v20  ;;  %v13224_v56 = vsel %vm8833_vm15, 4294967295, %v13223_v56  ;;  %13227 = vst [vmem:[#allocation56_spill] sm:$0xff] %v8853_v13  ;;  %v8878_v52 = vsel %vm8833_vm15, %v388_v33, 0.0  ;;  %v8882_v60 = vsel %vm8833_vm15, %v387_v48, 0.0  ;;  %v8886_v17 = vsel %vm8833_vm15, %v389_v1, 0.0 }
  0xdb   : > { %13225 = vst [vmem:[#allocation54_spill] sm:$0xff] %v13224_v56  ;;  %13230 = vst [vmem:[#allocation15_spill] sm:$0xff] %v8865_v28  ;;  %v8894_v33 = vsel %vm8833_vm15, %v390_v5, 0.0  ;;  %v13239_v48 = vand.u32 4294901760, %v8751_v59  ;;  %v13242_v5 = vand.u32 4294901760, %v8756_v55  ;;  %v13244_v39 = vand.u32 4294901760, %v8760_v31 }
  0xdc   : > { %6794 = vmatpush1.bf16.msra.mxu0 %v6793_v61  ;;  %v8869_v61 = vsel %vm8805_vm14, %v394_v54, 0.0  ;;  %13233 = vst [vmem:[#allocation60_spill] sm:$0xff] %v8878_v52  ;;  %13234 = vst [vmem:[#allocation61_spill] sm:$0xff] %v8882_v60  ;;  %v13246_v54 = vand.u32 4294901760, %v8827_v19  ;;  %v13249_v56 = vand.u32 4294901760, %v8815_v20  ;;  %v13251_v0 = vand.u32 4294901760, %v8853_v13 }
  0xdd   : > { %6796 = vmatprep.subr.bf16.mxu0 %v13229_v42  ;;  %13231 = vst [vmem:[#allocation58_spill] sm:$0xff] %v8869_v61  ;;  %13235 = vst [vmem:[#allocation62_spill] sm:$0xff] %v8886_v17  ;;  %v8901_v1 = vsub.f32 %v8751_v59, %v13239_v48  ;;  %v8910_v3 = vsub.f32 %v8756_v55, %v13242_v5  ;;  %v8919_v32 = vsub.f32 %v8760_v31, %v13244_v39  ;;  %v13248_v55 = vld [vmem:[#allocation29_spill] sm:$0xff] }
  0xde   : > { %13237 = vst [vmem:[#allocation9_spill] sm:$0xff] %v8894_v33  ;;  %v8924_v10 = vsub.f32 %v8827_v19, %v13246_v54  ;;  %v8931_v48 = vsub.f32 %v8815_v20, %v13249_v56  ;;  %v8936_v14 = vsub.f32 %v8853_v13, %v13251_v0  ;;  %v13253_v39 = vand.u32 4294901760, %v8849_v8  ;;  %v13256_v19 = vld [vmem:[#allocation27_spill] sm:$0xff] }
  0xdf   : > { %954 = vmatmul.mubr.f32.vlgmr.msra.gmra.mrb[0].mxu0 %v13236_v18  ;;  %13240 = vst [vmem:[#allocation16_spill] sm:$0xff] %v8901_v1  ;;  %13243 = vst [vmem:[#allocation26_spill] sm:$0xff] %v8910_v3  ;;  %v13255_v54 = vand.u32 4294901760, %v8857_v62  ;;  %v13257_v56 = vand.u32 4294901760, %v8865_v28  ;;  %v13258_v0 = vand.u32 4294901760, %v8869_v61  ;;  %v13261_v34 = vand.u32 4294901760, %v8878_v52 }
  0xe0   : > { %6798 = vmatpush1.bf16.msra.mxu0 %v13238_v30  ;;  %959 = vmatprep.mubr.f32.mxu0 %v13156_v46  ;;  %13245 = vst [vmem:[#allocation63_spill] sm:$0xff] %v8919_v32  ;;  %13247 = vst [vmem:[#allocation64_spill] sm:$0xff] %v8924_v10  ;;  %v8941_v59 = vsub.f32 %v8849_v8, %v13253_v39  ;;  %v13259_v39 = vand.u32 4294901760, %v8873_v51  ;;  %v13270_v15 = vand.u32 4294901760, %v8734_v24 }
  0xe1   : > { %6800 = vmatprep.subr.bf16.mxu0 %v13241_v38  ;;  %13250 = vst [vmem:[#allocation29_spill] sm:$0xff] %v8931_v48  ;;  %13252 = vst [vmem:[#allocation65_spill] sm:$0xff] %v8936_v14  ;;  %v8946_v5 = vsub.f32 %v8857_v62, %v13255_v54  ;;  %v8953_v20 = vsub.f32 %v8865_v28, %v13257_v56  ;;  %v8958_v13 = vsub.f32 %v8869_v61, %v13258_v0  ;;  %v13260_v62 = vld [vmem:[#allocation12_spill] sm:$0xff]  ;;  %v13267_v54 = vld [vmem:[#allocation13_spill] sm:$0xff] }
  0xe2   : > { %13254 = vst [vmem:[#allocation66_spill] sm:$0xff] %v8941_v59  ;;  %v8963_v8 = vsub.f32 %v8873_v51, %v13259_v39  ;;  %v8971_v56 = vsub.f32 %v8878_v52, %v13261_v34  ;;  %v13263_v28 = vand.u32 4294901760, %v8882_v60  ;;  %v13265_v61 = vand.u32 4294901760, %v8886_v17 }
  0xe3   : > { %962 = vmatmul.mubr.f32.gmra.mrb[2].mxu0 %v13248_v55  ;;  %v13266_v51 = vand.u32 4294901760, %v8894_v33  ;;  %v13272_v52 = vand.u32 4294901760, %v8704_v35  ;;  %v13282_v34 = vand.u32 4294901760, %v8901_v1 }
  0xe4   : > { %6802 = vmatpush1.bf16.msra.mxu0 %v13256_v19  ;;  %967 = vmatprep.mubr.f32.mxu0 %v13156_v46  ;;  %13262 = vst [vmem:[#allocation27_spill] sm:$0xff] %v8971_v56  ;;  %v8976_v0 = vsub.f32 %v8882_v60, %v13263_v28  ;;  %v8981_v39 = vsub.f32 %v8886_v17, %v13265_v61  ;;  %v13269_v61 = vand.u32 4294901760, %v8699_v7  ;;  %v13275_v60 = vand.u32 4294901760, %v8773_v37 }
  0xe5   : > { %6804 = vmatprep.subr.bf16.mxu0 %v13260_v62  ;;  %v8987_v31 = vsub.f32 %v8894_v33, %v13266_v51  ;;  %v13273_v51 = vand.u32 4294901760, %v8690_v4  ;;  %v13276_v28 = vand.u32 4294901760, %v8766_v23  ;;  %v13278_v17 = vand.u32 4294901760, %v8740_v11 }
  0xe6   : > { %13264 = vst [vmem:[#allocation12_spill] sm:$0xff] %v8976_v0  ;;  %v9010_v2 = vpack.c.bf16 %v13270_v15, %v13269_v61  ;;  %v13281_v61 = vand.u32 4294901760, %v8919_v32 }
  0xe7   : > { %970 = vmatmul.mubr.f32.gmra.mrb[4].mxu0 %v8335_v43  ;;  %v9017_v33 = vpack.c.bf16 %v13273_v51, %v13272_v52  ;;  %v9023_v6 = vpack.c.bf16 %v13276_v28, %v13275_v60  ;;  %v9029_v15 = vpack.c.bf16 %v13279_v9, %v13278_v17  ;;  %v13284_v51 = vand.u32 4294901760, %v8910_v3 }
  0xe8   : > { %6806 = vmatpush1.bf16.msra.mxu0 %v13267_v54  ;;  %975 = vmatprep.mubr.f32.mxu0 %v13156_v46  ;;  %13271 = vst [vmem:[#allocation13_spill] sm:$0xff] %v9010_v2  ;;  %v9036_v52 = vpack.c.bf16 %v13282_v34, %v13281_v61  ;;  %v13287_v28 = vand.u32 4294901760, %v8936_v14  ;;  %v13290_v17 = vand.u32 4294901760, %v8941_v59  ;;  %v13293_v34 = vld [vmem:[#allocation25_spill] sm:$0xff]  ;;  %v13294_v61 = vand.u32 4294901760, %v8976_v0 }
  0xe9   : > { %6808 = vmatprep.subr.bf16.mxu0 %v13268_v12  ;;  %13274 = vst [vmem:[#allocation24_spill] sm:$0xff] %v9017_v33  ;;  %13277 = vst [vmem:[#allocation67_spill] sm:$0xff] %v9023_v6  ;;  %v13285_v33 = vand.u32 4294901760, %v8791_v26  ;;  %v13288_v6 = vand.u32 4294901760, %v8931_v48 }
  0xea   : > { %13280 = vst [vmem:[#allocation68_spill] sm:$0xff] %v9029_v15  ;;  %13283 = vst [vmem:[#allocation69_spill] sm:$0xff] %v9036_v52  ;;  %v13291_v15 = vand.u32 4294901760, %v8924_v10  ;;  %v13304_v52 = vand.u32 4294901760, %v8963_v8 }
  0xeb   : > { %978 = vmatmul.mubr.f32.gmra.mrb[6].mxu0 %v8398_v50  ;;  %v9042_v60 = vpack.c.bf16 %v13285_v33, %v13284_v51  ;;  %v9048_v9 = vpack.c.bf16 %v13288_v6, %v13287_v28  ;;  %v13295_v33 = vand.u32 4294901760, %v8971_v56  ;;  %v13298_v6 = vand.u32 4294901760, %v8946_v5 }
  0xec   : > { %v9054_v2 = vpack.c.bf16 %v13291_v15, %v13290_v17  ;;  %6810 = vmatpush1.bf16.msra.mxu0 %v13293_v34  ;;  %1072 = vmatprep.mubr.f32.mxu0 %v13156_v46  ;;  %v13301_v15 = vand.u32 4294901760, %v8987_v31  ;;  %v13305_v56 = vand.u32 4294901760, %v8958_v13 }
  0xed   : > { %13286 = vst [vmem:[#allocation70_spill] sm:$0xff] %v9042_v60  ;;  %13289 = vst [vmem:[#allocation71_spill] sm:$0xff] %v9048_v9  ;;  %v9062_v51 = vpack.c.bf16 %v13295_v33, %v13294_v61  ;;  %v13297_v60 = vand.u32 4294901760, %v8953_v20  ;;  %v13300_v9 = vand.u32 4294901760, %v8981_v39  ;;  %v13307_v33 = vld [vmem:[#allocation33_spill] sm:$0xff] }
  0xee   : > { %13292 = vst [vmem:[#allocation72_spill] sm:$0xff] %v9054_v2  ;;  %v13303_v2 = vld [vmem:[#allocation32_spill] sm:$0xff]  ;;  %v9081_v61 = vpack.c.bf16 %v13305_v56, %v13304_v52  ;;  %v13313_v56 = vand.u32 4294901760, %v13178_v41  ;;  %v13314_v52 = vand.u32 4294901760, %v13179_v16  ;;  %v13320_v41 = vand.u32 4294901760, %v13187_v27 }
  0xef   : > { %13296 = vst [vmem:[#allocation25_spill] sm:$0xff] %v9062_v51  ;;  %v9068_v28 = vpack.c.bf16 %v13298_v6, %v13297_v60  ;;  %v9074_v17 = vpack.c.bf16 %v13301_v15, %v13300_v9  ;;  %6812 = vmatprep.subr.bf16.mxu0 %v13303_v2  ;;  %v13308_v51 = vld [vmem:[#allocation35_spill] sm:$0xff]  ;;  %v13309_v60 = vld [vmem:[#allocation22_spill] sm:$0xff]  ;;  %v13310_v6 = vand.u32 4294901760, %v13236_v18  ;;  %v13312_v15 = vld [vmem:[#allocation36_spill] sm:$0xff]  ;;  %v13318_v18 = vand.u32 4294901760, %v13185_v58 }
  0xf0   : > { %13306 = vst [vmem:[#allocation32_spill] sm:$0xff] %v9081_v61  ;;  %6814 = vmatpush1.bf16.msra.mxu0 %v13307_v33  ;;  %v13311_v9 = vld [vmem:[#allocation23_spill] sm:$0xff]  ;;  %v6827_v61 = vpack.c.bf16 %v13314_v52, %v13313_v56  ;;  %v13321_v16 = vand.u32 4294901760, %v8335_v43  ;;  %v13324_v58 = vand.u32 4294901760, %v8398_v50  ;;  %v13325_v43 = vld [vmem:[#allocation38_spill] sm:$0xff]  ;;  %v9129_v50 = vpop.permute.xlu1 %2303  ;;  %v13331_v56 = vand.u32 4294901760, %v8690_v4 }
  0xf1   : > { %13299 = vst [vmem:[#allocation73_spill] sm:$0xff] %v9068_v28  ;;  %13302 = vst [vmem:[#allocation74_spill] sm:$0xff] %v9074_v17  ;;  %6816 = vmatprep.subr.bf16.mxu0 %v13308_v51  ;;  %v13315_v17 = vand.u32 4294901760, %v13248_v55  ;;  %v13316_v28 = vld [vmem:[#allocation37_spill] sm:$0xff]  ;;  %v13322_v55 = vand.u32 4294901760, %v13193_v49 }
  0xf2   : > { %v1557_v52 = vsub.f32 %v8690_v4, %v13331_v56 }
  0xf4   : > { %6818 = vmatpush1.bf16.msra.mxu0 %v8408_v25 }
  0xf5   : > { %6820 = vmatprep.subr.bf16.mxu0 %v13309_v60  ;;  %v13317_v60 = vand.u32 4294901760, %v13184_v44 }
  0xf7   : > { %1076 = vmatmul.mubr.f32.vlgmr.msra.gmra.mrb[0].mxu0 %v13310_v6  ;;  %v6829_v6 = vpack.c.bf16 %v13318_v18, %v13317_v60  ;;  %v13332_v60 = vand.u32 4294901760, %v8773_v37 }
  0xf8   : > { %6822 = vmatpush1.bf16.msra.mxu0 %v13311_v9  ;;  %1081 = vmatprep.mubr.f32.mxu0 %v13156_v46  ;;  %v13319_v9 = vand.u32 4294901760, %v13186_v63 }
  0xf9   : > { %6824 = vmatprep.subr.bf16.mxu0 %v13312_v15  ;;  %v1563_v18 = vsub.f32 %v8773_v37, %v13332_v60  ;;  %v13344_v60 = vand.u32 4294901760, %v8740_v11  ;;  %v13356_v37 = vld [vmem:[#allocation47_spill] sm:$0xff] }
  0xfa   : > { %v6831_v15 = vpack.c.bf16 %v13320_v41, %v13319_v9 }
  0xfb   : > { %1085 = vmatmul.mubr.f32.gmra.mrb[2].mxu0 %v13315_v17 }
  0xfc   : > { %6826 = vmatpush1.bf16.msra.mxu0 %v13316_v28  ;;  %1090 = vmatprep.mubr.f32.mxu0 %v13156_v46  ;;  %v13323_v28 = vand.u32 4294901760, %v8241_v47  ;;  %v405_v47 = vld [vmem:[%s12691_s1] sm:$0xff] }
  0xfd   : > { %6828 = vmatprep.subr.bf16.mxu0 %v6827_v61 }
  0xfe   : > { %v6833_v44 = vpack.c.bf16 %v13323_v28, %v13322_v55  ;;  %v13336_v55 = vld [vmem:[#allocation8_spill] sm:$0xff] }
  0xff   : > { %1094 = vmatmul.mubr.f32.gmra.mrb[4].mxu0 %v13321_v16  ;;  %v13337_v28 = vand.u32 4294901760, %v13336_v55  ;;  %v13346_v55 = vld [vmem:[#allocation17_spill] sm:$0xff] }
 0x100   : > { %6830 = vmatpush1.bf16.msra.mxu0 %v6829_v6  ;;  %1099 = vmatprep.mubr.f32.mxu0 %v13156_v46  ;;  %v13333_v6 = vand.u32 4294901760, %v8766_v23 }
 0x101   : > { %6832 = vmatprep.subr.bf16.mxu0 %v6831_v15 }
 0x102   : > { %v1575_v9 = vsub.f32 %v8766_v23, %v13333_v6  ;;  %v13345_v6 = vand.u32 4294901760, %v8710_v36 }
 0x103   : > { %1103 = vmatmul.mubr.f32.gmra.mrb[6].mxu0 %v13324_v58  ;;  %v13339_v58 = vld [vmem:[#allocation28_spill] sm:$0xff] }
 0x104   : > { %6834 = vmatpush1.bf16.msra.mxu0 %v6833_v44  ;;  %1245 = vmatprep.mubr.f32.mxu0 %v13156_v46 }
 0x105   : > { %6836 = vmatprep.subr.bf16.mxu0 %v8482_v53  ;;  %v9131_v53 = vpop.permute.xlu0 %2301 }
 0x108   : > { %6838 = vmatpush1.bf16.msra.mxu0 %v8484_v45  ;;  %v1392_v45 = vsel %vm12853_vm0, %v405_v47, 0  ;;  %v13341_v47 = vld [vmem:[#allocation31_spill] sm:$0xff] }
 0x109   : > { %6840 = vmatprep.subr.bf16.mxu0 %v13325_v43  ;;  %v9140_v63 = vpop.permute.xlu0 %2309  ;;  %v9143_v27 = vand.u32 4294901760, %v1392_v45  ;;  %v13340_v43 = vand.u32 4294901760, %v13339_v58  ;;  %v13348_v58 = vld [vmem:[#allocation11_spill] sm:$0xff] }
 0x10b   : > { %13326 = vst [vmem:[#allocation33_spill] sm:$0xff] %v9143_v27  ;;  %v9160_v17 = vsub.f32 %v1392_v45, %v9143_v27  ;;  %v13342_v45 = vand.u32 4294901760, %v13341_v47  ;;  %v13349_v47 = vand.u32 4294901760, %v13348_v58  ;;  %v1558_v58 = vand.u32 4294901760, %v1557_v52  ;;  %v13373_v52 = vld [vmem:[#allocation53_spill] sm:$0xff] }
 0x10c   : > { %6842 = vmatpush1.bf16.msra.mxu0 %v8516_v21  ;;  %v9138_v21 = vpop.permute.xlu1 %2311 }
 0x10d   : > { %6844 = vmatprep.subr.bf16.mxu0 %v13229_v42  ;;  %v9150_v42 = vpop.permute.xlu0 %2305  ;;  %13329 = vst [vmem:[#allocation35_spill] sm:$0xff] %v9160_v17 }
 0x10f   : > { %1247 = vmatmul.mubr.f32.vlgmr.msra.gmra.mrb[0].mxu0 %v13170_v57 }
 0x110   : > { %6846 = vmatpush1.bf16.msra.mxu0 %v13238_v30  ;;  %1252 = vmatprep.mubr.f32.mxu0 %v13156_v46  ;;  %v9148_v49 = vpop.permute.xlu1 %2307 }
 0x111   : > { %6848 = vmatprep.subr.bf16.mxu0 %v13241_v38  ;;  %v9182_v15 = vpop.permute.xlu0 %2313 }
 0x113   : > { %1254 = vmatmul.mubr.f32.gmra.mrb[2].mxu0 %v13188_v40 }
 0x114   : > { %6850 = vmatpush1.bf16.msra.mxu0 %v13256_v19  ;;  %1259 = vmatprep.mubr.f32.mxu0 %v13156_v46  ;;  %v13327_v19 = vand.u32 4294901760, %v8699_v7  ;;  %v9180_v41 = vpop.permute.xlu1 %2315 }
 0x115   : > { %6852 = vmatprep.subr.bf16.mxu0 %v13260_v62  ;;  %v13328_v62 = vand.u32 4294901760, %v8734_v24 }
 0x116   : > { %v1539_v30 = vsub.f32 %v8699_v7, %v13327_v19  ;;  %v9195_v19 = vpack.c.bf16 %v13342_v45, %v13340_v43  ;;  %v13353_v45 = vld [vmem:[#allocation7_spill] sm:$0xff]  ;;  %v13405_v7 = vmov 0 }
 0x117   : > { %1261 = vmatmul.mubr.f32.gmra.mrb[4].mxu0 %v13192_v22  ;;  %v1551_v38 = vsub.f32 %v8734_v24, %v13328_v62  ;;  %v13354_v56 = vand.u32 4294901760, %v13353_v45 }
 0x118   : > { %6854 = vmatpush1.bf16.msra.mxu0 %v13267_v54  ;;  %1266 = vmatprep.mubr.f32.mxu0 %v13156_v46  ;;  %v13330_v54 = vand.u32 4294901760, %v8704_v35  ;;  %13343 = vst [vmem:[#allocation23_spill] sm:$0xff] %v9195_v19  ;;  %v1540_v62 = vand.u32 4294901760, %v1539_v30  ;;  %v13351_v30 = vld [vmem:[#allocation10_spill] sm:$0xff] }
 0x119   : > { %6856 = vmatprep.subr.bf16.mxu0 %v13268_v12  ;;  %v406_v12 = vld [vmem:[%s12691_s1 + $0x8] sm:$0xff] }
 0x11a   : > { %v1545_v61 = vsub.f32 %v8704_v35, %v13330_v54  ;;  %v1552_v54 = vand.u32 4294901760, %v1551_v38  ;;  %v13352_v38 = vand.u32 4294901760, %v13351_v30  ;;  %v1576_v30 = vand.u32 4294901760, %v1575_v9 }
 0x11b   : > { %1268 = vmatmul.mubr.f32.gmra.mrb[6].mxu0 %v8337_v29 }
 0x11c   : > { %6858 = vmatpush1.bf16.msra.mxu0 %v13293_v34  ;;  %1362 = vmatprep.mubr.f32.mxu0 %v13156_v46  ;;  %v13334_v34 = vld [vmem:[#allocation34_spill] sm:$0xff]  ;;  %v9215_v23 = vpack.c.bf16 %v13354_v56, %v13352_v38  ;;  %v9233_v56 = vpop.permute.xlu1 %2338  ;;  %v13368_v38 = vld [vmem:[#allocation52_spill] sm:$0xff] }
 0x11d   : > { %6860 = vmatprep.subr.bf16.mxu0 %v13303_v2  ;;  %v13335_v16 = vand.u32 4294901760, %v13334_v34  ;;  %v1569_v2 = vsub.f32 %v8740_v11, %v13344_v60  ;;  %v1581_v34 = vsub.f32 %v8710_v36, %v13345_v6  ;;  %v13357_v60 = vand.u32 4294901760, %v13356_v37  ;;  %v13358_v11 = vld [vmem:[#allocation45_spill] sm:$0xff]  ;;  %v13361_v6 = vld [vmem:[#allocation46_spill] sm:$0xff]  ;;  %v407_v37 = vld [vmem:[%s12691_s1 + $0x10] sm:$0xff] }
 0x11e   : > { %13355 = vst [vmem:[#allocation37_spill] sm:$0xff] %v9215_v23  ;;  %v13359_v27 = vand.u32 4294901760, %v13358_v11  ;;  %v13363_v36 = vld [vmem:[#allocation42_spill] sm:$0xff]  ;;  %v9235_v11 = vpop.permute.xlu0 %2336  ;;  %v13369_v45 = vand.u32 4294901760, %v13368_v38 }
 0x11f   : > { %v9189_v44 = vpack.c.bf16 %v13337_v28, %v13335_v16  ;;  %v1395_v16 = vsel %vm12853_vm0, %v406_v12, 0  ;;  %v13347_v28 = vand.u32 4294901760, %v13346_v55  ;;  %v13362_v12 = vand.u32 4294901760, %v13361_v6 }
 0x120   : > { %v9221_v4 = vpack.c.bf16 %v13359_v27, %v13357_v60  ;;  %v13364_v55 = vand.u32 4294901760, %v13363_v36  ;;  %6862 = vmatpush1.bf16.msra.mxu0 %v13307_v33  ;;  %v13366_v27 = vld [vmem:[#allocation56_spill] sm:$0xff]  ;;  %v13371_v33 = vld [vmem:[#allocation55_spill] sm:$0xff]  ;;  %v9250_v6 = vpack.c.bf16 %v1552_v54, %v1540_v62  ;;  %v1582_v24 = vand.u32 4294901760, %v1581_v34 }
 0x121   : > { %13338 = vst [vmem:[#allocation22_spill] sm:$0xff] %v9189_v44  ;;  %v9209_v43 = vpack.c.bf16 %v13349_v47, %v13347_v28  ;;  %v1546_v28 = vand.u32 4294901760, %v1545_v61  ;;  %v1564_v47 = vand.u32 4294901760, %v1563_v18  ;;  %6864 = vmatprep.subr.bf16.mxu0 %v13308_v51  ;;  %v13367_v36 = vand.u32 4294901760, %v13366_v27 }
 0x122   : > { %13360 = vst [vmem:[#allocation38_spill] sm:$0xff] %v9221_v4  ;;  %v9227_v35 = vpack.c.bf16 %v13364_v55, %v13362_v12  ;;  %v13372_v61 = vand.u32 4294901760, %v13371_v33  ;;  %v13374_v18 = vand.u32 4294901760, %v13373_v52  ;;  %v9252_v12 = vand.u32 4294901760, %v1395_v16 }
 0x123   : > { %13350 = vst [vmem:[#allocation36_spill] sm:$0xff] %v9209_v43  ;;  %v9242_v60 = vpack.c.bf16 %v13369_v45, %v13367_v36  ;;  %v13377_v55 = vand.u32 4294901760, %v9160_v17  ;;  %v1570_v27 = vand.u32 4294901760, %v1569_v2  ;;  %v13378_v36 = vand.u32 4294901760, %v8919_v32  ;;  %v408_v45 = vld [vmem:[%s12691_s1 + $0x18] sm:$0xff] }
 0x124   : > { %13365 = vst [vmem:[#allocation34_spill] sm:$0xff] %v9227_v35  ;;  %v9248_v9 = vpack.c.bf16 %v13374_v18, %v13372_v61  ;;  %13376 = vst [vmem:[#allocation31_spill] sm:$0xff] %v9252_v12  ;;  %v13379_v62 = vand.u32 4294901760, %v8901_v1  ;;  %v13380_v33 = vand.u32 4294901760, %v8910_v3  ;;  %v13381_v52 = vand.u32 4294901760, %v8791_v26  ;;  %6866 = vmatpush1.bf16.msra.mxu0 %v8408_v25 }
 0x125   : > { %13370 = vst [vmem:[#allocation8_spill] sm:$0xff] %v9242_v60  ;;  %v9257_v51 = vsub.f32 %v9160_v17, %v13377_v55  ;;  %v1587_v38 = vsub.f32 %v8919_v32, %v13378_v36  ;;  %v1398_v34 = vsel %vm12853_vm0, %v407_v37, 0  ;;  %v9276_v18 = vpack.c.bf16 %v1558_v58, %v1546_v28  ;;  %6868 = vmatprep.subr.bf16.mxu0 %v9189_v44  ;;  %v13384_v37 = vld [vmem:[#allocation61_spill] sm:$0xff]  ;;  %v13386_v28 = vld [vmem:[#allocation60_spill] sm:$0xff] }
 0x126   : > { %13375 = vst [vmem:[#allocation28_spill] sm:$0xff] %v9248_v9  ;;  %v1599_v54 = vsub.f32 %v8901_v1, %v13379_v62  ;;  %v1593_v61 = vsub.f32 %v8910_v3, %v13380_v33  ;;  %v1605_v2 = vsub.f32 %v8791_v26, %v13381_v52  ;;  %v9278_v55 = vpack.c.bf16 %v1576_v30, %v1564_v47  ;;  %v9286_v3 = vpop.permute.xlu1 %2346  ;;  %v9288_v1 = vpop.permute.xlu0 %2344  ;;  %v13393_v26 = vld [vmem:[#allocation57_spill] sm:$0xff] }
 0x127   : > { %v13382_v36 = vand.u32 4294901760, %v8936_v14  ;;  %v13383_v17 = vand.u32 4294901760, %v8931_v48  ;;  %v13385_v25 = vand.u32 4294901760, %v13384_v37  ;;  %v13387_v58 = vand.u32 4294901760, %v13386_v28  ;;  %1364 = vmatmul.mubr.f32.vlgmr.msra.gmra.mrb[0].mxu0 %v13170_v57 }
 0x128   : > { %v9298_v30 = vsub.f32 %v1395_v16, %v9252_v12  ;;  %v13390_v52 = vand.u32 4294901760, %v8941_v59  ;;  %v13394_v32 = vand.u32 4294901760, %v13393_v26  ;;  %v9310_v37 = vpack.c.bf16 %v1582_v24, %v1570_v27  ;;  %6870 = vmatpush1.bf16.msra.mxu0 %v9195_v19  ;;  %1369 = vmatprep.mubr.f32.mxu0 %v13156_v46  ;;  %v13396_v26 = vld [vmem:[#allocation62_spill] sm:$0xff]  ;;  %v13398_v24 = vld [vmem:[#allocation9_spill] sm:$0xff] }
 0x129   : > { %v1611_v62 = vsub.f32 %v8936_v14, %v13382_v36  ;;  %v1623_v33 = vsub.f32 %v8931_v48, %v13383_v17  ;;  %v9295_v47 = vpack.c.bf16 %v13387_v58, %v13385_v25  ;;  %v1401_v17 = vsel %vm12853_vm0, %v408_v45, 0  ;;  %v13391_v48 = vld [vmem:[#allocation15_spill] sm:$0xff]  ;;  %6872 = vmatprep.subr.bf16.mxu0 %v9209_v43 }
 0x12a   : > { %13389 = vst [vmem:[#allocation11_spill] sm:$0xff] %v9298_v30  ;;  %v1617_v36 = vsub.f32 %v8941_v59, %v13390_v52  ;;  %v13392_v14 = vand.u32 4294901760, %v13391_v48  ;;  %v13395_v25 = vand.u32 4294901760, %v8924_v10  ;;  %v9315_v16 = vand.u32 4294901760, %v1398_v34  ;;  %v9328_v12 = vpop.permute.xlu1 %2342  ;;  %v9330_v57 = vpop.permute.xlu0 %2340 }
 0x12b   : > { %13388 = vst [vmem:[#allocation17_spill] sm:$0xff] %v9295_v47  ;;  %v1588_v58 = vand.u32 4294901760, %v1587_v38  ;;  %v1600_v52 = vand.u32 4294901760, %v1599_v54  ;;  %v1594_v59 = vand.u32 4294901760, %v1593_v61  ;;  %v1606_v45 = vand.u32 4294901760, %v1605_v2  ;;  %1371 = vmatmul.mubr.f32.gmra.mrb[2].mxu0 %v13188_v40  ;;  %v13410_v38 = vld [vmem:[#allocation58_spill] sm:$0xff] }
 0x12c   : > { %v9308_v44 = vpack.c.bf16 %v13394_v32, %v13392_v14  ;;  %v1629_v28 = vsub.f32 %v8924_v10, %v13395_v25  ;;  %v13397_v14 = vand.u32 4294901760, %v13396_v26  ;;  %v13399_v32 = vand.u32 4294901760, %v13398_v24  ;;  %v13401_v26 = vld [vmem:[#allocation27_spill] sm:$0xff]  ;;  %6874 = vmatpush1.bf16.msra.mxu0 %v9215_v23  ;;  %1376 = vmatprep.mubr.f32.mxu0 %v13156_v46 }
 0x12d   : > { %v1612_v27 = vand.u32 4294901760, %v1611_v62  ;;  %v1624_v25 = vand.u32 4294901760, %v1623_v33  ;;  %v9326_v10 = vand.u32 4294901760, %v1401_v17  ;;  %v1618_v54 = vand.u32 4294901760, %v1617_v36  ;;  %v13408_v36 = vld [vmem:[#allocation59_spill] sm:$0xff]  ;;  %6876 = vmatprep.subr.bf16.mxu0 %v9221_v4 }
 0x12e   : > { %v9324_v48 = vpack.c.bf16 %v13399_v32, %v13397_v14  ;;  %v13400_v61 = vand.u32 4294901760, %v8976_v0  ;;  %v13402_v14 = vand.u32 4294901760, %v13401_v26  ;;  %v1630_v33 = vand.u32 4294901760, %v1629_v28  ;;  %v13403_v32 = vld [vmem:[#allocation2_spill] sm:$0xff] }
 0x12f   : > { %v9341_v24 = vsub.f32 %v1398_v34, %v9315_v16  ;;  %v13404_v19 = vshra.s32 %v13403_v32, 4  ;;  %vm12866_vm13 = vcmp.lt.s32.totalorder %v13403_v32, 113  ;;  %v13411_v43 = vand.u32 4294901760, %v13410_v38  ;;  %1378 = vmatmul.mubr.f32.gmra.mrb[4].mxu0 %v13192_v22 }
 0x130   : > { %v1635_v2 = vsub.f32 %v8976_v0, %v13400_v61  ;;  %v1647_v62 = vsub.f32 %v13401_v26, %v13402_v14  ;;  %v13409_v61 = vand.u32 4294901760, %v13408_v36  ;;  %v9357_v28 = vpack.c.bf16 %v1600_v52, %v1588_v58  ;;  %v13412_v14 = vld [vmem:[#allocation3_spill] sm:$0xff]  ;;  %6878 = vmatpush1.bf16.msra.mxu0 %v9227_v35  ;;  %1383 = vmatprep.mubr.f32.mxu0 %v13156_v46 }
 0x131   : > { %vm9345_vm8 = vcmp.lt.s32.totalorder %v13404_v19, 15  ;;  %v9359_v34 = vpack.c.bf16 %v1606_v45, %v1594_v59  ;;  %v13413_v26 = vshra.s32 %v13412_v14, 4  ;;  %v13414_v19 = vmov 0  ;;  %v9379_v45 = vpop.permute.xlu1 %2350  ;;  %6880 = vmatprep.subr.bf16.mxu0 %v9242_v60 }
 0x132   : > { %v13406_v7 = vsel %vm9345_vm8, 4294967295, %v13405_v7  ;;  %v9355_v0 = vpack.c.bf16 %v13411_v43, %v13409_v61  ;;  %v13417_v38 = vand.u32 4294901760, %v8953_v20  ;;  %v13418_v58 = vand.u32 4294901760, %v8946_v5  ;;  %vm9391_vm4 = vmand %vm9345_vm8, %vm8082_vm1 }
 0x133   : > { %13407 = vst [vmem:[#allocation10_spill] sm:$0xff] %v13406_v7  ;;  %vm9363_vm12 = vcmp.lt.s32.totalorder %v13413_v26, 15  ;;  %v9377_v52 = vsub.f32 %v1401_v17, %v9326_v10  ;;  %v13420_v26 = vand.u32 4294901760, %v9298_v30  ;;  %v1636_v61 = vand.u32 4294901760, %v1635_v2  ;;  %1385 = vmatmul.mubr.f32.gmra.mrb[6].mxu0 %v8337_v29 }
 0x134   : > { %v13415_v19 = vsel %vm9363_vm12, 4294967295, %v13414_v19  ;;  %v1641_v43 = vsub.f32 %v8953_v20, %v13417_v38  ;;  %v1653_v59 = vsub.f32 %v8946_v5, %v13418_v58  ;;  %v1648_v14 = vand.u32 4294901760, %v1647_v62  ;;  %v9399_v58 = vpop.permute.xlu0 %2348  ;;  %vm9410_vm3 = vmand %vm9363_vm12, %vm8086_vm2  ;;  %6882 = vmatpush1.bf16.msra.mxu0 %v9248_v9  ;;  %1491 = vmatprep.mubr.f32.mxu0 %v13156_v46 }
 0x135   : > { %13416 = vst [vmem:[#allocation7_spill] sm:$0xff] %v13415_v19  ;;  %13419 = vst [vmem:[#allocation47_spill] sm:$0xff] %v9377_v52  ;;  %v9385_v36 = vsub.f32 %v9298_v30, %v13420_v26  ;;  %v13422_v38 = vmov 0  ;;  %v2319_v17 = vsel %vm12866_vm13, %v9129_v50, %v9138_v21  ;;  %v9401_v4 = vpack.c.bf16 %v1624_v25, %v1612_v27  ;;  %6884 = vmatprep.subr.bf16.mxu0 %v9295_v47 }
 0x136   : > { %v13423_v38 = vsel %vm9391_vm4, 4294967295, %v13422_v38  ;;  %v9403_v26 = vpack.c.bf16 %v1630_v33, %v1618_v54  ;;  %v13426_v40 = vmov 0  ;;  %v2323_v23 = vsel %vm12866_vm13, %v9138_v21, %v9129_v50 }
 0x137   : > { %13424 = vst [vmem:[#allocation45_spill] sm:$0xff] %v13423_v38  ;;  %v13427_v40 = vsel %vm9410_vm3, 4294967295, %v13426_v40  ;;  %v13429_v27 = vand.u32 4294901760, %v8981_v39  ;;  %v13430_v54 = vand.u32 4294901760, %v8987_v31  ;;  %v2318_v2 = vsel %vm12866_vm13, %v9131_v53, %v9140_v63 }
 0x138   : > { %13428 = vst [vmem:[#allocation46_spill] sm:$0xff] %v13427_v40  ;;  %v2322_v50 = vsel %vm12866_vm13, %v9140_v63, %v9131_v53  ;;  %v1642_v22 = vand.u32 4294901760, %v1641_v43  ;;  %v1654_v21 = vand.u32 4294901760, %v1653_v59  ;;  %v9442_v30 = vpack.c.bf16 %v1648_v14, %v1636_v61  ;;  %6886 = vmatpush1.bf16.msra.mxu0 %v9308_v44 }
 0x139   : > { %v1659_v25 = vsub.f32 %v8981_v39, %v13429_v27  ;;  %v1671_v33 = vsub.f32 %v8987_v31, %v13430_v54  ;;  %v9438_v54 = vsel %vm9391_vm4, %v2319_v17, 0.0  ;;  %v13432_v53 = vand.u32 4294901760, %v8963_v8  ;;  %6888 = vmatprep.subr.bf16.mxu0 %v9324_v48 }
 0x13a   : > { %13431 = vst [vmem:[#allocation42_spill] sm:$0xff] %v9438_v54  ;;  %v9451_v43 = vsel %vm9410_vm3, %v2323_v23, 0.0  ;;  %v13433_v59 = vand.u32 4294901760, %v9341_v24  ;;  %v13434_v27 = vand.u32 4294901760, %v8958_v13  ;;  %v9465_v61 = vsel %vm9391_vm4, %v2318_v2, 0.0  ;;  %v9471_v23 = vpop.permute.xlu1 %2371 }
 0x13b   : > { %v9447_v63 = vsub.f32 %v8963_v8, %v13432_v53  ;;  %13435 = vst [vmem:[#allocation56_spill] sm:$0xff] %v9465_v61  ;;  %v9469_v14 = vsel %vm9410_vm3, %v2322_v50, 0.0  ;;  %v1660_v53 = vand.u32 4294901760, %v1659_v25  ;;  %vm12873_vm0 = vcmp.lt.s32.totalorder %v13403_v32, 112 }
 0x13c   : > { %v9456_v17 = vsub.f32 %v9341_v24, %v13433_v59  ;;  %v9461_v62 = vsub.f32 %v8958_v13, %v13434_v27  ;;  %v1672_v59 = vand.u32 4294901760, %v1671_v33  ;;  %v9476_v27 = vpop.permute.xlu0 %2369  ;;  %v9480_v2 = vpack.c.bf16 %v1654_v21, %v1642_v22  ;;  %6890 = vmatpush1.bf16.msra.mxu0 %v9355_v0 }
 0x13d   : > { %v13436_v50 = vand.u32 4294901760, %v9377_v52  ;;  %v2321_v25 = vsel %vm12866_vm13, %v9148_v49, %v9180_v41  ;;  %v2320_v21 = vsel %vm12866_vm13, %v9150_v42, %v9182_v15  ;;  %v2354_v47 = vsel %vm12873_vm0, %v9233_v56, %v9286_v3  ;;  %6892 = vmatprep.subr.bf16.mxu0 %v9250_v6 }
 0x13e   : > { %v2353_v33 = vsel %vm12873_vm0, %v9235_v11, %v9288_v1  ;;  %v9510_v22 = vpack.c.bf16 %v1672_v59, %v1660_v53  ;;  %v13437_v60 = vand.u32 4294901760, %v9438_v54  ;;  %v2325_v29 = vsel %vm12866_vm13, %v9180_v41, %v9148_v49  ;;  %v2380_v41 = vpop.permute.xlu1 %2379 }
 0x13f   : > { %v9485_v35 = vsub.f32 %v9377_v52, %v13436_v50  ;;  %v9523_v50 = vsel %vm9391_vm4, %v2321_v25, 0.0  ;;  %v13439_v53 = vand.u32 4294901760, %v9451_v43  ;;  %v9538_v49 = vsel %vm9391_vm4, %v2320_v21, 0.0 }
 0x140   : > { %v9515_v9 = vsub.f32 %v9438_v54, %v13437_v60  ;;  %13438 = vst [vmem:[#allocation52_spill] sm:$0xff] %v9523_v50  ;;  %v2324_v60 = vsel %vm12866_vm13, %v9182_v15, %v9150_v42  ;;  %13440 = vst [vmem:[#allocation55_spill] sm:$0xff] %v9538_v49  ;;  %v13441_v25 = vand.u32 4294901760, %v9469_v14  ;;  %v9553_v42 = vsel %vm9345_vm8, %v2354_v47, 0.0  ;;  %v2378_v21 = vpop.permute.xlu0 %2377 }
 0x141   : > { %v9530_v59 = vsub.f32 %v9451_v43, %v13439_v53  ;;  %v13442_v53 = vand.u32 4294901760, %v9465_v61  ;;  %13443 = vst [vmem:[#allocation53_spill] sm:$0xff] %v9553_v42  ;;  %v9557_v15 = vsel %vm9345_vm8, %v2353_v33, 0.0  ;;  %v9561_v38 = vsel %vm9410_vm3, %v2325_v29, 0.0  ;;  %vm9615_vm13 = vmand %vm9345_vm8, %vm8181_vm5 }
 0x142   : > { %v9544_v52 = vsub.f32 %v9469_v14, %v13441_v25  ;;  %13444 = vst [vmem:[#allocation61_spill] sm:$0xff] %v9557_v15  ;;  %v2357_v47 = vsel %vm12873_vm0, %v9288_v1, %v9235_v11  ;;  %v2356_v1 = vsel %vm12873_vm0, %v9328_v12, %v9379_v45  ;;  %v13446_v25 = vand.u32 4294901760, %v9523_v50 }
 0x143   : > { %v9549_v54 = vsub.f32 %v9465_v61, %v13442_v53  ;;  %v2358_v53 = vsel %vm12873_vm0, %v9286_v3, %v9233_v56  ;;  %v9575_v61 = vsel %vm9410_vm3, %v2324_v60, 0.0  ;;  %v2355_v56 = vsel %vm12873_vm0, %v9330_v57, %v9399_v58 }
 0x144   : > { %v9595_v33 = vsel %vm9363_vm12, %v2358_v53, 0.0  ;;  %v9599_v3 = vsel %vm9363_vm12, %v2357_v47, 0.0  ;;  %v9604_v29 = vsub.f32 %v9523_v50, %v13446_v25  ;;  %v2360_v6 = vsel %vm12873_vm0, %v9379_v45, %v9328_v12  ;;  %v2376_v47 = vpop.permute.xlu1 %2375 }
 0x145   : > { %13445 = vst [vmem:[#allocation60_spill] sm:$0xff] %v9595_v33  ;;  %v13448_v53 = vmov 0  ;;  %vm13451_vm7 = vcmp.lt.s32.totalorder %v13403_v32, 111  ;;  %v13452_v40 = vand.u32 4294901760, %v9257_v51  ;;  %v13453_v60 = vand.u32 4294901760, %v9538_v49  ;;  %v2374_v51 = vpop.permute.xlu0 %2373 }
 0x146   : > { %v13449_v53 = vsel %vm9615_vm13, 4294967295, %v13448_v53  ;;  %v2387_v25 = vsel %vm13451_vm7, %v9471_v23, %v2380_v41  ;;  %v9631_v45 = vsel %vm9345_vm8, %v2356_v1, 0.0  ;;  %v2359_v11 = vsel %vm12873_vm0, %v9399_v58, %v9330_v57  ;;  %vm9664_vm7 = vmand %vm9363_vm12, %vm8185_vm6 }
 0x147   : > { %13450 = vst [vmem:[#allocation15_spill] sm:$0xff] %v13449_v53  ;;  %1497 = vmatmul.mubr.f32.vlgmr.msra.gmra.mrb[0].mxu0 %v13452_v40  ;;  %v9627_v12 = vsub.f32 %v9538_v49, %v13453_v60  ;;  %13454 = vst [vmem:[#allocation57_spill] sm:$0xff] %v9631_v45  ;;  %v9639_v50 = vsel %vm9345_vm8, %v2355_v56, 0.0  ;;  %v13455_v60 = vand.u32 4294901760, %v9553_v42  ;;  %v13456_v57 = vand.u32 4294901760, %v9557_v15 }
 0x148   : > { %6894 = vmatpush1.bf16.msra.mxu0 %v9276_v18  ;;  %1502 = vmatprep.mubr.f32.mxu0 %v13156_v46  ;;  %v9658_v18 = vsel %vm9363_vm12, %v2360_v6, 0.0  ;;  %vm13461_vm0 = vcmp.lt.s32.totalorder %v13403_v32, 111  ;;  %v9681_v40 = vsel %vm9363_vm12, %v2359_v11, 0.0  ;;  %v13467_v19 = vand.u32 4294901760, %v9575_v61 }
 0x149   : > { %v9647_v1 = vsub.f32 %v9553_v42, %v13455_v60  ;;  %v9653_v58 = vsub.f32 %v9557_v15, %v13456_v57  ;;  %6896 = vmatprep.subr.bf16.mxu0 %v9278_v55  ;;  %v13458_v60 = vmov 0  ;;  %v2391_v49 = vsel %vm13461_vm0, %v2380_v41, %v9471_v23  ;;  %vm13463_vm8 = vmmov %vm13461_vm0 }
 0x14a   : > { %v13459_v60 = vsel %vm9664_vm7, 4294967295, %v13458_v60  ;;  %v9673_v57 = vsel %vm9615_vm13, %v2387_v25, 0.0  ;;  %v2390_v55 = vsel %vm13463_vm8, %v2378_v21, %v9476_v27  ;;  %vm13464_vm3 = vmmov %vm13461_vm0  ;;  %v13465_v41 = vand.u32 4294901760, %v9385_v36 }
 0x14b   : > { %13460 = vst [vmem:[#allocation62_spill] sm:$0xff] %v13459_v60  ;;  %13462 = vst [vmem:[#allocation9_spill] sm:$0xff] %v9673_v57  ;;  %v2386_v23 = vsel %vm13464_vm3, %v9476_v27, %v2378_v21  ;;  %v13466_v25 = vand.u32 4294901760, %v9561_v38  ;;  %v9698_v11 = vsub.f32 %v9575_v61, %v13467_v19  ;;  %v13468_v36 = vand.u32 4294901760, %v9595_v33 }
 0x14c   : > { %1508 = vmatmul.mubr.f32.gmra.mrb[2].mxu0 %v13465_v41  ;;  %v9710_v21 = vsel %vm9664_vm7, %v2391_v49, 0.0  ;;  %v9715_v19 = vsel %vm9664_vm7, %v2390_v55, 0.0  ;;  %v9727_v49 = vsel %vm9615_vm13, %v2386_v23, 0.0  ;;  %v2382_v41 = vpop.permute.xlu0 %2381  ;;  %v13472_v7 = vand.u32 4294901760, %v9456_v17  ;;  %vm13475_vm3 = vmmov %vm13461_vm0 }
 0x14d   : > { %v9692_v56 = vsub.f32 %v9561_v38, %v13466_v25  ;;  %6898 = vmatpush1.bf16.msra.mxu0 %v9310_v37  ;;  %1513 = vmatprep.mubr.f32.mxu0 %v13156_v46  ;;  %v9706_v27 = vsub.f32 %v9595_v33, %v13468_v36  ;;  %v2384_v25 = vpop.permute.xlu1 %2383  ;;  %v13469_v37 = vand.u32 4294901760, %v9599_v3  ;;  %vm13476_vm8 = vmmov %vm13461_vm0  ;;  %v13477_v42 = vand.u32 4294901760, %v9658_v18 }
 0x14e   : > { %6900 = vmatprep.subr.bf16.mxu0 %v9357_v28  ;;  %v13470_v28 = vand.u32 4294901760, %v9631_v45  ;;  %v2393_v55 = vsel %vm13461_vm0, %v2384_v25, %v2376_v47  ;;  %v2389_v17 = vsel %vm13475_vm3, %v2376_v47, %v2384_v25  ;;  %v2392_v33 = vsel %vm13476_vm8, %v2382_v41, %v2374_v51 }
 0x14f   : > { %v9721_v6 = vsub.f32 %v9599_v3, %v13469_v37  ;;  %v13471_v37 = vand.u32 4294901760, %v9639_v50  ;;  %v13478_v23 = vand.u32 4294901760, %v9681_v40  ;;  %v12892_v47 = vand.u32 4294901760, %v9530_v59 }
 0x150   : > { %v9734_v15 = vsub.f32 %v9631_v45, %v13470_v28  ;;  %1519 = vmatmul.mubr.f32.gmra.mrb[4].mxu0 %v13472_v7  ;;  %v13473_v28 = vand.u32 4294901760, %v9673_v57  ;;  %v2388_v7 = vsel %vm13461_vm0, %v2374_v51, %v2382_v41  ;;  %v13479_v45 = vand.u32 4294901760, %v9485_v35 }
 0x151   : > { %v9739_v36 = vsub.f32 %v9639_v50, %v13471_v37  ;;  %6902 = vmatpush1.bf16.msra.mxu0 %v9359_v34  ;;  %1524 = vmatprep.mubr.f32.mxu0 %v13156_v46  ;;  %v9764_v34 = vsub.f32 %v9658_v18, %v13477_v42  ;;  %v12893_v42 = vand.u32 4294901760, %v9698_v11  ;;  %v9790_v51 = vsel %vm9615_vm13, %v2389_v17, 0.0 }
 0x152   : > { %v9753_v37 = vsub.f32 %v9673_v57, %v13473_v28  ;;  %6904 = vmatprep.subr.bf16.mxu0 %v9401_v4  ;;  %v9769_v28 = vsub.f32 %v9681_v40, %v13478_v23  ;;  %v9778_v4 = vsel %vm9664_vm7, %v2393_v55, 0.0  ;;  %v13480_v23 = vand.u32 4294901760, %v9710_v21 }
 0x153   : > { %v9794_v41 = vsel %vm9664_vm7, %v2392_v33, 0.0  ;;  %v13483_v17 = vand.u32 4294901760, %v9727_v49  ;;  %v9812_v33 = vsel %vm9615_vm13, %v2388_v7, 0.0  ;;  %v13485_v35 = vand.u32 4294901760, %v9544_v52 }
 0x154   : > { %13474 = vst [vmem:[#allocation59_spill] sm:$0xff] %v9753_v37  ;;  %1530 = vmatmul.mubr.f32.gmra.mrb[6].mxu0 %v13479_v45  ;;  %v9786_v32 = vsub.f32 %v9710_v21, %v13480_v23  ;;  %v13482_v45 = vand.u32 4294901760, %v9715_v19  ;;  %v13488_v55 = vand.u32 4294901760, %v9515_v9  ;;  %v13490_v7 = vand.u32 4294901760, %v9692_v56 }
 0x155   : > { %6906 = vmatpush1.bf16.msra.mxu0 %v9403_v26  ;;  %1720 = vmatprep.mubr.f32.mxu0 %v13156_v46  ;;  %v9808_v25 = vsub.f32 %v9727_v49, %v13483_v17  ;;  %v9820_v57 = vpack.c.bf16 %v12892_v47, %v13485_v35  ;;  %v12896_v53 = vand.u32 4294901760, %v9721_v6  ;;  %v12894_v35 = vand.u32 4294901760, %v9706_v27 }
 0x156   : > { %13481 = vst [vmem:[#allocation58_spill] sm:$0xff] %v9786_v32  ;;  %v9803_v23 = vsub.f32 %v9715_v19, %v13482_v45  ;;  %6908 = vmatprep.subr.bf16.mxu0 %v9442_v30  ;;  %v13487_v45 = vand.u32 4294901760, %v9549_v54  ;;  %v9832_v60 = vpack.c.bf16 %v13490_v7, %v12893_v42  ;;  %v13499_v42 = vand.u32 4294901760, %v9647_v1 }
 0x157   : > { %13484 = vst [vmem:[#allocation3_spill] sm:$0xff] %v9808_v25  ;;  %13486 = vst [vmem:[#allocation75_spill] sm:$0xff] %v9820_v57  ;;  %v12895_v57 = vand.u32 4294901760, %v9769_v28  ;;  %v9855_v47 = vpack.c.bf16 %v12894_v35, %v12896_v53  ;;  %v13501_v26 = vand.u32 4294901760, %v9764_v34  ;;  %v13503_v35 = vand.u32 4294901760, %v9739_v36 }
 0x158   : > { %v9826_v17 = vpack.c.bf16 %v13488_v55, %v13487_v45  ;;  %13491 = vst [vmem:[#allocation77_spill] sm:$0xff] %v9832_v60  ;;  %v13492_v45 = vand.u32 4294901760, %v9627_v12  ;;  %v13496_v55 = vand.u32 4294901760, %v9447_v63  ;;  %v13511_v53 = vand.u32 4294901760, %v9808_v25 }
 0x159   : > { %6910 = vmatpush1.bf16.msra.mxu0 %v9480_v2  ;;  %13495 = vst [vmem:[#allocation79_spill] sm:$0xff] %v9855_v47  ;;  %v13498_v2 = vand.u32 4294901760, %v9653_v58  ;;  %v13518_v47 = vand.u32 4294901760, %v9812_v33  ;;  %vm13576_vm3 = vcmask 785408  }
 0x15a   : > { %13489 = vst [vmem:[#allocation76_spill] sm:$0xff] %v9826_v17  ;;  %v13493_v17 = vand.u32 4294901760, %v9604_v29  ;;  %6912 = vmatprep.subr.bf16.mxu0 %v9510_v22  ;;  %v13504_v22 = vand.u32 4294901760, %v9734_v15  ;;  %vm13584_vm8 = vmmov %vm13576_vm3 }
 0x15b   : > { %v9866_v30 = vpack.c.bf16 %v13499_v42, %v13498_v2  ;;  %v13507_v42 = vand.u32 4294901760, %v9794_v41  ;;  %v13508_v2 = vand.u32 4294901760, %v9803_v23  ;;  %v9912_v60 = vsub.f32 %v9812_v33, %v13518_v47  ;;  %vm13591_vm0 = vmmov %vm13576_vm3 }
 0x15c   : > { %v9845_v7 = vpack.c.bf16 %v13493_v17, %v13492_v45  ;;  %v13497_v17 = vand.u32 4294901760, %v9461_v62  ;;  %v9878_v63 = vpack.c.bf16 %v13504_v22, %v13503_v35  ;;  %v13506_v62 = vand.u32 4294901760, %v9778_v4 }
 0x15d   : > { %13500 = vst [vmem:[#allocation80_spill] sm:$0xff] %v9866_v30  ;;  %v13512_v35 = vand.u32 4294901760, %v9753_v37  ;;  %v13516_v30 = vand.u32 4294901760, %v9790_v51  ;;  %v12912_v25 = vand.u32 4294901760, %v9912_v60 }
 0x15e   : > { %13494 = vst [vmem:[#allocation78_spill] sm:$0xff] %v9845_v7  ;;  %v6913_v45 = vpack.c.bf16 %v13497_v17, %v13496_v55  ;;  %v9872_v7 = vpack.c.bf16 %v13501_v26, %v12895_v57  ;;  %13505 = vst [vmem:[#allocation82_spill] sm:$0xff] %v9878_v63  ;;  %v9883_v55 = vsub.f32 %v9778_v4, %v13506_v62  ;;  %v13509_v26 = vand.u32 4294901760, %v9786_v32  ;;  %v13514_v63 = vld [vmem:[#allocation21_spill] sm:$0xff]  ;;  %v13515_v62 = vld [vmem:[#allocation43_spill] sm:$0xff] }
 0x15f   : > { %v9888_v17 = vsub.f32 %v9794_v41, %v13507_v42  ;;  %v9900_v22 = vpack.c.bf16 %v13512_v35, %v13511_v53  ;;  %v9907_v42 = vsub.f32 %v9790_v51, %v13516_v30  ;;  %13519 = vst [vmem:[#allocation43_spill] sm:$0xff] %v9912_v60  ;;  %v13531_v32 = vld [vmem:[#allocation31_spill] sm:$0xff]  ;;  %v13535_v60 = vld [vmem:[#allocation29_spill] sm:$0xff] }
 0x160   : > { %13502 = vst [vmem:[#allocation81_spill] sm:$0xff] %v9872_v7  ;;  %v9894_v57 = vpack.c.bf16 %v13509_v26, %v13508_v2  ;;  %v6915_v7 = vpack.c.bf16 %v13515_v62, %v13514_v63  ;;  %6914 = vmatpush1.bf16.msra.mxu0 %v6913_v45  ;;  %v13520_v2 = vld [vmem:[#allocation30_spill] sm:$0xff]  ;;  %v12903_v35 = vand.u32 4294901760, %v9883_v55  ;;  %v13522_v63 = vld [vmem:[#allocation33_spill] sm:$0xff]  ;;  %v13527_v45 = vld [vmem:[#allocation44_spill] sm:$0xff] }
 0x161   : > { %13513 = vst [vmem:[#allocation84_spill] sm:$0xff] %v9900_v22  ;;  %13517 = vst [vmem:[#allocation21_spill] sm:$0xff] %v9907_v42  ;;  %v13521_v26 = vld [vmem:[#allocation14_spill] sm:$0xff]  ;;  %v12904_v53 = vand.u32 4294901760, %v9888_v17  ;;  %v13523_v62 = vld [vmem:[#allocation49_spill] sm:$0xff]  ;;  %v12909_v37 = vand.u32 4294901760, %v9907_v42 }
 0x162   : > { %13510 = vst [vmem:[#allocation83_spill] sm:$0xff] %v9894_v57  ;;  %6916 = vmatprep.subr.bf16.mxu0 %v6915_v7  ;;  %v6917_v57 = vpack.c.bf16 %v13521_v26, %v13520_v2  ;;  %v13524_v22 = vld [vmem:[#allocation48_spill] sm:$0xff]  ;;  %v13529_v26 = vld [vmem:[#allocation63_spill] sm:$0xff] }
 0x163   : > { %1722 = vmatmul.mubr.f32.vlgmr.msra.gmra.mrb[0].mxu0 %v13522_v63  ;;  %v6919_v30 = vpack.c.bf16 %v13524_v22, %v13523_v62  ;;  %v9928_v47 = vpack.c.bf16 %v12903_v35, %v12904_v53  ;;  %v9934_v7 = vpack.c.bf16 %v12909_v37, %v12912_v25  ;;  %v13528_v22 = vld [vmem:[#allocation18_spill] sm:$0xff]  ;;  %v13621_v25 = vand.u32 4294901760, %v9769_v28 }
 0x164   : > { %6918 = vmatpush1.bf16.msra.mxu0 %v6917_v57  ;;  %1727 = vmatprep.mubr.f32.mxu0 %v13156_v46  ;;  %v6921_v2 = vpack.c.bf16 %v13528_v22, %v13527_v45  ;;  %v13530_v57 = vld [vmem:[#allocation16_spill] sm:$0xff]  ;;  %v13532_v35 = vld [vmem:[#allocation26_spill] sm:$0xff] }
 0x165   : > { %13525 = vst [vmem:[#allocation30_spill] sm:$0xff] %v9928_v47  ;;  %6920 = vmatprep.subr.bf16.mxu0 %v6919_v30  ;;  %13526 = vst [vmem:[#allocation14_spill] sm:$0xff] %v9934_v7  ;;  %v6923_v62 = vpack.c.bf16 %v13530_v57, %v13529_v26  ;;  %v13533_v30 = vld [vmem:[#allocation50_spill] sm:$0xff]  ;;  %v13534_v47 = vld [vmem:[#allocation65_spill] sm:$0xff] }
 0x166   : > { %v6925_v53 = vpack.c.bf16 %v13533_v30, %v13532_v35  ;;  %v6927_v42 = vpack.c.bf16 %v13535_v60, %v13534_v47  ;;  %v13536_v45 = vld [vmem:[#allocation66_spill] sm:$0xff]  ;;  %v13537_v22 = vld [vmem:[#allocation64_spill] sm:$0xff]  ;;  %v6933_v60 = vpack.c.bf16 %v8946_v5, %v8953_v20  ;;  %v13541_v47 = vld [vmem:[#allocation35_spill] sm:$0xff] }
 0x167   : > { %1729 = vmatmul.mubr.f32.gmra.mrb[2].mxu0 %v13531_v32  ;;  %v6929_v26 = vpack.c.bf16 %v13537_v22, %v13536_v45  ;;  %v13538_v57 = vld [vmem:[#allocation12_spill] sm:$0xff]  ;;  %v13540_v35 = vld [vmem:[#allocation22_spill] sm:$0xff]  ;;  %v13544_v20 = vld [vmem:[#allocation11_spill] sm:$0xff] }
 0x168   : > { %6922 = vmatpush1.bf16.msra.mxu0 %v6921_v2  ;;  %1734 = vmatprep.mubr.f32.mxu0 %v13156_v46  ;;  %v13539_v2 = vld [vmem:[#allocation27_spill] sm:$0xff]  ;;  %v13545_v5 = vld [vmem:[#allocation37_spill] sm:$0xff]  ;;  %v13550_v30 = vld [vmem:[#allocation28_spill] sm:$0xff] }
 0x169   : > { %6924 = vmatprep.subr.bf16.mxu0 %v6923_v62  ;;  %v6931_v37 = vpack.c.bf16 %v13539_v2, %v13538_v57  ;;  %v13542_v62 = vld [vmem:[#allocation23_spill] sm:$0xff]  ;;  %v13551_v45 = vld [vmem:[#allocation17_spill] sm:$0xff]  ;;  %v13554_v57 = vld [vmem:[#allocation24_spill] sm:$0xff] }
 0x16a   : > { %v13552_v22 = vld [vmem:[#allocation13_spill] sm:$0xff]  ;;  %v13555_v2 = vld [vmem:[#allocation67_spill] sm:$0xff] }
 0x16b   : > { %1736 = vmatmul.mubr.f32.gmra.mrb[4].mxu0 %v9315_v16 }
 0x16c   : > { %6926 = vmatpush1.bf16.msra.mxu0 %v6925_v53  ;;  %1741 = vmatprep.mubr.f32.mxu0 %v13156_v46  ;;  %v6935_v53 = vpack.c.bf16 %v8987_v31, %v8981_v39  ;;  %v13546_v31 = vld [vmem:[#allocation38_spill] sm:$0xff]  ;;  %v13549_v39 = vld [vmem:[#allocation47_spill] sm:$0xff] }
 0x16d   : > { %6928 = vmatprep.subr.bf16.mxu0 %v6927_v42  ;;  %v6937_v42 = vpack.c.bf16 %v8958_v13, %v8963_v8  ;;  %v13547_v13 = vld [vmem:[#allocation34_spill] sm:$0xff]  ;;  %v13548_v8 = vld [vmem:[#allocation8_spill] sm:$0xff] }
 0x16f   : > { %1743 = vmatmul.mubr.f32.gmra.mrb[6].mxu0 %v9326_v10 }
 0x170   : > { %6930 = vmatpush1.bf16.msra.mxu0 %v6929_v26  ;;  %1861 = vmatprep.mubr.f32.mxu0 %v13156_v46  ;;  %v13553_v26 = vand.u32 4294901760, %v13541_v47 }
 0x171   : > { %6932 = vmatprep.subr.bf16.mxu0 %v6931_v37  ;;  %v13543_v37 = vld [vmem:[#allocation36_spill] sm:$0xff] }
 0x174   : > { %6934 = vmatpush1.bf16.msra.mxu0 %v6933_v60  ;;  %v13556_v60 = vand.u32 4294901760, %v13544_v20 }
 0x175   : > { %6936 = vmatprep.subr.bf16.mxu0 %v6935_v53  ;;  %v13557_v53 = vld [vmem:[#allocation68_spill] sm:$0xff] }
 0x178   : > { %6938 = vmatpush1.bf16.msra.mxu0 %v6937_v42  ;;  %v13558_v42 = vld [vmem:[#allocation69_spill] sm:$0xff] }
 0x179   : > { %6940 = vmatprep.subr.bf16.mxu0 %v13540_v35 }
 0x17b   : > { %1864 = vmatmul.mubr.f32.vlgmr.msra.gmra.mrb[0].mxu0 %v13541_v47  ;;  %v13560_v47 = vld [vmem:[#allocation70_spill] sm:$0xff] }
 0x17c   : > { %6942 = vmatpush1.bf16.msra.mxu0 %v13542_v62  ;;  %1869 = vmatprep.mubr.f32.mxu0 %v13156_v46 }
 0x17d   : > { %6944 = vmatprep.subr.bf16.mxu0 %v13543_v37 }
 0x17f   : > { %1872 = vmatmul.mubr.f32.gmra.mrb[2].mxu0 %v13544_v20  ;;  %v13563_v20 = vld [vmem:[#allocation72_spill] sm:$0xff] }
 0x180   : > { %6946 = vmatpush1.bf16.msra.mxu0 %v13545_v5  ;;  %1877 = vmatprep.mubr.f32.mxu0 %v13156_v46 }
 0x181   : > { %6948 = vmatprep.subr.bf16.mxu0 %v13546_v31 }
 0x183   : > { %1880 = vmatmul.mubr.f32.gmra.mrb[4].mxu0 %v9341_v24 }
 0x184   : > { %6950 = vmatpush1.bf16.msra.mxu0 %v13547_v13  ;;  %1885 = vmatprep.mubr.f32.mxu0 %v13156_v46 }
 0x185   : > { %6952 = vmatprep.subr.bf16.mxu0 %v13548_v8 }
 0x187   : > { %1888 = vmatmul.mubr.f32.gmra.mrb[6].mxu0 %v13549_v39 }
 0x188   : > { %6954 = vmatpush1.bf16.msra.mxu0 %v13550_v30  ;;  %1982 = vmatprep.mubr.f32.mxu0 %v13156_v46 }
 0x189   : > { %6956 = vmatprep.subr.bf16.mxu0 %v13551_v45 }
 0x18c   : > { %6958 = vmatpush1.bf16.msra.mxu0 %v9308_v44 }
 0x18d   : > { %6960 = vmatprep.subr.bf16.mxu0 %v9324_v48 }
 0x190   : > { %6962 = vmatpush1.bf16.msra.mxu0 %v9355_v0 }
 0x191   : > { %6964 = vmatprep.subr.bf16.mxu0 %v13552_v22  ;;  %v13559_v22 = vand.u32 4294901760, %v9341_v24  ;;  %v13567_v24 = vld [vmem:[#allocation32_spill] sm:$0xff] }
 0x193   : > { %1986 = vmatmul.mubr.f32.vlgmr.msra.gmra.mrb[0].mxu0 %v13553_v26  ;;  %v13561_v26 = vld [vmem:[#allocation71_spill] sm:$0xff] }
 0x194   : > { %6966 = vmatpush1.bf16.msra.mxu0 %v13554_v57  ;;  %1991 = vmatprep.mubr.f32.mxu0 %v13156_v46  ;;  %v13562_v57 = vand.u32 4294901760, %v13549_v39 }
 0x195   : > { %6968 = vmatprep.subr.bf16.mxu0 %v13555_v2  ;;  %v13564_v2 = vld [vmem:[#allocation25_spill] sm:$0xff] }
 0x197   : > { %1995 = vmatmul.mubr.f32.gmra.mrb[2].mxu0 %v13556_v60  ;;  %v13565_v60 = vld [vmem:[#allocation73_spill] sm:$0xff] }
 0x198   : > { %6970 = vmatpush1.bf16.msra.mxu0 %v13557_v53  ;;  %2000 = vmatprep.mubr.f32.mxu0 %v13156_v46  ;;  %v13566_v53 = vld [vmem:[#allocation74_spill] sm:$0xff] }
 0x199   : > { %6972 = vmatprep.subr.bf16.mxu0 %v13558_v42  ;;  %v13579_v42 = vld [vmem:[#allocation52_spill] sm:$0xff] }
 0x19b   : > { %2004 = vmatmul.mubr.f32.gmra.mrb[4].mxu0 %v13559_v22 }
 0x19c   : > { %6974 = vmatpush1.bf16.msra.mxu0 %v13560_v47  ;;  %2009 = vmatprep.mubr.f32.mxu0 %v13156_v46  ;;  %v13582_v47 = vld [vmem:[#allocation60_spill] sm:$0xff] }
 0x19d   : > { %6976 = vmatprep.subr.bf16.mxu0 %v13561_v26  ;;  %v13583_v26 = vand.u32 4294901760, %v13582_v47 }
 0x19f   : > { %2013 = vmatmul.mubr.f32.gmra.mrb[6].mxu0 %v13562_v57 }
 0x1a0   : > { %6978 = vmatpush1.bf16.msra.mxu0 %v13563_v20  ;;  %2155 = vmatprep.mubr.f32.mxu0 %v13156_v46 }
 0x1a1   : > { %6980 = vmatprep.subr.bf16.mxu0 %v13564_v2 }
 0x1a4   : > { %6982 = vmatpush1.bf16.msra.mxu0 %v13565_v60  ;;  %v13585_v60 = vld [vmem:[#allocation61_spill] sm:$0xff] }
 0x1a5   : > { %6984 = vmatprep.subr.bf16.mxu0 %v13566_v53  ;;  %v13586_v53 = vand.u32 4294901760, %v13585_v60 }
 0x1a8   : > { %6986 = vmatpush1.bf16.msra.mxu0 %v13567_v24  ;;  %v13587_v24 = vld [vmem:[#allocation53_spill] sm:$0xff] }
 0x1a9   : > { %6988 = vmatprep.subr.bf16.mxu0 %v13540_v35  ;;  %v13568_v35 = vand.u32 4294901760, %v9469_v14 }
 0x1ab   : > { %2157 = vmatmul.mubr.f32.vlgmr.msra.gmra.mrb[0].mxu0 %v13522_v63 }
 0x1ac   : > { %6990 = vmatpush1.bf16.msra.mxu0 %v13542_v62  ;;  %2162 = vmatprep.mubr.f32.mxu0 %v13156_v46  ;;  %v13569_v62 = vand.u32 4294901760, %v9451_v43  ;;  %v13575_v43 = vand.u32 4294901760, %v9561_v38  ;;  %v13581_v38 = vand.u32 4294901760, %v9599_v3  ;;  %v6709_v3 = vld [vmem:[%s12691_s1 + $0x50] sm:$0xff] }
 0x1ad   : > { %6992 = vmatprep.subr.bf16.mxu0 %v13543_v37 }
 0x1ae   : > { %v10027_v37 = vpack.c.bf16 %v13569_v62, %v13568_v35  ;;  %v10064_v57 = vpack.c.bf16 %v13583_v26, %v13581_v38  ;;  %v13588_v35 = vand.u32 4294901760, %v13587_v24  ;;  %v13603_v24 = vand.u32 4294901760, %v9698_v11 }
 0x1af   : > { %2164 = vmatmul.mubr.f32.gmra.mrb[2].mxu0 %v13531_v32 }
 0x1b0   : > { %6994 = vmatpush1.bf16.msra.mxu0 %v13545_v5  ;;  %2169 = vmatprep.mubr.f32.mxu0 %v13156_v46  ;;  %v6707_v5 = vld [vmem:[%s12691_s1 + $0x40] sm:$0xff]  ;;  %v10080_v62 = vpack.c.bf16 %v13588_v35, %v13586_v53  ;;  %v2581_v35 = vsub.f32 %v9698_v11, %v13603_v24  ;;  %v13612_v24 = vand.u32 4294901760, %v9627_v12 }
 0x1b1   : > { %6996 = vmatprep.subr.bf16.mxu0 %v13546_v31  ;;  %v13570_v31 = vld [vmem:[#allocation56_spill] sm:$0xff] }
 0x1b3   : > { %2171 = vmatmul.mubr.f32.gmra.mrb[4].mxu0 %v9315_v16 }
 0x1b4   : > { %6998 = vmatpush1.bf16.msra.mxu0 %v13547_v13  ;;  %2176 = vmatprep.mubr.f32.mxu0 %v13156_v46  ;;  %v13571_v13 = vand.u32 4294901760, %v13570_v31 }
 0x1b5   : > { %7000 = vmatprep.subr.bf16.mxu0 %v13548_v8  ;;  %v13572_v8 = vld [vmem:[#allocation42_spill] sm:$0xff] }
 0x1b7   : > { %2178 = vmatmul.mubr.f32.gmra.mrb[6].mxu0 %v9326_v10 }
 0x1b8   : > { %7002 = vmatpush1.bf16.msra.mxu0 %v13550_v30  ;;  %2272 = vmatprep.mubr.f32.mxu0 %v13156_v46  ;;  %v6708_v30 = vld [vmem:[%s12691_s1 + $0x48] sm:$0xff] }
 0x1b9   : > { %7004 = vmatprep.subr.bf16.mxu0 %v13551_v45  ;;  %v13577_v45 = vld [vmem:[#allocation55_spill] sm:$0xff]  ;;  %v2413_v2 = vsel %vm13584_vm8, %v6708_v30, 0  ;;  %v13595_v30 = vld [vmem:[#allocation57_spill] sm:$0xff] }
 0x1bc   : > { %7006 = vmatpush1.bf16.msra.mxu0 %v9308_v44  ;;  %v13573_v44 = vand.u32 4294901760, %v13572_v8  ;;  %v10092_v8 = vand.u32 4294901760, %v2413_v2 }
 0x1bd   : > { %7008 = vmatprep.subr.bf16.mxu0 %v9324_v48  ;;  %v13574_v48 = vand.u32 4294901760, %v9575_v61  ;;  %v13580_v61 = vand.u32 4294901760, %v13579_v42  ;;  %v13597_v42 = vand.u32 4294901760, %v9715_v19 }
 0x1be   : > { %v10038_v39 = vpack.c.bf16 %v13573_v44, %v13571_v13  ;;  %v2416_v44 = vsel %vm13591_vm0, %v6709_v3, 0  ;;  %v10122_v26 = vsub.f32 %v2413_v2, %v10092_v8 }
 0x1bf   : > { %v10045_v14 = vpack.c.bf16 %v13575_v43, %v13574_v48  ;;  %v13593_v48 = vand.u32 4294901760, %v9530_v59  ;;  %v6710_v43 = vld [vmem:[%s12691_s1 + $0x58] sm:$0xff]  ;;  %v10124_v3 = vand.u32 4294901760, %v2416_v44 }
 0x1c0   : > { %7010 = vmatpush1.bf16.msra.mxu0 %v9355_v0  ;;  %v2410_v0 = vsel %vm13576_vm3, %v6707_v5, 0  ;;  %v13590_v5 = vand.u32 4294901760, %v9658_v18  ;;  %vm13602_vm3 = vmmov %vm13591_vm0 }
 0x1c1   : > { %7012 = vmatprep.subr.bf16.mxu0 %v10027_v37  ;;  %v10067_v20 = vand.u32 4294901760, %v2410_v0 }
 0x1c3   : > { %2274 = vmatmul.mubr.f32.vlgmr.msra.gmra.mrb[0].mxu0 %v13522_v63  ;;  %v13578_v63 = vand.u32 4294901760, %v13577_v45  ;;  %v10090_v13 = vsub.f32 %v2410_v0, %v10067_v20  ;;  %v13594_v0 = vand.u32 4294901760, %v9639_v50  ;;  %v13596_v45 = vand.u32 4294901760, %v13595_v30 }
 0x1c4   : > { %7014 = vmatpush1.bf16.msra.mxu0 %v10038_v39  ;;  %2279 = vmatprep.mubr.f32.mxu0 %v13156_v46  ;;  %v13600_v50 = vand.u32 4294901760, %v9549_v54  ;;  %v13609_v30 = vand.u32 4294901760, %v9778_v4 }
 0x1c5   : > { %7016 = vmatprep.subr.bf16.mxu0 %v10045_v14  ;;  %v10058_v22 = vpack.c.bf16 %v13580_v61, %v13578_v63  ;;  %v10111_v63 = vpack.c.bf16 %v13596_v45, %v13594_v0  ;;  %v13598_v61 = vand.u32 4294901760, %v9710_v21  ;;  %v12911_v47 = vand.u32 4294901760, %v10090_v13 }
 0x1c6   : > { %v2563_v19 = vsub.f32 %v9549_v54, %v13600_v50  ;;  %v13601_v21 = vand.u32 4294901760, %v9515_v9  ;;  %v13608_v0 = vand.u32 4294901760, %v9794_v41 }
 0x1c7   : > { %2281 = vmatmul.mubr.f32.gmra.mrb[2].mxu0 %v13531_v32  ;;  %v13589_v32 = vand.u32 4294901760, %v9681_v40  ;;  %v13592_v40 = vand.u32 4294901760, %v9544_v52  ;;  %v10117_v38 = vpack.c.bf16 %v13598_v61, %v13597_v42  ;;  %v10159_v42 = vsub.f32 %v2416_v44, %v10124_v3 }
 0x1c8   : > { %7018 = vmatpush1.bf16.msra.mxu0 %v10058_v22  ;;  %2286 = vmatprep.mubr.f32.mxu0 %v13156_v46  ;;  %v2575_v60 = vsub.f32 %v9515_v9, %v13601_v21  ;;  %v10149_v45 = vpack.c.bf16 %v13609_v30, %v13608_v0  ;;  %v2564_v4 = vand.u32 4294901760, %v2563_v19  ;;  %v2582_v21 = vand.u32 4294901760, %v2581_v35 }
 0x1c9   : > { %7020 = vmatprep.subr.bf16.mxu0 %v10064_v57  ;;  %v10086_v31 = vpack.c.bf16 %v13590_v5, %v13589_v32  ;;  %v2557_v18 = vsub.f32 %v9544_v52, %v13592_v40  ;;  %13599 = vst [vmem:[#allocation33_spill] sm:$0xff] %v10117_v38  ;;  %v13604_v32 = vand.u32 4294901760, %v9727_v49  ;;  %v13605_v5 = vld [vmem:[#allocation9_spill] sm:$0xff]  ;;  %v12910_v49 = vand.u32 4294901760, %v10122_v26 }
 0x1ca   : > { %v13606_v40 = vand.u32 4294901760, %v13605_v5  ;;  %13610 = vst [vmem:[#allocation48_spill] sm:$0xff] %v10149_v45  ;;  %v2576_v41 = vand.u32 4294901760, %v2575_v60  ;;  %v13613_v5 = vand.u32 4294901760, %v9604_v29  ;;  %v13614_v44 = vand.u32 4294901760, %v9812_v33 }
 0x1cb   : > { %2288 = vmatmul.mubr.f32.gmra.mrb[4].mxu0 %v9315_v16  ;;  %v2569_v16 = vsub.f32 %v9530_v59, %v13593_v48  ;;  %v2558_v2 = vand.u32 4294901760, %v2557_v18  ;;  %v13615_v0 = vand.u32 4294901760, %v9790_v51  ;;  %v13617_v60 = vand.u32 4294901760, %v9721_v6 }
 0x1cc   : > { %7022 = vmatpush1.bf16.msra.mxu0 %v10080_v62  ;;  %2293 = vmatprep.mubr.f32.mxu0 %v13156_v46  ;;  %v10143_v48 = vpack.c.bf16 %v13606_v40, %v13604_v32  ;;  %v2587_v32 = vsub.f32 %v9627_v12, %v13612_v24  ;;  %v2599_v40 = vsub.f32 %v9604_v29, %v13613_v5  ;;  %v13622_v33 = vand.u32 4294901760, %v9764_v34 }
 0x1cd   : > { %7024 = vmatprep.subr.bf16.mxu0 %v10086_v31  ;;  %v2570_v53 = vand.u32 4294901760, %v2569_v16  ;;  %v2513_v16 = vsub.f32 %v10090_v13, %v12911_v47  ;;  %v10175_v30 = vpack.c.bf16 %v13615_v0, %v13614_v44  ;;  %v2524_v24 = vsub.f32 %v10122_v26, %v12910_v49 }
 0x1ce   : > { %13607 = vst [vmem:[#allocation49_spill] sm:$0xff] %v10143_v48  ;;  %v2588_v5 = vand.u32 4294901760, %v2587_v32  ;;  %v2600_v44 = vand.u32 4294901760, %v2599_v40  ;;  %v13619_v0 = vand.u32 4294901760, %v9653_v58  ;;  %v13623_v32 = vand.u32 4294901760, %v10159_v42 }
 0x1cf   : > { %2295 = vmatmul.mubr.f32.gmra.mrb[6].mxu0 %v9326_v10  ;;  %v2419_v10 = vsel %vm13602_vm3, %v6710_v43, 0  ;;  %v13611_v43 = vand.u32 4294901760, %v9692_v56  ;;  %v7035_v50 = vpack.c.bf16 %v2570_v53, %v2558_v2  ;;  %13616 = vst [vmem:[#allocation44_spill] sm:$0xff] %v10175_v30  ;;  %v2605_v2 = vsub.f32 %v9721_v6, %v13617_v60 }
 0x1d0   : > { %7026 = vmatpush1.bf16.msra.mxu0 %v10111_v63  ;;  %2509 = vmatprep.mubr.f32.mxu0 %v13156_v46  ;;  %v10161_v61 = vand.u32 4294901760, %v2419_v10  ;;  %v13618_v53 = vand.u32 4294901760, %v9706_v27  ;;  %v2611_v60 = vsub.f32 %v9653_v58, %v13619_v0  ;;  %v2535_v40 = vsub.f32 %v10159_v42, %v13623_v32 }
 0x1d1   : > { %7028 = vmatprep.subr.bf16.mxu0 %v10117_v38  ;;  %v2593_v18 = vsub.f32 %v9692_v56, %v13611_v43  ;;  %v2514_v43 = vand.u32 4294901760, %v2513_v16  ;;  %v13620_v16 = vand.u32 4294901760, %v9647_v1  ;;  %v2606_v47 = vand.u32 4294901760, %v2605_v2 }
 0x1d2   : > { %v2617_v35 = vsub.f32 %v9706_v27, %v13618_v53  ;;  %v10188_v51 = vsub.f32 %v2419_v10, %v10161_v61  ;;  %v2629_v10 = vsub.f32 %v9769_v28, %v13621_v25  ;;  %v13624_v2 = vand.u32 4294901760, %v9739_v36 }
 0x1d3   : > { %v2594_v19 = vand.u32 4294901760, %v2593_v18  ;;  %v7037_v18 = vpack.c.bf16 %v2576_v41, %v2564_v4  ;;  %v2623_v53 = vsub.f32 %v9647_v1, %v13620_v16  ;;  %v2641_v4 = vsub.f32 %v9764_v34, %v13622_v33 }
 0x1d4   : > { %7030 = vmatpush1.bf16.msra.mxu0 %v10143_v48  ;;  %v2618_v41 = vand.u32 4294901760, %v2617_v35  ;;  %v2635_v33 = vsub.f32 %v9739_v36, %v13624_v2  ;;  %v13626_v32 = vand.u32 4294901760, %v9803_v23  ;;  %v13635_v48 = vand.u32 4294901760, %v9883_v55 }
 0x1d5   : > { %7032 = vmatprep.subr.bf16.mxu0 %v10149_v45  ;;  %v7039_v49 = vpack.c.bf16 %v2594_v19, %v2582_v21  ;;  %v7041_v21 = vpack.c.bf16 %v2600_v44, %v2588_v5  ;;  %v2612_v19 = vand.u32 4294901760, %v2611_v60  ;;  %v2624_v25 = vand.u32 4294901760, %v2623_v53 }
 0x1d6   : > { %v2642_v35 = vand.u32 4294901760, %v2641_v4  ;;  %v7043_v0 = vpack.c.bf16 %v2618_v41, %v2606_v47  ;;  %v2536_v60 = vand.u32 4294901760, %v2535_v40  ;;  %v13629_v53 = vand.u32 4294901760, %v10188_v51  ;;  %v13630_v4 = vld [vmem:[#allocation3_spill] sm:$0xff] }
 0x1d7   : > { %v13631_v2 = vand.u32 4294901760, %v13630_v4  ;;  %v2636_v47 = vand.u32 4294901760, %v2635_v33 }
 0x1d8   : > { %7034 = vmatpush1.bf16.msra.mxu0 %v10175_v30  ;;  %v13632_v30 = vld [vmem:[#allocation59_spill] sm:$0xff] }
 0x1d9   : > { %7036 = vmatprep.subr.bf16.mxu0 %v7035_v50  ;;  %v2525_v50 = vand.u32 4294901760, %v2524_v24  ;;  %v13625_v24 = vand.u32 4294901760, %v9734_v15 }
 0x1db   : > { %2515 = vmatmul.mubr.f32.vlgmr.msra.gmra.mrb[0].mxu0 %v2514_v43  ;;  %v2630_v43 = vand.u32 4294901760, %v2629_v10  ;;  %v2647_v16 = vsub.f32 %v9734_v15, %v13625_v24  ;;  %v2546_v10 = vsub.f32 %v10188_v51, %v13629_v53  ;;  %v2659_v24 = vsub.f32 %v13630_v4, %v13631_v2 }
 0x1dc   : > { %7038 = vmatpush1.bf16.msra.mxu0 %v7037_v18  ;;  %2520 = vmatprep.mubr.f32.mxu0 %v13156_v46  ;;  %v2653_v18 = vsub.f32 %v9803_v23, %v13626_v32  ;;  %v7045_v32 = vpack.c.bf16 %v2624_v25, %v2612_v19  ;;  %v2689_v2 = vsub.f32 %v9883_v55, %v13635_v48  ;;  %v13636_v25 = vld [vmem:[#allocation43_spill] sm:$0xff] }
 0x1dd   : > { %7040 = vmatprep.subr.bf16.mxu0 %v7039_v49  ;;  %v13627_v49 = vld [vmem:[#allocation58_spill] sm:$0xff]  ;;  %v7047_v41 = vpack.c.bf16 %v2642_v35, %v2630_v43  ;;  %v2660_v19 = vand.u32 4294901760, %v2659_v24  ;;  %v13637_v33 = vand.u32 4294901760, %v13636_v25 }
 0x1de   : > { %v13628_v5 = vand.u32 4294901760, %v13627_v49  ;;  %v2654_v7 = vand.u32 4294901760, %v2653_v18  ;;  %v13638_v18 = vld [vmem:[#allocation21_spill] sm:$0xff]  ;;  %v2690_v38 = vand.u32 4294901760, %v2689_v2 }
 0x1df   : > { %2526 = vmatmul.mubr.f32.gmra.mrb[2].mxu0 %v2525_v50  ;;  %v2648_v50 = vand.u32 4294901760, %v2647_v16  ;;  %v2683_v43 = vsub.f32 %v13636_v25, %v13637_v33 }
 0x1e0   : > { %v2665_v44 = vsub.f32 %v13627_v49, %v13628_v5  ;;  %7042 = vmatpush1.bf16.msra.mxu0 %v7041_v21  ;;  %2531 = vmatprep.mubr.f32.mxu0 %v13156_v46  ;;  %v13633_v5 = vand.u32 4294901760, %v13632_v30  ;;  %v13634_v21 = vand.u32 4294901760, %v9888_v17 }
 0x1e1   : > { %7044 = vmatprep.subr.bf16.mxu0 %v7043_v0  ;;  %v2547_v0 = vand.u32 4294901760, %v2546_v10  ;;  %v7049_v35 = vpack.c.bf16 %v2648_v50, %v2636_v47  ;;  %v2684_v48 = vand.u32 4294901760, %v2683_v43  ;;  %v13656_v50 = vld [vmem:[#allocation83_spill] sm:$0xff] }
 0x1e2   : > { %v2671_v40 = vsub.f32 %v13632_v30, %v13633_v5  ;;  %v2666_v45 = vand.u32 4294901760, %v2665_v44  ;;  %v2677_v53 = vsub.f32 %v9888_v17, %v13634_v21  ;;  %v13639_v44 = vand.u32 4294901760, %v13638_v18 }
 0x1e3   : > { %2537 = vmatmul.mubr.f32.gmra.mrb[4].mxu0 %v2536_v60 }
 0x1e4   : > { %7046 = vmatpush1.bf16.msra.mxu0 %v7045_v32  ;;  %2542 = vmatprep.mubr.f32.mxu0 %v13156_v46  ;;  %v2672_v16 = vand.u32 4294901760, %v2671_v40  ;;  %v2695_v60 = vsub.f32 %v13638_v18, %v13639_v44  ;;  %v7051_v5 = vpack.c.bf16 %v2666_v45, %v2654_v7  ;;  %v2678_v21 = vand.u32 4294901760, %v2677_v53  ;;  %v13657_v40 = vld [vmem:[#allocation84_spill] sm:$0xff]  ;;  %v13658_v53 = vld [vmem:[#allocation30_spill] sm:$0xff] }
 0x1e5   : > { %7048 = vmatprep.subr.bf16.mxu0 %v7047_v41  ;;  %v7059_v41 = vpack.c.bf16 %v9530_v59, %v9544_v52  ;;  %v7061_v7 = vpack.c.bf16 %v9515_v9, %v9549_v54  ;;  %v7063_v45 = vpack.c.bf16 %v9692_v56, %v9698_v11  ;;  %v7067_v52 = vpack.c.bf16 %v9706_v27, %v9721_v6  ;;  %v13641_v56 = vld [vmem:[#allocation49_spill] sm:$0xff]  ;;  %v13642_v6 = vld [vmem:[#allocation48_spill] sm:$0xff]  ;;  %v13644_v27 = vld [vmem:[#allocation75_spill] sm:$0xff] }
 0x1e6   : > { %v7053_v10 = vpack.c.bf16 %v2672_v16, %v2660_v19  ;;  %v2696_v24 = vand.u32 4294901760, %v2695_v60  ;;  %v7055_v32 = vpack.c.bf16 %v2690_v38, %v2678_v21  ;;  %v7065_v38 = vpack.c.bf16 %v9604_v29, %v9627_v12  ;;  %v13643_v11 = vld [vmem:[#allocation44_spill] sm:$0xff] }
 0x1e7   : > { %2548 = vmatmul.mubr.f32.gmra.mrb[6].mxu0 %v2547_v0  ;;  %v7069_v9 = vpack.c.bf16 %v9647_v1, %v9653_v58  ;;  %v7071_v54 = vpack.c.bf16 %v9764_v34, %v9769_v28  ;;  %v7073_v59 = vpack.c.bf16 %v9734_v15, %v9739_v36  ;;  %v7075_v29 = vpack.c.bf16 %v13627_v49, %v9803_v23  ;;  %v13640_v58 = vld [vmem:[#allocation33_spill] sm:$0xff]  ;;  %v13646_v34 = vld [vmem:[#allocation76_spill] sm:$0xff] }
 0x1e8   : > { %7050 = vmatpush1.bf16.msra.mxu0 %v7049_v35  ;;  %2738 = vmatprep.mubr.f32.mxu0 %v13156_v46  ;;  %v7057_v47 = vpack.c.bf16 %v2696_v24, %v2684_v48  ;;  %v7077_v12 = vpack.c.bf16 %v13632_v30, %v13630_v4  ;;  %v7079_v1 = vpack.c.bf16 %v9883_v55, %v9888_v17  ;;  %v13645_v36 = vand.u32 4294901760, %v10090_v13  ;;  %v13647_v28 = vld [vmem:[#allocation77_spill] sm:$0xff]  ;;  %v13649_v55 = vld [vmem:[#allocation78_spill] sm:$0xff]  ;;  %v13650_v17 = vld [vmem:[#allocation79_spill] sm:$0xff] }
 0x1e9   : > { %7052 = vmatprep.subr.bf16.mxu0 %v7051_v5  ;;  %v7081_v15 = vpack.c.bf16 %v13638_v18, %v13636_v25  ;;  %v13648_v23 = vand.u32 4294901760, %v10122_v26  ;;  %v13651_v30 = vand.u32 4294901760, %v10159_v42  ;;  %v13653_v49 = vld [vmem:[#allocation81_spill] sm:$0xff]  ;;  %v13654_v4 = vand.u32 4294901760, %v10188_v51 }
 0x1ec   : > { %7054 = vmatpush1.bf16.msra.mxu0 %v7053_v10 }
 0x1ed   : > { %7056 = vmatprep.subr.bf16.mxu0 %v7055_v32 }
 0x1f0   : > { %7058 = vmatpush1.bf16.msra.mxu0 %v7057_v47 }
 0x1f1   : > { %7060 = vmatprep.subr.bf16.mxu0 %v7059_v41 }
 0x1f3   : > { %2740 = vmatmul.mubr.f32.vlgmr.msra.gmra.mrb[0].mxu0 %v10067_v20 }
 0x1f4   : > { %7062 = vmatpush1.bf16.msra.mxu0 %v7061_v7  ;;  %2745 = vmatprep.mubr.f32.mxu0 %v13156_v46 }
 0x1f5   : > { %7064 = vmatprep.subr.bf16.mxu0 %v7063_v45 }
 0x1f7   : > { %2747 = vmatmul.mubr.f32.gmra.mrb[2].mxu0 %v10092_v8 }
 0x1f8   : > { %7066 = vmatpush1.bf16.msra.mxu0 %v7065_v38  ;;  %2752 = vmatprep.mubr.f32.mxu0 %v13156_v46 }
 0x1f9   : > { %7068 = vmatprep.subr.bf16.mxu0 %v7067_v52 }
 0x1fb   : > { %2754 = vmatmul.mubr.f32.gmra.mrb[4].mxu0 %v10124_v3 }
 0x1fc   : > { %7070 = vmatpush1.bf16.msra.mxu0 %v7069_v9  ;;  %2759 = vmatprep.mubr.f32.mxu0 %v13156_v46 }
 0x1fd   : > { %7072 = vmatprep.subr.bf16.mxu0 %v7071_v54 }
 0x1ff   : > { %2761 = vmatmul.mubr.f32.gmra.mrb[6].mxu0 %v10161_v61 }
 0x200   : > { %7074 = vmatpush1.bf16.msra.mxu0 %v7073_v59  ;;  %2879 = vmatprep.mubr.f32.mxu0 %v13156_v46 }
 0x201   : > { %7076 = vmatprep.subr.bf16.mxu0 %v7075_v29 }
 0x204   : > { %7078 = vmatpush1.bf16.msra.mxu0 %v7077_v12  ;;  %v7912_v12 = vmov 0  }
 0x205   : > { %7080 = vmatprep.subr.bf16.mxu0 %v7079_v1  ;;  %7877 = vset.pattern.permute.xlu1 %v7912_v12 }
 0x206   : > { %7878 = vset.pattern.permute.xlu0 %v7912_v12 }
 0x208   : > { %7082 = vmatpush1.bf16.msra.mxu0 %v7081_v15 }
 0x209   : > { %7084 = vmatprep.subr.bf16.mxu0 %v10027_v37 }
 0x20b   : > { %2882 = vmatmul.mubr.f32.vlgmr.msra.gmra.mrb[0].mxu0 %v10090_v13  ;;  %v13652_v13 = vld [vmem:[#allocation80_spill] sm:$0xff] }
 0x20c   : > { %7086 = vmatpush1.bf16.msra.mxu0 %v10038_v39  ;;  %2887 = vmatprep.mubr.f32.mxu0 %v13156_v46 }
 0x20d   : > { %7088 = vmatprep.subr.bf16.mxu0 %v10045_v14 }
 0x20f   : > { %2890 = vmatmul.mubr.f32.gmra.mrb[2].mxu0 %v10122_v26  ;;  %v13655_v26 = vld [vmem:[#allocation82_spill] sm:$0xff] }
 0x210   : > { %7090 = vmatpush1.bf16.msra.mxu0 %v10058_v22  ;;  %2895 = vmatprep.mubr.f32.mxu0 %v13156_v46 }
 0x211   : > { %7092 = vmatprep.subr.bf16.mxu0 %v10064_v57 }
 0x213   : > { %2898 = vmatmul.mubr.f32.gmra.mrb[4].mxu0 %v10159_v42  ;;  %v13659_v42 = vld [vmem:[#allocation14_spill] sm:$0xff] }
 0x214   : > { %7094 = vmatpush1.bf16.msra.mxu0 %v10080_v62  ;;  %2903 = vmatprep.mubr.f32.mxu0 %v13156_v46 }
 0x215   : > { %7096 = vmatprep.subr.bf16.mxu0 %v10086_v31 }
 0x217   : > { %2906 = vmatmul.mubr.f32.gmra.mrb[6].mxu0 %v10188_v51 }
 0x218   : > { %7098 = vmatpush1.bf16.msra.mxu0 %v10111_v63  ;;  %3000 = vmatprep.mubr.f32.mxu0 %v13156_v46 }
 0x219   : > { %7100 = vmatprep.subr.bf16.mxu0 %v13640_v58 }
 0x21c   : > { %7102 = vmatpush1.bf16.msra.mxu0 %v13641_v56 }
 0x21d   : > { %7104 = vmatprep.subr.bf16.mxu0 %v13642_v6 }
 0x220   : > { %7106 = vmatpush1.bf16.msra.mxu0 %v13643_v11 }
 0x221   : > { %7108 = vmatprep.subr.bf16.mxu0 %v13644_v27 }
 0x223   : > { %3004 = vmatmul.mubr.f32.vlgmr.msra.gmra.mrb[0].mxu0 %v13645_v36 }
 0x224   : > { %7110 = vmatpush1.bf16.msra.mxu0 %v13646_v34  ;;  %3009 = vmatprep.mubr.f32.mxu0 %v13156_v46 }
 0x225   : > { %7112 = vmatprep.subr.bf16.mxu0 %v13647_v28  ;;  %v3375_v28 = vld [vmem:[%s12692_s2] sm:$0xff] }
 0x227   : > { %3013 = vmatmul.mubr.f32.gmra.mrb[2].mxu0 %v13648_v23 }
 0x228   : > { %7114 = vmatpush1.bf16.msra.mxu0 %v13649_v55  ;;  %3018 = vmatprep.mubr.f32.mxu0 %v13156_v46 }
 0x229   : > { %7116 = vmatprep.subr.bf16.mxu0 %v13650_v17 }
 0x22b   : > { %3022 = vmatmul.mubr.f32.gmra.mrb[4].mxu0 %v13651_v30 }
 0x22c   : > { %7118 = vmatpush1.bf16.msra.mxu0 %v13652_v13  ;;  %3027 = vmatprep.mubr.f32.mxu0 %v13156_v46  ;;  %v3376_v13 = vld [vmem:[%s12692_s2 + $0x8] sm:$0xff] }
 0x22d   : > { %7120 = vmatprep.subr.bf16.mxu0 %v13653_v49 }
 0x22f   : > { %3031 = vmatmul.mubr.f32.gmra.mrb[6].mxu0 %v13654_v4 }
 0x230   : > { %7122 = vmatpush1.bf16.msra.mxu0 %v13655_v26  ;;  %3173 = vmatprep.mubr.f32.mxu0 %v13156_v46  ;;  %v3419_v26 = vld [vmem:[%s12693_s3] sm:$0xff] }
 0x231   : > { %7124 = vmatprep.subr.bf16.mxu0 %v13656_v50 }
 0x234   : > { %7126 = vmatpush1.bf16.msra.mxu0 %v13657_v40  ;;  %v3420_v40 = vld [vmem:[%s12693_s3 + $0x8] sm:$0xff] }
 0x235   : > { %7128 = vmatprep.subr.bf16.mxu0 %v13658_v53  ;;  %v3421_v53 = vld [vmem:[%s12693_s3 + $0x10] sm:$0xff] }
 0x238   : > { %7130 = vmatpush1.bf16.msra.mxu0 %v13659_v42 }
 0x239   : > { %7132 = vmatprep.subr.bf16.mxu0 %v10027_v37 }
 0x23b   : > { %3175 = vmatmul.mubr.f32.vlgmr.msra.gmra.mrb[0].mxu0 %v10067_v20 }
 0x23c   : > { %7134 = vmatpush1.bf16.msra.mxu0 %v10038_v39  ;;  %3180 = vmatprep.mubr.f32.mxu0 %v13156_v46 }
 0x23d   : > { %7136 = vmatprep.subr.bf16.mxu0 %v10045_v14 }
 0x23f   : > { %3182 = vmatmul.mubr.f32.gmra.mrb[2].mxu0 %v10092_v8 }
 0x240   : > { %7138 = vmatpush1.bf16.msra.mxu0 %v10058_v22  ;;  %3187 = vmatprep.mubr.f32.mxu0 %v13156_v46 }
 0x241   : > { %7140 = vmatprep.subr.bf16.mxu0 %v10064_v57 }
 0x243   : > { %3189 = vmatmul.mubr.f32.gmra.mrb[4].mxu0 %v10124_v3 }
 0x244   : > { %7142 = vmatpush1.bf16.msra.mxu0 %v10080_v62  ;;  %3194 = vmatprep.mubr.f32.mxu0 %v13156_v46 }
 0x245   : > { %7144 = vmatprep.subr.bf16.mxu0 %v10086_v31 }
 0x247   : > { %3196 = vmatmul.mubr.f32.gmra.mrb[6].mxu0 %v10161_v61 }
 0x248   : > { %7146 = vmatpush1.bf16.msra.mxu0 %v10111_v63  ;;  %3290 = vmatprep.mubr.f32.mxu0 %v13156_v46 }
 0x249   : > { %7148 = vmatprep.subr.bf16.mxu0 %v13640_v58 }
 0x24c   : > { %7150 = vmatpush1.bf16.msra.mxu0 %v13641_v56 }
 0x24d   : > { %7152 = vmatprep.subr.bf16.mxu0 %v13642_v6 }
 0x250   : > { %7154 = vmatpush1.bf16.msra.mxu0 %v13643_v11 }
 0x253   : > { %3292 = vmatmul.mubr.f32.vlgmr.msra.gmra.mrb[0].mxu0 %v10067_v20 }
 0x254   : > { %3297 = vmatprep.mubr.f32.mxu0 %v13156_v46 }
 0x257   : > { %3299 = vmatmul.mubr.f32.gmra.mrb[2].mxu0 %v10092_v8 }
 0x258   : > { %3304 = vmatprep.mubr.f32.mxu0 %v13156_v46 }
 0x25b   : > { %3306 = vmatmul.mubr.f32.gmra.mrb[4].mxu0 %v10124_v3 }
 0x25c   : > { %3311 = vmatprep.mubr.f32.mxu0 %v13156_v46 }
 0x25f   : > { %3313 = vmatmul.mubr.f32.gmra.mrb[6].mxu0 %v10161_v61 }
 0x326   : > { %v3293_v37 = vpop.f32.mrb[0].mxu0 }
 0x327   : > { %v3295_v39 = vpop.f32.mrb[1].mxu0 }
 0x328   : > { %v3327_v14 = vadd.f32 %v3295_v39, %v3293_v37 }
 0x32a   : > { %3328 = vadd.xlane.f32.xlu0 %v3327_v14  ;;  %v3300_v22 = vpop.f32.mrb[2].mxu0 }
 0x32b   : > { %v3302_v57 = vpop.f32.mrb[3].mxu0 }
 0x32c   : > { %v3330_v62 = vadd.f32 %v3302_v57, %v3300_v22 }
 0x32e   : > { %3331 = vadd.xlane.f32.xlu1 %v3330_v62  ;;  %v3307_v20 = vpop.f32.mrb[4].mxu0  ;;  %v3422_v62 = vld [vmem:[%s12693_s3 + $0x18] sm:$0xff] }
 0x32f   : > { %v3309_v31 = vpop.f32.mrb[5].mxu0 }
 0x330   : > { %v3333_v63 = vadd.f32 %v3309_v31, %v3307_v20 }
 0x332   : > { %3334 = vadd.xlane.f32.xlu0 %v3333_v63  ;;  %v3314_v8 = vpop.f32.mrb[6].mxu0 }
 0x333   : > { %v3316_v51 = vpop.f32.mrb[7].mxu0 }
 0x334   : > { %v3336_v2 = vadd.f32 %v3316_v51, %v3314_v8 }
 0x336   : > { %3337 = vadd.xlane.f32.xlu0 %v3336_v2 }
 0x3b7   : > { %v3329_v3 = vpop.xlane.xlu0 %3328 }
 0x3b8   : > { %v3339_v0 = vmul.f32 0.00390625, %v3329_v3 }
 0x3ba   : > { %v10347_v19 = vsub.f32 %v3293_v37, %v3339_v0  ;;  %v10349_v61 = vsub.f32 %v3295_v39, %v3339_v0  ;;  %v3377_v37 = vld [vmem:[%s12692_s2 + $0x10] sm:$0xff] }
 0x3bb   : > { %v3332_v25 = vpop.xlane.xlu1 %3331 }
 0x3bc   : > { %v3340_v33 = vmul.f32 0.00390625, %v3332_v25  ;;  %v3351_v43 = vmul.f32 %v10347_v19, %v10347_v19  ;;  %v3352_v35 = vmul.f32 %v10349_v61, %v10349_v61 }
 0x3be   : > { %v10355_v16 = vsub.f32 %v3300_v22, %v3340_v33  ;;  %v10357_v18 = vsub.f32 %v3302_v57, %v3340_v33  ;;  %v3359_v44 = vadd.f32 %v3352_v35, %v3351_v43  ;;  %v3378_v22 = vld [vmem:[%s12692_s2 + $0x18] sm:$0xff] }
 0x3bf   : > { %v3335_v60 = vpop.xlane.xlu0 %3334 }
 0x3c0   : > { %v3341_v5 = vmul.f32 0.00390625, %v3335_v60  ;;  %3360 = vadd.xlane.f32.xlu1 %v3359_v44  ;;  %v3353_v21 = vmul.f32 %v10355_v16, %v10355_v16  ;;  %v3354_v48 = vmul.f32 %v10357_v18, %v10357_v18 }
 0x3c2   : > { %v10363_v10 = vsub.f32 %v3307_v20, %v3341_v5  ;;  %v10365_v24 = vsub.f32 %v3309_v31, %v3341_v5  ;;  %v3362_v32 = vadd.f32 %v3354_v48, %v3353_v21 }
 0x3c3   : > { %v3338_v47 = vpop.xlane.xlu0 %3337 }
 0x3c4   : > { %v3342_v41 = vmul.f32 0.00390625, %v3338_v47  ;;  %3363 = vadd.xlane.f32.xlu0 %v3362_v32  ;;  %v3355_v7 = vmul.f32 %v10363_v10, %v10363_v10  ;;  %v3356_v45 = vmul.f32 %v10365_v24, %v10365_v24 }
 0x3c6   : > { %v10371_v38 = vsub.f32 %v3314_v8, %v3342_v41  ;;  %v10373_v52 = vsub.f32 %v3316_v51, %v3342_v41  ;;  %v3365_v9 = vadd.f32 %v3356_v45, %v3355_v7 }
 0x3c8   : > { %3366 = vadd.xlane.f32.xlu1 %v3365_v9  ;;  %v3357_v54 = vmul.f32 %v10371_v38, %v10371_v38  ;;  %v3358_v59 = vmul.f32 %v10373_v52, %v10373_v52 }
 0x3ca   : > { %v3368_v29 = vadd.f32 %v3358_v59, %v3357_v54 }
 0x3cc   : > { %3369 = vadd.xlane.f32.xlu0 %v3368_v29 }
 0x44d   : > { %v3361_v1 = vpop.xlane.xlu1 %3360 }
 0x44e   : > { %v3371_v15 = vmul.f32 0.00390625, %v3361_v1 }
 0x450   : > { %v3379_v58 = vadd.f32 1e-05, %v3371_v15 }
 0x451   : > { %v3364_v56 = vpop.xlane.xlu0 %3363 }
 0x452   : > { %7879 = vrsqrt.f32 %v3379_v58  ;;  %v3372_v6 = vmul.f32 0.00390625, %v3364_v56 }
 0x454   : > { %v3380_v11 = vadd.f32 1e-05, %v3372_v6 }
 0x455   : > { %v3367_v27 = vpop.xlane.xlu1 %3366 }
 0x456   : > { %7881 = vrsqrt.f32 %v3380_v11  ;;  %v3373_v36 = vmul.f32 0.00390625, %v3367_v27 }
 0x458   : > { %v3381_v55 = vadd.f32 1e-05, %v3373_v36 }
 0x459   : > { %v3370_v34 = vpop.xlane.xlu0 %3369 }
 0x45a   : > { %v3374_v17 = vmul.f32 0.00390625, %v3370_v34  ;;  %7883 = vrsqrt.f32 %v3381_v55 }
 0x45c   : > { %v7880_v23 = vpop.eup %7879  ;;  %v3382_v4 = vadd.f32 1e-05, %v3374_v17 }
 0x45d   : > { %v3387_v30 = vmul.f32 %v7880_v23, %v3375_v28 }
 0x45e   : > { %7885 = vrsqrt.f32 %v3382_v4 }
 0x45f   : > { %3393 = vperm.xlu1 %7877, %v3387_v30  }
 0x460   : > { %v7882_v49 = vpop.eup %7881 }
 0x461   : > { %v3388_v50 = vmul.f32 %v7882_v49, %v3376_v13 }
 0x463   : > { %3425 = vperm.xlu1 %7877, %v3419_v26   ;;  %3398 = vperm.xlu0 %7878, %v3388_v50  }
 0x464   : > { %v7884_v42 = vpop.eup %7883 }
 0x465   : > { %v3389_v39 = vmul.f32 %v7884_v42, %v3377_v37 }
 0x467   : > { %3430 = vperm.xlu1 %7877, %v3420_v40  }
 0x468   : > { %v7886_v14 = vpop.eup %7885 }
 0x469   : > { %v3390_v57 = vmul.f32 %v7886_v14, %v3378_v22 }
 0x46b   : > { %3435 = vperm.xlu1 %7877, %v3421_v53  }
 0x46f   : > { %3403 = vperm.xlu1 %7877, %v3389_v39  }
 0x473   : > { %3408 = vperm.xlu1 %7877, %v3390_v57  }
 0x477   : > { %3440 = vperm.xlu1 %7877, %v3422_v62  }
 0x4de   : > { %v3394_v20 = vpop.permute.xlu1 %3393 }
 0x4df   : > { %v3411_v31 = vmul.f32 %v3394_v20, %v10347_v19  ;;  %v3412_v63 = vmul.f32 %v3394_v20, %v10349_v61 }
 0x4e2   : > { %v3426_v8 = vpop.permute.xlu1 %3425  ;;  %v3399_v51 = vpop.permute.xlu0 %3398 }
 0x4e3   : > { %v3443_v2 = vadd.f32 %v3426_v8, %v3411_v31  ;;  %v3444_v3 = vadd.f32 %v3426_v8, %v3412_v63  ;;  %v3413_v0 = vmul.f32 %v3399_v51, %v10355_v16  ;;  %v3414_v25 = vmul.f32 %v3399_v51, %v10357_v18 }
 0x4e5   : > { %vm3451_vm8 = vcmp.ge.f32.partialorder %v3443_v2, 0.0  ;;  %vm3452_vm0 = vcmp.ge.f32.partialorder %v3444_v3, 0.0  ;;  %v3459_v33 = vmul.f32 0.01, %v3443_v2  ;;  %v3460_v43 = vmul.f32 0.01, %v3444_v3 }
 0x4e6   : > { %v3431_v35 = vpop.permute.xlu1 %3430 }
 0x4e7   : > { %v10407_v44 = vsel %vm3451_vm8, %v3443_v2, %v3459_v33  ;;  %v10409_v60 = vsel %vm3452_vm0, %v3444_v3, %v3460_v43  ;;  %v3445_v19 = vadd.f32 %v3431_v35, %v3413_v0  ;;  %v3446_v5 = vadd.f32 %v3431_v35, %v3414_v25  ;;  %v13664_v0 = vld [vmem:[#allocation2_spill] sm:$0xff] }
 0x4e8   : > { %3583 = vrot.lane.b32.xlu0 %v10409_v60, %s7903_s30  ;;  %3575 = vrot.lane.b32.xlu1 %v10407_v44, %s7903_s30  ;;  %v3672_v61 = vand.u32 4294901760, %v10409_v60  ;;  %v3674_v16 = vand.u32 4294901760, %v10407_v44 }
 0x4e9   : > { %vm3453_vm3 = vcmp.ge.f32.partialorder %v3445_v19, 0.0  ;;  %vm3454_vm7 = vcmp.ge.f32.partialorder %v3446_v5, 0.0  ;;  %v3461_v18 = vmul.f32 0.01, %v3445_v19  ;;  %v3462_v21 = vmul.f32 0.01, %v3446_v5 }
 0x4ea   : > { %v3436_v48 = vpop.permute.xlu1 %3435  ;;  %v10427_v7 = vsub.f32 %v10409_v60, %v3672_v61  ;;  %v10433_v9 = vsub.f32 %v10407_v44, %v3674_v16 }
 0x4eb   : > { %v10417_v32 = vsel %vm3453_vm3, %v3445_v19, %v3461_v18  ;;  %v10419_v47 = vsel %vm3454_vm7, %v3446_v5, %v3462_v21 }
 0x4ec   : > { %3577 = vrot.lane.b32.xlu1 %v10417_v32, %s7903_s30  ;;  %v3676_v41 = vand.u32 4294901760, %v10419_v47  ;;  %v3678_v45 = vand.u32 4294901760, %v10417_v32  ;;  %v3839_v15 = vand.u32 4294901760, %v10427_v7  ;;  %v3845_v56 = vand.u32 4294901760, %v10433_v9 }
 0x4ee   : > { %v3404_v54 = vpop.permute.xlu1 %3403  ;;  %v10438_v59 = vsub.f32 %v10419_v47, %v3676_v41  ;;  %v10443_v29 = vsub.f32 %v10417_v32, %v3678_v45  ;;  %v10719_v43 = vsub.f32 %v10427_v7, %v3839_v15 }
 0x4ef   : > { %v3415_v12 = vmul.f32 %v3404_v54, %v10363_v10  ;;  %v3416_v1 = vmul.f32 %v3404_v54, %v10365_v24 }
 0x4f0   : > { %3585 = vrot.lane.b32.xlu1 %v10419_v47, %s7903_s30  ;;  %v12932_v58 = vand.u32 4294901760, %v10438_v59  ;;  %v12927_v6 = vand.u32 4294901760, %v10443_v29 }
 0x4f1   : > { %v3447_v11 = vadd.f32 %v3436_v48, %v3415_v12  ;;  %v3448_v27 = vadd.f32 %v3436_v48, %v3416_v1 }
 0x4f2   : > { %v3409_v36 = vpop.permute.xlu1 %3408  ;;  %v10457_v10 = vpack.c.bf16 %v12932_v58, %v3839_v15  ;;  %v10463_v24 = vpack.c.bf16 %v12927_v6, %v3845_v56  ;;  %v10737_v15 = vpack.c.bf16 %v3676_v41, %v3672_v61 }
 0x4f3   : > { %vm3455_vm7 = vcmp.ge.f32.partialorder %v3447_v11, 0.0  ;;  %vm3456_vm8 = vcmp.ge.f32.partialorder %v3448_v27, 0.0  ;;  %v3463_v34 = vmul.f32 0.01, %v3447_v11  ;;  %v3464_v28 = vmul.f32 0.01, %v3448_v27 }
 0x4f4   : > { %13660 = vst [vmem:[#allocation18_spill] sm:$0xff] %v10457_v10  ;;  %13661 = vst [vmem:[#allocation63_spill] sm:$0xff] %v10463_v24  ;;  %v3417_v17 = vmul.f32 %v3409_v36, %v10371_v38  ;;  %v3418_v30 = vmul.f32 %v3409_v36, %v10373_v52 }
 0x4f5   : > { %v10465_v23 = vsel %vm3455_vm7, %v3447_v11, %v3463_v34  ;;  %v10467_v55 = vsel %vm3456_vm8, %v3448_v27, %v3464_v28  ;;  %vm13665_vm7 = vcmp.lt.s32.totalorder %v13664_v0, 1  ;;  %13681 = vst [vmem:[#allocation66_spill] sm:$0xff] %v10737_v15 }
 0x4f6   : > { %3579 = vrot.lane.b32.xlu0 %v10465_v23, %s7903_s30  ;;  %v3441_v13 = vpop.permute.xlu1 %3440  ;;  %v3680_v26 = vand.u32 4294901760, %v10467_v55  ;;  %v3682_v50 = vand.u32 4294901760, %v10465_v23  ;;  %vm13666_vm8 = vmmov %vm13665_vm7 }
 0x4f7   : > { %v3449_v49 = vadd.f32 %v3441_v13, %v3417_v17  ;;  %v3450_v4 = vadd.f32 %v3441_v13, %v3418_v30 }
 0x4f8   : > { %v10487_v37 = vsub.f32 %v10467_v55, %v3680_v26  ;;  %v10493_v14 = vsub.f32 %v10465_v23, %v3682_v50 }
 0x4f9   : > { %vm3457_vm0 = vcmp.ge.f32.partialorder %v3449_v49, 0.0  ;;  %vm3458_vm3 = vcmp.ge.f32.partialorder %v3450_v4, 0.0  ;;  %v3465_v40 = vmul.f32 0.01, %v3449_v49  ;;  %v3466_v53 = vmul.f32 0.01, %v3450_v4 }
 0x4fa   : > { %3587 = vrot.lane.b32.xlu0 %v10467_v55, %s7903_s30  ;;  %v12925_v62 = vand.u32 4294901760, %v10487_v37  ;;  %v12924_v31 = vand.u32 4294901760, %v10493_v14 }
 0x4fb   : > { %v10477_v38 = vsel %vm3457_vm0, %v3449_v49, %v3465_v40  ;;  %v10479_v52 = vsel %vm3458_vm3, %v3450_v4, %v3466_v53  ;;  %vm13669_vm0 = vmmov %vm13665_vm7 }
 0x4fc   : > { %3581 = vrot.lane.b32.xlu1 %v10477_v38, %s7903_s30  ;;  %v3684_v42 = vand.u32 4294901760, %v10479_v52  ;;  %v12933_v39 = vand.u32 4294901760, %v10477_v38  ;;  %vm13670_vm3 = vmmov %vm13669_vm0 }
 0x4fe   : > { %3607 = vrot.lane.b32.xlu0 %v10407_v44, %s7904_s8  ;;  %v10500_v22 = vsub.f32 %v10479_v52, %v3684_v42  ;;  %v10505_v57 = vsub.f32 %v10477_v38, %v12933_v39 }
 0x500   : > { %3589 = vrot.lane.b32.xlu1 %v10479_v52, %s7903_s30  ;;  %v12926_v20 = vand.u32 4294901760, %v10500_v22  ;;  %v12923_v63 = vand.u32 4294901760, %v10505_v57 }
 0x502   : > { %3615 = vrot.lane.b32.xlu0 %v10409_v60, %s7904_s8  ;;  %v10519_v8 = vpack.c.bf16 %v12926_v20, %v12925_v62  ;;  %v10525_v51 = vpack.c.bf16 %v12923_v63, %v12924_v31 }
 0x504   : > { %13662 = vst [vmem:[#allocation16_spill] sm:$0xff] %v10519_v8  ;;  %13663 = vst [vmem:[#allocation31_spill] sm:$0xff] %v10525_v51  ;;  %3609 = vrot.lane.b32.xlu1 %v10417_v32, %s7904_s8 }
 0x506   : > { %3611 = vrot.lane.b32.xlu0 %v10465_v23, %s7904_s8 }
 0x508   : > { %3617 = vrot.lane.b32.xlu1 %v10419_v47, %s7904_s8 }
 0x50a   : > { %3619 = vrot.lane.b32.xlu0 %v10467_v55, %s7904_s8 }
 0x50c   : > { %3613 = vrot.lane.b32.xlu1 %v10477_v38, %s7904_s8 }
 0x50e   : > { %3475 = vrot.lane.b32.xlu0 %v10407_v44, %s7906_s9 }
 0x510   : > { %3621 = vrot.lane.b32.xlu1 %v10479_v52, %s7904_s8 }
 0x512   : > { %3483 = vrot.lane.b32.xlu0 %v10409_v60, %s7906_s9 }
 0x514   : > { %3477 = vrot.lane.b32.xlu1 %v10417_v32, %s7906_s9 }
 0x516   : > { %3479 = vrot.lane.b32.xlu0 %v10465_v23, %s7906_s9 }
 0x518   : > { %3485 = vrot.lane.b32.xlu1 %v10419_v47, %s7906_s9 }
 0x51a   : > { %3487 = vrot.lane.b32.xlu0 %v10467_v55, %s7906_s9 }
 0x51c   : > { %3509 = vrot.lane.b32.xlu1 %v10417_v32, %s7907_s10 }
 0x51e   : > { %3507 = vrot.lane.b32.xlu0 %v10407_v44, %s7907_s10 }
 0x520   : > { %3517 = vrot.lane.b32.xlu1 %v10419_v47, %s7907_s10 }
 0x522   : > { %3515 = vrot.lane.b32.xlu0 %v10409_v60, %s7907_s10 }
 0x524   : > { %3541 = vrot.lane.b32.xlu1 %v10417_v32, %s7908_s11 }
 0x526   : > { %3511 = vrot.lane.b32.xlu0 %v10465_v23, %s7907_s10 }
 0x528   : > { %3549 = vrot.lane.b32.xlu1 %v10419_v47, %s7908_s11 }
 0x52a   : > { %3519 = vrot.lane.b32.xlu0 %v10467_v55, %s7907_s10 }
 0x52c   : > { %3481 = vrot.lane.b32.xlu1 %v10477_v38, %s7906_s9 }
 0x52e   : > { %3539 = vrot.lane.b32.xlu0 %v10407_v44, %s7908_s11 }
 0x530   : > { %3489 = vrot.lane.b32.xlu1 %v10479_v52, %s7906_s9  ;;  %s12671_s9 = scalar_lea.vmem %s12697_s7, %s6721_s26 }
 0x532   : > { %3547 = vrot.lane.b32.xlu0 %v10409_v60, %s7908_s11 }
 0x534   : > { %3513 = vrot.lane.b32.xlu1 %v10477_v38, %s7907_s10 }
 0x536   : > { %3543 = vrot.lane.b32.xlu0 %v10465_v23, %s7908_s11 }
 0x538   : > { %3521 = vrot.lane.b32.xlu1 %v10479_v52, %s7907_s10 }
 0x53a   : > { %3551 = vrot.lane.b32.xlu0 %v10467_v55, %s7908_s11 }
 0x53c   : > { %3545 = vrot.lane.b32.xlu1 %v10477_v38, %s7908_s11 }
 0x53e   : > { %5464 = vrot.lane.b32.xlu0 %v10407_v44, %s7909_s20 }
 0x540   : > { %3553 = vrot.lane.b32.xlu1 %v10479_v52, %s7908_s11 }
 0x542   : > { %5472 = vrot.lane.b32.xlu0 %v10409_v60, %s7909_s20 }
 0x544   : > { %5466 = vrot.lane.b32.xlu1 %v10417_v32, %s7909_s20 }
 0x546   : > { %5468 = vrot.lane.b32.xlu0 %v10465_v23, %s7909_s20 }
 0x548   : > { %5474 = vrot.lane.b32.xlu1 %v10419_v47, %s7909_s20 }
 0x54a   : > { %5476 = vrot.lane.b32.xlu0 %v10467_v55, %s7909_s20 }
 0x54c   : > { %5498 = vrot.lane.b32.xlu1 %v10417_v32, %s7910_s21 }
 0x54e   : > { %5496 = vrot.lane.b32.xlu0 %v10407_v44, %s7910_s21 }
 0x550   : > { %5506 = vrot.lane.b32.xlu1 %v10419_v47, %s7910_s21 }
 0x552   : > { %5504 = vrot.lane.b32.xlu0 %v10409_v60, %s7910_s21 }
 0x554   : > { %5530 = vrot.lane.b32.xlu1 %v10417_v32, %s7911_s22 }
 0x556   : > { %5500 = vrot.lane.b32.xlu0 %v10465_v23, %s7910_s21 }
 0x558   : > { %5538 = vrot.lane.b32.xlu1 %v10419_v47, %s7911_s22 }
 0x55a   : > { %5508 = vrot.lane.b32.xlu0 %v10467_v55, %s7910_s21  ;;  %v3576_v2 = vpop.permute.xlu1 %3575  ;;  %v3584_v3 = vpop.permute.xlu0 %3583 }
 0x55b   : > { %v3591_v25 = vsel %vm13665_vm7, %v3576_v2, %v3584_v3  ;;  %v3595_v33 = vsel %vm13666_vm8, %v3584_v3, %v3576_v2  ;;  %vm13673_vm7 = vcmask 785408   ;;  %vm13674_vm8 = vmmov %vm13669_vm0 }
 0x55c   : > { %5470 = vrot.lane.b32.xlu1 %v10477_v38, %s7909_s20  ;;  %v3599_v35 = vsel %vm8082_vm1, %v3595_v33, 0.0  ;;  %v3600_v5 = vsel %vm8086_vm2, %v3591_v25, 0.0 }
 0x55d   : > { %v3656_v21 = vand.u32 4294901760, %v3600_v5  ;;  %v3658_v48 = vand.u32 4294901760, %v3599_v35 }
 0x55e   : > { %5528 = vrot.lane.b32.xlu0 %v10407_v44, %s7911_s22  ;;  %v3578_v18 = vpop.permute.xlu1 %3577 }
 0x55f   : > { %v10641_v36 = vsub.f32 %v3600_v5, %v3656_v21  ;;  %v10643_v34 = vsub.f32 %v3599_v35, %v3658_v48 }
 0x560   : > { %5478 = vrot.lane.b32.xlu1 %v10479_v52, %s7909_s20 }
 0x561   : > { %v12931_v53 = vand.u32 4294901760, %v10641_v36  ;;  %v12928_v2 = vand.u32 4294901760, %v10643_v34  ;;  %v13700_v51 = vand.u32 4294901760, %v10641_v36 }
 0x562   : > { %5536 = vrot.lane.b32.xlu0 %v10409_v60, %s7911_s22  ;;  %v3586_v54 = vpop.permute.xlu1 %3585 }
 0x563   : > { %v3592_v12 = vsel %vm13669_vm0, %v3578_v18, %v3586_v54  ;;  %v3596_v1 = vsel %vm13670_vm3, %v3586_v54, %v3578_v18  ;;  %v6711_v18 = vld [vmem:[%s12694_s4 + $0x20] sm:$0xff]  ;;  %vm13675_vm3 = vmmov %vm13669_vm0 }
 0x564   : > { %v3601_v11 = vsel %vm8082_vm1, %v3596_v1, 0.0  ;;  %v3602_v27 = vsel %vm8086_vm2, %v3592_v12, 0.0  ;;  %5502 = vrot.lane.b32.xlu1 %v10477_v38, %s7910_s21 }
 0x565   : > { %v3660_v28 = vand.u32 4294901760, %v3602_v27  ;;  %v3662_v17 = vand.u32 4294901760, %v3601_v11 }
 0x566   : > { %5532 = vrot.lane.b32.xlu0 %v10465_v23, %s7911_s22 }
 0x567   : > { %v10647_v30 = vsub.f32 %v3602_v27, %v3660_v28  ;;  %v10649_v13 = vsub.f32 %v3601_v11, %v3662_v17  ;;  %v10651_v49 = vpack.c.bf16 %v3660_v28, %v3656_v21  ;;  %v10653_v4 = vpack.c.bf16 %v3662_v17, %v3658_v48  ;;  %v6712_v11 = vld [vmem:[%s12694_s4 + $0x28] sm:$0xff] }
 0x568   : > { %5510 = vrot.lane.b32.xlu1 %v10479_v52, %s7910_s21  ;;  %v3580_v40 = vpop.permute.xlu0 %3579  ;;  %v3645_v48 = vsel %vm13673_vm7, %v6711_v18, 0  ;;  %vm13676_vm7 = vmmov %vm13669_vm0 }
 0x569   : > { %v12930_v3 = vand.u32 4294901760, %v10647_v30  ;;  %v12929_v25 = vand.u32 4294901760, %v10649_v13  ;;  %7156 = vmatprep.subr.bf16.mxu1 %v10651_v49  ;;  %v10692_v28 = vand.u32 4294901760, %v3645_v48 }
 0x56a   : > { %5540 = vrot.lane.b32.xlu0 %v10467_v55, %s7911_s22  ;;  %7158 = vmatpush1.bf16.msra.mxu1 %v10653_v4 }
 0x56b   : > { %v10669_v33 = vpack.c.bf16 %v12930_v3, %v12931_v53  ;;  %v10675_v35 = vpack.c.bf16 %v12929_v25, %v12928_v2  ;;  %v6714_v53 = vld [vmem:[%s12694_s4 + $0x38] sm:$0xff] }
 0x56c   : > { %5534 = vrot.lane.b32.xlu1 %v10477_v38, %s7911_s22  ;;  %v3588_v5 = vpop.permute.xlu0 %3587 }
 0x56d   : > { %13671 = vst [vmem:[#allocation26_spill] sm:$0xff] %v10669_v33  ;;  %13672 = vst [vmem:[#allocation50_spill] sm:$0xff] %v10675_v35  ;;  %v3593_v54 = vsel %vm13674_vm8, %v3580_v40, %v3588_v5  ;;  %v3597_v12 = vsel %vm13669_vm0, %v3588_v5, %v3580_v40  ;;  %vm13677_vm8 = vcmask 785408  }
 0x56e   : > { %v3582_v21 = vpop.permute.xlu1 %3581  ;;  %v10696_v17 = vsel %vm8082_vm1, %v3597_v12, 0.0  ;;  %v3604_v18 = vsel %vm8086_vm2, %v3593_v54, 0.0  ;;  %v3648_v20 = vsel %vm13677_vm8, %v6712_v11, 0  ;;  %v6713_v54 = vld [vmem:[%s12694_s4 + $0x30] sm:$0xff] }
 0x56f   : > { %v3664_v2 = vand.u32 4294901760, %v3604_v18  ;;  %v3666_v25 = vand.u32 4294901760, %v10696_v17  ;;  %v10721_v19 = vand.u32 4294901760, %v3648_v20 }
 0x570   : > { %5542 = vrot.lane.b32.xlu1 %v10479_v52, %s7911_s22  ;;  %v3608_v1 = vpop.permute.xlu0 %3607 }
 0x571   : > { %v10839_v24 = vsub.f32 %v10696_v17, %v3666_v25  ;;  %v13704_v17 = vand.u32 4294901760, %v10649_v13 }
 0x572   : > { %v3590_v27 = vpop.permute.xlu1 %3589 }
 0x573   : > { %v3594_v40 = vsel %vm13675_vm3, %v3582_v21, %v3590_v27  ;;  %v3598_v5 = vsel %vm13676_vm7, %v3590_v27, %v3582_v21  ;;  %v10714_v21 = vsub.f32 %v3645_v48, %v10692_v28 }
 0x574   : > { %v3605_v63 = vsel %vm8082_vm1, %v3598_v5, 0.0  ;;  %v3606_v31 = vsel %vm8086_vm2, %v3594_v40, 0.0  ;;  %v3616_v62 = vpop.permute.xlu0 %3615  ;;  %v10730_v5 = vsub.f32 %v10433_v9, %v3845_v56  ;;  %vm13680_vm1 = vmmov %vm13677_vm8  ;;  %vm13682_vm2 = vcmp.lt.s32.totalorder %v13664_v0, 127 }
 0x575   : > { %v3668_v12 = vand.u32 4294901760, %v3606_v31  ;;  %v3670_v6 = vand.u32 4294901760, %v3605_v63  ;;  %v3651_v48 = vsel %vm13680_vm1, %v6713_v54, 0  ;;  %v3627_v58 = vsel %vm13682_vm2, %v3616_v62, %v3608_v1  ;;  %vm13684_vm0 = vmmov %vm13682_vm2 }
 0x576   : > { %v3610_v3 = vpop.permute.xlu1 %3609  ;;  %v10749_v56 = vpack.c.bf16 %v3678_v45, %v3674_v16  ;;  %vm13685_vm3 = vmmov %vm13684_vm0  ;;  %v10759_v54 = vsub.f32 %v3648_v20, %v10721_v19  ;;  %v10761_v44 = vand.u32 4294901760, %v3651_v48  ;;  %v10776_v20 = vsel %vm8185_vm6, %v3627_v58, 0.0 }
 0x577   : > { %v10723_v27 = vpack.c.bf16 %v3668_v12, %v3664_v2  ;;  %v10725_v40 = vpack.c.bf16 %v3670_v6, %v3666_v25  ;;  %vm13687_vm7 = vmmov %vm13684_vm0  ;;  %v10795_v60 = vsub.f32 %v3606_v31, %v3668_v12  ;;  %v13695_v23 = vand.u32 4294901760, %v10714_v21 }
 0x578   : > { %v3612_v11 = vpop.permute.xlu0 %3611  ;;  %13683 = vst [vmem:[#allocation64_spill] sm:$0xff] %v10749_v56  ;;  %13686 = vst [vmem:[#allocation12_spill] sm:$0xff] %v10759_v54  ;;  %v3623_v16 = vsel %vm13687_vm7, %v3608_v1, %v3616_v62  ;;  %v10782_v62 = vpack.c.bf16 %v3684_v42, %v3680_v26  ;;  %v10814_v31 = vsub.f32 %v3651_v48, %v10761_v44 }
 0x579   : > { %13678 = vst [vmem:[#allocation65_spill] sm:$0xff] %v10723_v27  ;;  %13679 = vst [vmem:[#allocation29_spill] sm:$0xff] %v10725_v40  ;;  %7160 = vmatprep.subr.bf16.mxu1 %v10723_v27  ;;  %v10829_v42 = vsub.f32 %v3605_v63, %v3670_v6 }
 0x57a   : > { %v3618_v39 = vpop.permute.xlu1 %3617  ;;  %7162 = vmatpush1.bf16.msra.mxu1 %v10725_v40  ;;  %vm13689_vm8 = vmmov %vm13680_vm1  ;;  %13690 = vst [vmem:[#allocation27_spill] sm:$0xff] %v10782_v62 }
 0x57b   : > { %v3624_v47 = vsel %vm13684_vm0, %v3610_v3, %v3618_v39  ;;  %v3628_v41 = vsel %vm13685_vm3, %v3618_v39, %v3610_v3  ;;  %7164 = vmatprep.subr.bf16.mxu1 %v10737_v15  ;;  %v10772_v39 = vsel %vm13689_vm8, %v6714_v53, 0  ;;  %v13691_v3 = vand.u32 4294901760, %v10477_v38  ;;  %vm13697_vm1 = vmmov %vm13684_vm0 }
 0x57c   : > { %v10767_v45 = vsel %vm8185_vm6, %v3628_v41, 0.0  ;;  %v3620_v61 = vpop.permute.xlu0 %3619  ;;  %v13693_v41 = vand.u32 4294901760, %v10438_v59  ;;  %v10799_v55 = vsel %vm8181_vm5, %v3624_v47, 0.0  ;;  %v10805_v38 = vsub.f32 %v10714_v21, %v13695_v23  ;;  %vm13698_vm2 = vmmov %vm13684_vm0 }
 0x57d   : > { %v10788_v1 = vpack.c.bf16 %v13691_v3, %v3682_v50  ;;  %v3692_v26 = vand.u32 4294901760, %v10767_v45  ;;  %v10809_v50 = vsel %vm8181_vm5, %v3623_v16, 0.0  ;;  %v10817_v12 = vand.u32 4294901760, %v10772_v39  ;;  %vm13703_vm3 = vmmov %vm13684_vm0 }
 0x57e   : > { %v10793_v53 = vsub.f32 %v10438_v59, %v13693_v41  ;;  %v3614_v52 = vpop.permute.xlu1 %3613  ;;  %7166 = vmatpush1.bf16.msra.mxu1 %v10749_v56  ;;  %v10819_v47 = vsub.f32 %v3604_v18, %v3664_v2  ;;  %v3688_v3 = vand.u32 4294901760, %v10776_v20  ;;  %v3625_v41 = vsel %vm13697_vm1, %v3612_v11, %v3620_v61 }
 0x57f   : > { %13692 = vst [vmem:[#allocation22_spill] sm:$0xff] %v10788_v1  ;;  %13696 = vst [vmem:[#allocation35_spill] sm:$0xff] %v10817_v12  ;;  %v3629_v16 = vsel %vm13698_vm2, %v3620_v61, %v3612_v11  ;;  %7168 = vmatprep.subr.bf16.mxu1 %v10782_v62  ;;  %v3694_v48 = vand.u32 4294901760, %v10799_v55  ;;  %v3792_v2 = vsub.f32 %v10641_v36, %v13700_v51  ;;  %v13701_v18 = vand.u32 4294901760, %v10647_v30 }
 0x580   : > { %v10827_v23 = vpop.permute.xlu0 %3475  ;;  %v10843_v6 = vpack.c.bf16 %v3692_v26, %v3688_v3  ;;  %v10847_v63 = vsel %vm8181_vm5, %v3625_v41, 0.0  ;;  %v10851_v51 = vsel %vm8185_vm6, %v3629_v16, 0.0  ;;  %v3810_v11 = vsub.f32 %v10649_v13, %v13704_v17 }
 0x581   : > { %13699 = vst [vmem:[#allocation23_spill] sm:$0xff] %v10827_v23  ;;  %v3804_v8 = vsub.f32 %v10647_v30, %v13701_v18  ;;  %v13706_v17 = vand.u32 4294901760, %v10809_v50  ;;  %v3696_v58 = vand.u32 4294901760, %v10851_v51  ;;  %v13715_v56 = vand.u32 4294901760, %v10847_v63 }
 0x582   : > { %v3622_v10 = vpop.permute.xlu1 %3621  ;;  %13702 = vst [vmem:[#allocation36_spill] sm:$0xff] %v10843_v6  ;;  %7170 = vmatpush1.bf16.msra.mxu1 %v10788_v1  ;;  %v3793_v1 = vand.u32 4294901760, %v3792_v2  ;;  %v3811_v15 = vand.u32 4294901760, %v3810_v11 }
 0x583   : > { %v3626_v18 = vsel %vm13684_vm0, %v3614_v52, %v3622_v10  ;;  %v3630_v25 = vsel %vm13703_vm3, %v3622_v10, %v3614_v52  ;;  %7172 = vmatprep.subr.bf16.mxu1 %v10843_v6  ;;  %v10875_v23 = vpack.c.bf16 %v3694_v48, %v13706_v17  ;;  %v3805_v32 = vand.u32 4294901760, %v3804_v8 }
 0x584   : > { %v10864_v41 = vsel %vm8181_vm5, %v3626_v18, 0.0  ;;  %v3638_v16 = vsel %vm8185_vm6, %v3630_v25, 0.0  ;;  %v10869_v35 = vpop.permute.xlu0 %3483  ;;  %v13709_v25 = vand.u32 4294901760, %v10795_v60  ;;  %v13710_v10 = vand.u32 4294901760, %v10643_v34 }
 0x585   : > { %13705 = vst [vmem:[#allocation11_spill] sm:$0xff] %v10869_v35  ;;  %v3700_v52 = vand.u32 4294901760, %v3638_v16  ;;  %v3702_v33 = vand.u32 4294901760, %v10864_v41  ;;  %13707 = vst [vmem:[#allocation37_spill] sm:$0xff] %v10875_v23  ;;  %v13711_v17 = vand.u32 4294901760, %v10443_v29  ;;  %v13712_v18 = vand.u32 4294901760, %v10759_v54 }
 0x586   : > { %v10879_v61 = vpop.permute.xlu1 %3477  ;;  %v3828_v35 = vsub.f32 %v10795_v60, %v13709_v25  ;;  %v3798_v6 = vsub.f32 %v10643_v34, %v13710_v10  ;;  %7174 = vmatpush1.bf16.msra.mxu1 %v10875_v23  ;;  %v13717_v23 = vand.u32 4294901760, %v10819_v47  ;;  %v7179_v2 = vpack.c.bf16 %v3805_v32, %v3793_v1 }
 0x587   : > { %13708 = vst [vmem:[#allocation38_spill] sm:$0xff] %v10879_v61  ;;  %v10892_v62 = vsub.f32 %v10443_v29, %v13711_v17  ;;  %v3759_v8 = vsub.f32 %v10759_v54, %v13712_v18  ;;  %v10899_v25 = vpack.c.bf16 %v3700_v52, %v3696_v58  ;;  %v10903_v10 = vpack.c.bf16 %v3702_v33, %v13715_v56 }
 0x588   : > { %v10897_v61 = vpop.permute.xlu0 %3479  ;;  %v3816_v0 = vsub.f32 %v10819_v47, %v13717_v23  ;;  %v13718_v17 = vand.u32 4294901760, %v10829_v42  ;;  %v3749_v18 = vand.u32 4294901760, %v10805_v38  ;;  %v10914_v54 = vsub.f32 %v10767_v45, %v3692_v26 }
 0x589   : > { %13713 = vst [vmem:[#allocation34_spill] sm:$0xff] %v10897_v61  ;;  %13714 = vst [vmem:[#allocation8_spill] sm:$0xff] %v10899_v25  ;;  %7176 = vmatprep.subr.bf16.mxu1 %v10899_v25  ;;  %v3829_v27 = vand.u32 4294901760, %v3828_v35  ;;  %v10921_v23 = vsub.f32 %v10772_v39, %v10817_v12  ;;  %v3799_v11 = vand.u32 4294901760, %v3798_v6  ;;  %v3853_v45 = vand.u32 4294901760, %v10793_v53 }
 0x58a   : > { %13716 = vst [vmem:[#allocation47_spill] sm:$0xff] %v10903_v10  ;;  %v3834_v40 = vsub.f32 %v10829_v42, %v13718_v17  ;;  %v10917_v56 = vpop.permute.xlu1 %3485  ;;  %v13721_v17 = vand.u32 4294901760, %v10839_v24  ;;  %7178 = vmatpush1.bf16.msra.mxu1 %v10903_v10  ;;  %v3859_v26 = vand.u32 4294901760, %v10892_v62  ;;  %v10930_v61 = vsub.f32 %v10776_v20, %v3688_v3 }
 0x58b   : > { %13719 = vst [vmem:[#allocation28_spill] sm:$0xff] %v10917_v56  ;;  %13720 = vst [vmem:[#allocation17_spill] sm:$0xff] %v10921_v23  ;;  %7180 = vmatprep.subr.bf16.mxu1 %v7179_v2  ;;  %v3817_v1 = vand.u32 4294901760, %v3816_v0  ;;  %v13723_v39 = vand.u32 4294901760, %v10500_v22  ;;  %v3760_v32 = vand.u32 4294901760, %v3759_v8  ;;  %v7181_v10 = vpack.c.bf16 %v3811_v15, %v3799_v11 }
 0x58c   : > { %v3822_v38 = vsub.f32 %v10839_v24, %v13721_v17  ;;  %v10932_v35 = vpop.permute.xlu0 %3487  ;;  %v3835_v25 = vand.u32 4294901760, %v3834_v40  ;;  %v10938_v17 = vsub.f32 %v10799_v55, %v3694_v48  ;;  %v13724_v53 = vand.u32 4294901760, %v10814_v31 }
 0x58d   : > { %13722 = vst [vmem:[#allocation13_spill] sm:$0xff] %v10932_v35  ;;  %v3876_v6 = vsub.f32 %v10500_v22, %v13723_v39  ;;  %v3899_v20 = vand.u32 4294901760, %v10914_v54  ;;  %v10944_v3 = vsub.f32 %v3638_v16, %v3700_v52  ;;  %3750 = vmatmul.mubr.f32.vlgmr.msra.gmra.mrb[0].mxu1 %v3749_v18  ;;  %v7183_v0 = vpack.c.bf16 %v3829_v27, %v3817_v1 }
 0x58e   : > { %v3770_v62 = vsub.f32 %v10814_v31, %v13724_v53  ;;  %v10946_v2 = vpop.permute.xlu1 %3509  ;;  %v12961_v39 = vand.u32 4294901760, %v10921_v23  ;;  %v3823_v8 = vand.u32 4294901760, %v3822_v38  ;;  %v13726_v40 = vand.u32 4294901760, %v10809_v50  ;;  %7182 = vmatpush1.bf16.msra.mxu1 %v7181_v10  ;;  %3755 = vmatprep.mubr.f32.mxu1 %v13156_v46 }
 0x58f   : > { %13725 = vst [vmem:[#allocation24_spill] sm:$0xff] %v10946_v2  ;;  %v13727_v15 = vand.u32 4294901760, %v10719_v43  ;;  %v13728_v11 = vand.u32 4294901760, %v10487_v37  ;;  %v3887_v27 = vand.u32 4294901760, %v10930_v61  ;;  %v10962_v52 = vsub.f32 %v10851_v51, %v3696_v58  ;;  %7184 = vmatprep.subr.bf16.mxu1 %v7183_v0 }
 0x590   : > { %v10952_v55 = vsub.f32 %v10809_v50, %v13726_v40  ;;  %v10964_v18 = vpop.permute.xlu0 %3507  ;;  %v13730_v50 = vand.u32 4294901760, %v10493_v14  ;;  %v13731_v43 = vand.u32 4294901760, %v10505_v57  ;;  %v10974_v1 = vsub.f32 %v10864_v41, %v3702_v33 }
 0x591   : > { %v7187_v48 = vpack.c.bf16 %v3853_v45, %v13727_v15  ;;  %v3864_v16 = vsub.f32 %v10487_v37, %v13728_v11  ;;  %13729 = vst [vmem:[#allocation67_spill] sm:$0xff] %v10964_v18  ;;  %v3905_v45 = vand.u32 4294901760, %v10938_v17  ;;  %v7185_v53 = vpack.c.bf16 %v3835_v25, %v3823_v8  ;;  %3761 = vmatmul.mubr.f32.gmra.mrb[2].mxu1 %v3760_v32 }
 0x592   : > { %v3870_v10 = vsub.f32 %v10493_v14, %v13730_v50  ;;  %v3882_v38 = vsub.f32 %v10505_v57, %v13731_v43  ;;  %v3877_v40 = vand.u32 4294901760, %v3876_v6  ;;  %v3923_v51 = vand.u32 4294901760, %v10944_v3  ;;  %v10977_v58 = vpop.permute.xlu1 %3517  ;;  %3766 = vmatprep.mubr.f32.mxu1 %v13156_v46 }
 0x593   : > { %13732 = vst [vmem:[#allocation68_spill] sm:$0xff] %v10977_v58  ;;  %v3900_v0 = vsub.f32 %v10914_v54, %v3899_v20  ;;  %v3771_v15 = vand.u32 4294901760, %v3770_v62  ;;  %v3781_v11 = vsub.f32 %v10921_v23, %v12961_v39  ;;  %v3893_v50 = vand.u32 4294901760, %v10952_v55  ;;  %7186 = vmatpush1.bf16.msra.mxu1 %v7185_v53 }
 0x594   : > { %v13733_v43 = vand.u32 4294901760, %v10847_v63  ;;  %v13734_v41 = vand.u32 4294901760, %v10730_v5  ;;  %v3865_v6 = vand.u32 4294901760, %v3864_v16  ;;  %v3911_v32 = vand.u32 4294901760, %v10962_v52  ;;  %7188 = vmatprep.subr.bf16.mxu1 %v7187_v48  ;;  %v10992_v62 = vpop.permute.xlu0 %3515 }
 0x595   : > { %13735 = vst [vmem:[#allocation69_spill] sm:$0xff] %v10992_v62  ;;  %v3883_v8 = vand.u32 4294901760, %v3882_v38  ;;  %v3888_v39 = vsub.f32 %v10930_v61, %v3887_v27  ;;  %v13736_v35 = vand.u32 4294901760, %v10819_v47  ;;  %v3906_v5 = vsub.f32 %v10938_v17, %v3905_v45  ;;  %3772 = vmatmul.mubr.f32.gmra.mrb[4].mxu1 %v3771_v15 }
 0x596   : > { %v10987_v33 = vsub.f32 %v10847_v63, %v13733_v43  ;;  %v7189_v25 = vpack.c.bf16 %v3859_v26, %v13734_v41  ;;  %v13737_v63 = vand.u32 4294901760, %v10795_v60  ;;  %v3929_v26 = vand.u32 4294901760, %v10974_v1  ;;  %v11004_v48 = vpop.permute.xlu1 %3541  ;;  %3777 = vmatprep.mubr.f32.mxu1 %v13156_v46 }
 0x597   : > { %v7191_v16 = vpack.c.bf16 %v3877_v40, %v3865_v6  ;;  %v3871_v53 = vand.u32 4294901760, %v3870_v10  ;;  %13739 = vst [vmem:[#allocation71_spill] sm:$0xff] %v11004_v48  ;;  %v3901_v41 = vand.u32 4294901760, %v3900_v0  ;;  %v3924_v38 = vsub.f32 %v10944_v3, %v3923_v51 }
 0x598   : > { %v11000_v43 = vpack.c.bf16 %v13737_v63, %v13736_v35  ;;  %v3782_v56 = vand.u32 4294901760, %v3781_v11  ;;  %v13740_v23 = vand.u32 4294901760, %v10839_v24  ;;  %v13741_v18 = vand.u32 4294901760, %v10829_v42  ;;  %7190 = vmatpush1.bf16.msra.mxu1 %v7189_v25  ;;  %v11016_v10 = vpop.permute.xlu0 %3511 }
 0x599   : > { %v3894_v35 = vsub.f32 %v10952_v55, %v3893_v50  ;;  %v3917_v63 = vand.u32 4294901760, %v10987_v33  ;;  %7192 = vmatprep.subr.bf16.mxu1 %v7191_v16  ;;  %13743 = vst [vmem:[#allocation25_spill] sm:$0xff] %v11016_v10  ;;  %v7193_v40 = vpack.c.bf16 %v3883_v8, %v3871_v53  ;;  %v3889_v0 = vand.u32 4294901760, %v3888_v39 }
 0x59a   : > { %13738 = vst [vmem:[#allocation70_spill] sm:$0xff] %v11000_v43  ;;  %v11011_v62 = vpack.c.bf16 %v13741_v18, %v13740_v23  ;;  %v3912_v15 = vsub.f32 %v10962_v52, %v3911_v32  ;;  %v11019_v11 = vpack.c.bf16 %v3899_v20, %v3887_v27  ;;  %v3907_v6 = vand.u32 4294901760, %v3906_v5  ;;  %v11026_v43 = vpop.permute.xlu1 %3549  ;;  %3783 = vmatmul.mubr.f32.gmra.mrb[6].mxu1 %v3782_v56 }
 0x59b   : > { %v3930_v23 = vsub.f32 %v10974_v1, %v3929_v26  ;;  %v11022_v18 = vpack.c.bf16 %v3905_v45, %v3893_v50  ;;  %13744 = vst [vmem:[#allocation73_spill] sm:$0xff] %v11026_v43  ;;  %v7195_v25 = vpack.c.bf16 %v3901_v41, %v3889_v0  ;;  %v3925_v48 = vand.u32 4294901760, %v3924_v38  ;;  %3973 = vmatprep.mubr.f32.mxu1 %v13156_v46 }
 0x59c   : > { %13742 = vst [vmem:[#allocation72_spill] sm:$0xff] %v11011_v62  ;;  %v11024_v62 = vpack.c.bf16 %v3923_v51, %v3911_v32  ;;  %v11028_v16 = vpack.c.bf16 %v3929_v26, %v3917_v63  ;;  %v3895_v8 = vand.u32 4294901760, %v3894_v35  ;;  %v3918_v39 = vsub.f32 %v10987_v33, %v3917_v63  ;;  %7194 = vmatpush1.bf16.msra.mxu1 %v7193_v40  ;;  %v11032_v20 = vpop.permute.xlu0 %3519 }
 0x59d   : > { %7196 = vmatprep.subr.bf16.mxu1 %v7195_v25  ;;  %13745 = vst [vmem:[#allocation74_spill] sm:$0xff] %v11032_v20  ;;  %v3913_v27 = vand.u32 4294901760, %v3912_v15  ;;  %v3931_v45 = vand.u32 4294901760, %v3930_v23  ;;  %v7203_v41 = vpack.c.bf16 %v10647_v30, %v10641_v36  ;;  %v7205_v35 = vpack.c.bf16 %v10649_v13, %v10643_v34  ;;  %v13753_v15 = vld [vmem:[#allocation66_spill] sm:$0xff] }
 0x59e   : > { %v7197_v51 = vpack.c.bf16 %v3907_v6, %v3895_v8  ;;  %v11034_v50 = vpop.permute.xlu1 %3481  ;;  %v3919_v5 = vand.u32 4294901760, %v3918_v39  ;;  %v7209_v36 = vpack.c.bf16 %v10829_v42, %v10839_v24  ;;  %v7211_v34 = vpack.c.bf16 %v10438_v59, %v10427_v7  ;;  %v13754_v23 = vld [vmem:[#allocation2_spill] sm:$0xff]  ;;  %v13756_v39 = vld [vmem:[#allocation64_spill] sm:$0xff] }
 0x59f   : > { %v7199_v32 = vpack.c.bf16 %v3925_v48, %v3913_v27  ;;  %v7207_v48 = vpack.c.bf16 %v10795_v60, %v10819_v47  ;;  %v7213_v60 = vpack.c.bf16 %v10443_v29, %v10433_v9  ;;  %v7215_v24 = vpack.c.bf16 %v10500_v22, %v10487_v37  ;;  %v13757_v27 = vld [vmem:[#allocation69_spill] sm:$0xff] }
 0x5a0   : > { %7198 = vmatpush1.bf16.msra.mxu1 %v7197_v51  ;;  %v11036_v56 = vpop.permute.xlu0 %3539  ;;  %v7201_v26 = vpack.c.bf16 %v3931_v45, %v3919_v5  ;;  %v7217_v59 = vpack.c.bf16 %v10505_v57, %v10493_v14  ;;  %v7219_v9 = vpack.c.bf16 %v10914_v54, %v10930_v61  ;;  %v7221_v37 = vpack.c.bf16 %v10938_v17, %v10952_v55  ;;  %v13758_v45 = vld [vmem:[#allocation67_spill] sm:$0xff] }
 0x5a1   : > { %7200 = vmatprep.subr.bf16.mxu1 %v7199_v32  ;;  %13746 = vst [vmem:[#allocation32_spill] sm:$0xff] %v11036_v56  ;;  %v7223_v14 = vpack.c.bf16 %v10944_v3, %v10962_v52  ;;  %v7225_v54 = vpack.c.bf16 %v10974_v1, %v10987_v33  ;;  %v13750_v3 = vld [vmem:[#allocation65_spill] sm:$0xff]  ;;  %v13751_v1 = vld [vmem:[#allocation12_spill] sm:$0xff]  ;;  %vm13755_vm5 = vcmp.lt.s32.totalorder %v13754_v23, 16  ;;  %v13760_v32 = vld [vmem:[#allocation27_spill] sm:$0xff]  ;;  %vm13762_vm7 = vcmp.lt.s32.totalorder %v13754_v23, 15 }
 0x5a2   : > { %v11038_v53 = vpop.permute.xlu1 %3489  ;;  %v13752_v33 = vld [vmem:[#allocation29_spill] sm:$0xff]  ;;  %v3524_v25 = vsel %vm13755_vm5, %v10946_v2, %v10977_v58  ;;  %vm13759_vm6 = vmmov %vm13755_vm5  ;;  %v13761_v5 = vld [vmem:[#allocation71_spill] sm:$0xff]  ;;  %vm13775_vm1 = vcmp.lt.s32.totalorder %v13754_v23, 17 }
 0x5a3   : > { %v3523_v51 = vsel %vm13759_vm6, %v13758_v45, %v13757_v27  ;;  %vm13765_vm8 = vmmov %vm13755_vm5  ;;  %v13776_v58 = vld [vmem:[#allocation37_spill] sm:$0xff]  ;;  %v13778_v2 = vld [vmem:[#allocation8_spill] sm:$0xff] }
 0x5a4   : > { %7202 = vmatpush1.bf16.msra.mxu1 %v7201_v26  ;;  %v11042_v38 = vpop.permute.xlu0 %3547  ;;  %v3556_v26 = vsel %vm13762_vm7, %v13761_v5, %v11026_v43  ;;  %v13773_v5 = vld [vmem:[#allocation28_spill] sm:$0xff]  ;;  %vm13777_vm2 = vmmov %vm13762_vm7  ;;  %v13780_v27 = vld [vmem:[#allocation23_spill] sm:$0xff] }
 0x5a5   : > { %7204 = vmatprep.subr.bf16.mxu1 %v7203_v41  ;;  %13747 = vst [vmem:[#allocation56_spill] sm:$0xff] %v11042_v38  ;;  %vm13781_vm0 = vmmov %vm13775_vm1 }
 0x5a6   : > { %v11046_v63 = vpop.permute.xlu1 %3513  ;;  %vm13783_vm3 = vmmov %vm13755_vm5 }
 0x5a7   : > { %13748 = vst [vmem:[#allocation42_spill] sm:$0xff] %v11046_v63  ;;  %3975 = vmatmul.mubr.f32.vlgmr.msra.gmra.mrb[0].mxu1 %v10692_v28  ;;  %vm13784_vm5 = vmmov %vm13781_vm0 }
 0x5a8   : > { %7206 = vmatpush1.bf16.msra.mxu1 %v7205_v35  ;;  %3980 = vmatprep.mubr.f32.mxu1 %v13156_v46  ;;  %v11052_v40 = vpop.permute.xlu0 %3543  ;;  %v11135_v35 = vsel %vm8558_vm9, %v3524_v25, 0.0  ;;  %vm13790_vm6 = vmmov %vm13777_vm2 }
 0x5a9   : > { %7208 = vmatprep.subr.bf16.mxu1 %v7207_v48  ;;  %13764 = vst [vmem:[#allocation52_spill] sm:$0xff] %v11135_v35  ;;  %v3525_v48 = vsel %vm13765_vm8, %v11016_v10, %v11032_v20  ;;  %v13774_v20 = vld [vmem:[#allocation38_spill] sm:$0xff]  ;;  %vm13792_vm7 = vmmov %vm13781_vm0 }
 0x5aa   : > { %v11056_v30 = vpop.permute.xlu1 %3521  ;;  %vm13801_vm8 = vmmov %vm13781_vm0 }
 0x5ab   : > { %13749 = vst [vmem:[#allocation55_spill] sm:$0xff] %v11056_v30  ;;  %3982 = vmatmul.mubr.f32.gmra.mrb[2].mxu1 %v10721_v19 }
 0x5ac   : > { %7210 = vmatpush1.bf16.msra.mxu1 %v7209_v36  ;;  %3987 = vmatprep.mubr.f32.mxu1 %v13156_v46  ;;  %v11062_v13 = vpop.permute.xlu0 %3551 }
 0x5ad   : > { %7212 = vmatprep.subr.bf16.mxu1 %v7211_v34  ;;  %v13766_v34 = vld [vmem:[#allocation17_spill] sm:$0xff] }
 0x5ae   : > { %v11066_v47 = vpop.permute.xlu1 %3545 }
 0x5af   : > { %3989 = vmatmul.mubr.f32.gmra.mrb[4].mxu1 %v10761_v44 }
 0x5b0   : > { %7214 = vmatpush1.bf16.msra.mxu1 %v7213_v60  ;;  %3994 = vmatprep.mubr.f32.mxu1 %v13156_v46  ;;  %v11072_v7 = vpop.permute.xlu0 %5464  ;;  %v11146_v60 = vsel %vm8558_vm9, %v3523_v51, 0.0  ;;  %v13779_v51 = vld [vmem:[#allocation11_spill] sm:$0xff] }
 0x5b1   : > { %7216 = vmatprep.subr.bf16.mxu1 %v7215_v24  ;;  %13767 = vst [vmem:[#allocation60_spill] sm:$0xff] %v11146_v60  ;;  %v13768_v24 = vld [vmem:[#allocation22_spill] sm:$0xff]  ;;  %v3491_v45 = vsel %vm13781_vm0, %v13780_v27, %v13779_v51 }
 0x5b2   : > { %v11076_v42 = vpop.permute.xlu1 %3553 }
 0x5b3   : > { %3996 = vmatmul.mubr.f32.gmra.mrb[6].mxu1 %v10817_v12 }
 0x5b4   : > { %7218 = vmatpush1.bf16.msra.mxu1 %v7217_v59  ;;  %4114 = vmatprep.mubr.f32.mxu1 %v13156_v46  ;;  %v11082_v29 = vpop.permute.xlu0 %5472  ;;  %v13824_v59 = vld [vmem:[#allocation46_spill] sm:$0xff] }
 0x5b5   : > { %7220 = vmatprep.subr.bf16.mxu1 %v7219_v9  ;;  %v11152_v9 = vsel %vm8833_vm15, %v3556_v26, 0.0  ;;  %v3492_v26 = vsel %vm13775_vm1, %v13774_v20, %v13773_v5  ;;  %vm13806_vm1 = vmmov %vm13777_vm2 }
 0x5b6   : > { %v11086_v22 = vpop.permute.xlu1 %5466  ;;  %13770 = vst [vmem:[#allocation61_spill] sm:$0xff] %v11152_v9  ;;  %v3558_v41 = vsel %vm13806_vm1, %v11066_v47, %v11076_v42 }
 0x5b8   : > { %7222 = vmatpush1.bf16.msra.mxu1 %v7221_v37  ;;  %v11090_v57 = vpop.permute.xlu0 %5468  ;;  %v13771_v37 = vld [vmem:[#allocation36_spill] sm:$0xff] }
 0x5b9   : > { %7224 = vmatprep.subr.bf16.mxu1 %v7223_v14  ;;  %v3526_v14 = vsel %vm13783_vm3, %v11046_v63, %v11056_v30  ;;  %vm13809_vm3 = vcmp.lt.s32.totalorder %v13754_v23, 113 }
 0x5ba   : > { %v11094_v61 = vpop.permute.xlu1 %5474 }
 0x5bc   : > { %7226 = vmatpush1.bf16.msra.mxu1 %v7225_v54  ;;  %v11097_v0 = vpop.permute.xlu0 %5476  ;;  %v11158_v54 = vsel %vm8558_vm9, %v3525_v48, 0.0  ;;  %v3555_v48 = vsel %vm13777_vm2, %v11036_v56, %v11042_v38  ;;  %v3496_v38 = vsel %vm13784_vm5, %v13773_v5, %v13774_v20  ;;  %v3557_v20 = vsel %vm13790_vm6, %v11052_v40, %v11062_v13  ;;  %vm13810_vm5 = vmmov %vm13809_vm3  ;;  %v3571_v56 = vld [vmem:[%s12694_s4] sm:$0xff] }
 0x5bd   : > { %7228 = vmatprep.subr.bf16.mxu1 %v10651_v49  ;;  %13772 = vst [vmem:[#allocation53_spill] sm:$0xff] %v11158_v54  ;;  %v11212_v63 = vsel %vm8833_vm15, %v3555_v48, 0.0  ;;  %v13794_v48 = vand.u32 4294901760, %v11158_v54  ;;  %vm13814_vm6 = vmmov %vm13809_vm3 }
 0x5be   : > { %v11099_v17 = vpop.permute.xlu1 %5498  ;;  %13789 = vst [vmem:[#allocation9_spill] sm:$0xff] %v11212_v63 }
 0x5bf   : > { %4117 = vmatmul.mubr.f32.vlgmr.msra.gmra.mrb[0].mxu1 %v10714_v21 }
 0x5c0   : > { %7230 = vmatpush1.bf16.msra.mxu1 %v10653_v4  ;;  %4122 = vmatprep.mubr.f32.mxu1 %v13156_v46  ;;  %v11105_v55 = vpop.permute.xlu0 %5496 }
 0x5c1   : > { %7232 = vmatprep.subr.bf16.mxu1 %v13750_v3 }
 0x5c2   : > { %v11107_v52 = vpop.permute.xlu1 %5506 }
 0x5c3   : > { %4125 = vmatmul.mubr.f32.gmra.mrb[2].mxu1 %v13751_v1 }
 0x5c4   : > { %7234 = vmatpush1.bf16.msra.mxu1 %v13752_v33  ;;  %4130 = vmatprep.mubr.f32.mxu1 %v13156_v46  ;;  %v11120_v8 = vpop.permute.xlu0 %5504 }
 0x5c5   : > { %7236 = vmatprep.subr.bf16.mxu1 %v13753_v15 }
 0x5c6   : > { %v11113_v6 = vpop.permute.xlu1 %5530 }
 0x5c7   : > { %4133 = vmatmul.mubr.f32.gmra.mrb[4].mxu1 %v10814_v31 }
 0x5c8   : > { %7238 = vmatpush1.bf16.msra.mxu1 %v13756_v39  ;;  %4138 = vmatprep.mubr.f32.mxu1 %v13156_v46  ;;  %v11160_v25 = vpop.permute.xlu0 %5500 }
 0x5c9   : > { %7240 = vmatprep.subr.bf16.mxu1 %v13760_v32  ;;  %v11243_v32 = vsel %vm8568_vm10, %v3496_v38, 0.0 }
 0x5ca   : > { %v11141_v36 = vpop.permute.xlu1 %5538  ;;  %13798 = vst [vmem:[#allocation59_spill] sm:$0xff] %v11243_v32 }
 0x5cb   : > { %4141 = vmatmul.mubr.f32.gmra.mrb[6].mxu1 %v13766_v34 }
 0x5cc   : > { %7242 = vmatpush1.bf16.msra.mxu1 %v13768_v24  ;;  %4235 = vmatprep.mubr.f32.mxu1 %v13156_v46  ;;  %v11218_v5 = vpop.permute.xlu0 %5508 }
 0x5cd   : > { %7244 = vmatprep.subr.bf16.mxu1 %v13771_v37  ;;  %v13782_v37 = vand.u32 4294901760, %v11135_v35 }
 0x5ce   : > { %v11163_v43 = vpop.permute.xlu1 %5470 }
 0x5cf   : > { %v11184_v10 = vsub.f32 %v11135_v35, %v13782_v37  ;;  %v13788_v35 = vand.u32 4294901760, %v11152_v9 }
 0x5d0   : > { %7246 = vmatpush1.bf16.msra.mxu1 %v13776_v58  ;;  %v13787_v58 = vand.u32 4294901760, %v11146_v60 }
 0x5d1   : > { %7248 = vmatprep.subr.bf16.mxu1 %v13778_v2  ;;  %v11196_v2 = vsel %vm8587_vm11, %v3492_v26, 0.0  ;;  %v11208_v30 = vsub.f32 %v11152_v9, %v13788_v35  ;;  %v11225_v26 = vsel %vm13792_vm7, %v13779_v51, %v13780_v27  ;;  %v11229_v35 = vsel %vm8587_vm11, %v3491_v45, 0.0  ;;  %v13799_v51 = vld [vmem:[#allocation13_spill] sm:$0xff]  ;;  %v13800_v45 = vld [vmem:[#allocation34_spill] sm:$0xff]  ;;  %vm13815_vm7 = vmmov %vm13809_vm3 }
 0x5d2   : > { %13786 = vst [vmem:[#allocation57_spill] sm:$0xff] %v11196_v2  ;;  %v11201_v24 = vsub.f32 %v11146_v60, %v13787_v58  ;;  %v11203_v37 = vpop.permute.xlu1 %5478  ;;  %v13791_v58 = vld [vmem:[#allocation47_spill] sm:$0xff]  ;;  %13793 = vst [vmem:[#allocation58_spill] sm:$0xff] %v11229_v35  ;;  %v11234_v9 = vsub.f32 %v11158_v54, %v13794_v48  ;;  %v11238_v60 = vsel %vm8558_vm9, %v3526_v14, 0.0  ;;  %v11250_v35 = vsel %vm13801_vm8, %v13800_v45, %v13799_v51 }
 0x5d3   : > { %13795 = vst [vmem:[#allocation3_spill] sm:$0xff] %v11238_v60  ;;  %13802 = vst [vmem:[#allocation43_spill] sm:$0xff] %v11250_v35  ;;  %v13805_v27 = vand.u32 4294901760, %v10714_v21  ;;  %v5481_v14 = vsel %vm13814_vm6, %v11086_v22, %v11094_v61  ;;  %v11321_v48 = vsel %vm8833_vm15, %v3558_v41, 0.0  ;;  %v13821_v35 = vand.u32 4294901760, %v11238_v60 }
 0x5d4   : > { %7250 = vmatpush1.bf16.msra.mxu1 %v13791_v58  ;;  %v13796_v58 = vld [vmem:[#allocation26_spill] sm:$0xff]  ;;  %vm13803_vm9 = vmmov %vm13777_vm2  ;;  %13818 = vst [vmem:[#allocation48_spill] sm:$0xff] %v11321_v48 }
 0x5d5   : > { %7252 = vmatprep.subr.bf16.mxu1 %v13796_v58  ;;  %v3561_v38 = vsel %vm13803_vm9, %v11062_v13, %v11052_v40  ;;  %v11261_v58 = vsel %vm8833_vm15, %v3557_v20, 0.0  ;;  %vm13807_vm2 = vmmov %vm13806_vm1  ;;  %v13808_v13 = vld [vmem:[#allocation50_spill] sm:$0xff]  ;;  %v11282_v20 = vsel %vm13781_vm0, %v11034_v50, %v11038_v53  ;;  %vm13825_vm15 = vnez %v13824_v59 }
 0x5d6   : > { %13804 = vst [vmem:[#allocation21_spill] sm:$0xff] %v11261_v58  ;;  %v3562_v40 = vsel %vm13807_vm2, %v11076_v42, %v11066_v47  ;;  %v5484_v47 = vsel %vm13810_vm5, %v11082_v29, %v11072_v7  ;;  %v11292_v42 = vpop.permute.xlu1 %5502  ;;  %v11297_v21 = vsel %vm8805_vm14, %v3561_v38, 0.0  ;;  %vm13819_vm8 = vmmov %vm13809_vm3  ;;  %vm13831_vm1 = vcmp.lt.s32.totalorder %v13754_v23, 112 }
 0x5d7   : > { %4239 = vmatmul.mubr.f32.vlgmr.msra.gmra.mrb[0].mxu1 %v13805_v27  ;;  %v5480_v27 = vsel %vm13809_vm3, %v11072_v7, %v11082_v29  ;;  %13813 = vst [vmem:[#allocation33_spill] sm:$0xff] %v11297_v21  ;;  %v5485_v7 = vsel %vm13815_vm7, %v11094_v61, %v11086_v22  ;;  %v11308_v29 = vpop.permute.xlu0 %5528  ;;  %v11317_v38 = vsel %vm8805_vm14, %v3562_v40, 0.0  ;;  %v5486_v22 = vsel %vm13819_vm8, %v11097_v0, %v11090_v57  ;;  %vm13827_vm9 = vmmov %vm13809_vm3 }
 0x5d8   : > { %7254 = vmatpush1.bf16.msra.mxu1 %v13808_v13  ;;  %4244 = vmatprep.mubr.f32.mxu1 %v13156_v46  ;;  %v13811_v13 = vld [vmem:[#allocation70_spill] sm:$0xff]  ;;  %13817 = vst [vmem:[#allocation49_spill] sm:$0xff] %v11317_v38  ;;  %v13820_v61 = vand.u32 4294901760, %v13751_v1  ;;  %v11336_v40 = vsel %vm9391_vm4, %v5480_v27, 0.0  ;;  %v11340_v41 = vsel %vm13825_vm15, %v5484_v47, 0.0  ;;  %v5482_v54 = vsel %vm13827_vm9, %v11090_v57, %v11097_v0  ;;  %v13828_v1 = vld [vmem:[#allocation72_spill] sm:$0xff]  ;;  %vm13835_vm2 = vmmov %vm13781_vm0 }
 0x5d9   : > { %7256 = vmatprep.subr.bf16.mxu1 %v13811_v13  ;;  %v13816_v13 = vand.u32 4294901760, %v11212_v63  ;;  %13823 = vst [vmem:[#allocation44_spill] sm:$0xff] %v11336_v40  ;;  %13826 = vst [vmem:[#allocation75_spill] sm:$0xff] %v11340_v41  ;;  %v11354_v27 = vsel %vm13825_vm15, %v5485_v7, 0.0  ;;  %v5517_v47 = vsel %vm13831_vm1, %v11107_v52, %v11099_v17  ;;  %v13833_v57 = vand.u32 4294901760, %v11261_v58 }
 0x5da   : > { %13830 = vst [vmem:[#allocation77_spill] sm:$0xff] %v11354_v27  ;;  %v11371_v7 = vsel %vm13825_vm15, %v5486_v22, 0.0  ;;  %vm13839_vm0 = vmmov %vm13831_vm1  ;;  %v11397_v51 = vsel %vm9363_vm12, %v5517_v47, 0.0  ;;  %v13855_v45 = vand.u32 4294901760, %v11354_v27  ;;  %vm13864_vm7 = vcmp.lt.s32.totalorder %v13754_v23, 111 }
 0x5db   : > { %v11313_v2 = vsub.f32 %v11212_v63, %v13816_v13  ;;  %4248 = vmatmul.mubr.f32.gmra.mrb[2].mxu1 %v13820_v61  ;;  %v11332_v13 = vsub.f32 %v11238_v60, %v13821_v35  ;;  %v11350_v35 = vsel %vm9391_vm4, %v5481_v14, 0.0  ;;  %v13832_v60 = vld [vmem:[#allocation18_spill] sm:$0xff]  ;;  %v11365_v0 = vsub.f32 %v11261_v58, %v13833_v57  ;;  %13834 = vst [vmem:[#allocation78_spill] sm:$0xff] %v11371_v7  ;;  %v11385_v14 = vpop.permute.xlu1 %5510  ;;  %v13842_v61 = vld [vmem:[#allocation63_spill] sm:$0xff]  ;;  %vm13859_vm5 = vmmov %vm13839_vm0 }
 0x5dc   : > { %7258 = vmatpush1.bf16.msra.mxu1 %v13828_v1  ;;  %13829 = vst [vmem:[#allocation76_spill] sm:$0xff] %v11350_v35  ;;  %4253 = vmatprep.mubr.f32.mxu1 %v13156_v46  ;;  %v11383_v57 = vsel %vm9391_vm4, %v5482_v54, 0.0  ;;  %v13838_v1 = vand.u32 4294901760, %v10814_v31  ;;  %13841 = vst [vmem:[#allocation81_spill] sm:$0xff] %v11397_v51  ;;  %v11399_v54 = vpop.permute.xlu0 %5536  ;;  %v13843_v58 = vand.u32 4294901760, %v11297_v21  ;;  %v13846_v31 = vand.u32 4294901760, %v11317_v38 }
 0x5dd   : > { %7260 = vmatprep.subr.bf16.mxu1 %v13832_v60  ;;  %v11377_v60 = vsel %vm13835_vm2, %v11038_v53, %v11034_v50  ;;  %13837 = vst [vmem:[#allocation80_spill] sm:$0xff] %v11383_v57  ;;  %v5513_v50 = vsel %vm13839_vm0, %v11099_v17, %v11107_v52  ;;  %v13844_v52 = vld [vmem:[#allocation16_spill] sm:$0xff]  ;;  %vm13860_vm6 = vmmov %vm13839_vm0  ;;  %vm13877_vm1 = vcmp.lt.s32.totalorder %v13754_v23, 113  ;;  %v13888_v59 = vand.u32 4294901760, %v11201_v24 }
 0x5de   : > { %13836 = vst [vmem:[#allocation79_spill] sm:$0xff] %v11377_v60  ;;  %v11408_v22 = vsub.f32 %v11297_v21, %v13843_v58  ;;  %v13845_v60 = vand.u32 4294901760, %v11321_v48  ;;  %v13847_v58 = vand.u32 4294901760, %v11340_v41  ;;  %v13851_v21 = vld [vmem:[#allocation10_spill] sm:$0xff]  ;;  %vm13865_vm8 = vmmov %vm13864_vm7  ;;  %v13894_v32 = vand.u32 4294901760, %v11332_v13 }
 0x5df   : > { %4257 = vmatmul.mubr.f32.gmra.mrb[4].mxu1 %v13838_v1  ;;  %v11421_v1 = vsub.f32 %v11317_v38, %v13846_v31  ;;  %vm13852_vm3 = vnez %v13851_v21  ;;  %v13854_v31 = vand.u32 4294901760, %v13766_v34  ;;  %v11444_v38 = vsub.f32 %v11354_v27, %v13855_v45  ;;  %vm13878_vm2 = vmmov %vm13877_vm1 }
 0x5e0   : > { %7262 = vmatpush1.bf16.msra.mxu1 %v13842_v61  ;;  %4262 = vmatprep.mubr.f32.mxu1 %v13156_v46  ;;  %v11416_v61 = vsub.f32 %v11321_v48, %v13845_v60  ;;  %v11427_v17 = vsub.f32 %v11340_v41, %v13847_v58  ;;  %v11436_v60 = vsel %vm13852_vm3, %v5513_v50, 0.0  ;;  %v13857_v58 = vand.u32 4294901760, %v11350_v35 }
 0x5e1   : > { %7264 = vmatprep.subr.bf16.mxu1 %v13844_v52  ;;  %v13849_v52 = vand.u32 4294901760, %v11336_v40  ;;  %13853 = vst [vmem:[#allocation84_spill] sm:$0xff] %v11436_v60  ;;  %13856 = vst [vmem:[#allocation30_spill] sm:$0xff] %v11444_v38  ;;  %v5512_v50 = vsel %vm13859_vm5, %v11105_v55, %v11120_v8  ;;  %v5516_v34 = vsel %vm13860_vm6, %v11120_v8, %v11105_v55  ;;  %v5535_v55 = vpop.permute.xlu1 %5534 }
 0x5e2   : > { %13848 = vst [vmem:[#allocation82_spill] sm:$0xff] %v11427_v17  ;;  %v11449_v41 = vsub.f32 %v11350_v35, %v13857_v58  ;;  %v5545_v58 = vsel %vm13864_vm7, %v11113_v6, %v11141_v36  ;;  %v5549_v35 = vsel %vm13865_vm8, %v11141_v36, %v11113_v6  ;;  %v13868_v6 = vand.u32 4294901760, %v11397_v51  ;;  %vm13881_vm5 = vmmov %vm13839_vm0 }
 0x5e3   : > { %v11432_v47 = vsub.f32 %v11336_v40, %v13849_v52  ;;  %4266 = vmatmul.mubr.f32.gmra.mrb[6].mxu1 %v13854_v31  ;;  %v13861_v52 = vld [vmem:[#allocation31_spill] sm:$0xff]  ;;  %v13862_v31 = vand.u32 4294901760, %v11371_v7  ;;  %v5533_v40 = vpop.permute.xlu0 %5532  ;;  %v11492_v36 = vsel %vm13852_vm3, %v5512_v50, 0.0  ;;  %v11502_v27 = vsel %vm9615_vm13, %v5545_v58, 0.0  ;;  %vm13884_vm6 = vmmov %vm13864_vm7 }
 0x5e4   : > { %13858 = vst [vmem:[#allocation14_spill] sm:$0xff] %v11449_v41  ;;  %7266 = vmatpush1.bf16.msra.mxu1 %v13861_v52  ;;  %4408 = vmatprep.mubr.f32.mxu1 %v13156_v46  ;;  %13870 = vst [vmem:[#allocation19_spill] sm:$0xff] %v11492_v36  ;;  %v11496_v52 = vsel %vm9363_vm12, %v5516_v34, 0.0  ;;  %v5483_v34 = vsel %vm13877_vm1, %v11163_v43, %v11203_v37  ;;  %v5487_v58 = vsel %vm13878_vm2, %v11203_v37, %v11163_v43 }
 0x5e5   : > { %13850 = vst [vmem:[#allocation83_spill] sm:$0xff] %v11432_v47  ;;  %v11464_v48 = vsub.f32 %v11371_v7, %v13862_v31  ;;  %7268 = vmatprep.subr.bf16.mxu1 %v11019_v11  ;;  %v13866_v31 = vand.u32 4294901760, %v11383_v57  ;;  %v11488_v11 = vsub.f32 %v11397_v51, %v13868_v6  ;;  %13871 = vst [vmem:[#allocation65_spill] sm:$0xff] %v11496_v52  ;;  %v5543_v43 = vpop.permute.xlu1 %5542  ;;  %v11545_v8 = vsel %vm13825_vm15, %v5487_v58, 0.0 }
 0x5e6   : > { %13873 = vst [vmem:[#allocation12_spill] sm:$0xff] %v11502_v27  ;;  %v5518_v37 = vsel %vm13881_vm5, %v11218_v5, %v11160_v25  ;;  %13883 = vst [vmem:[#allocation64_spill] sm:$0xff] %v11545_v8  ;;  %v13893_v58 = vand.u32 4294901760, %v11234_v9 }
 0x5e7   : > { %13863 = vst [vmem:[#allocation5_spill] sm:$0xff] %v11464_v48  ;;  %v11481_v45 = vsub.f32 %v11383_v57, %v13866_v31  ;;  %13869 = vst [vmem:[#allocation20_spill] sm:$0xff] %v11488_v11  ;;  %v13874_v57 = vld [vmem:[#allocation62_spill] sm:$0xff]  ;;  %v5541_v12 = vpop.permute.xlu0 %5540  ;;  %v13905_v31 = vand.u32 4294901760, %v11421_v1 }
 0x5e8   : > { %vm13875_vm9 = vnez %v13874_v57  ;;  %7270 = vmatpush1.bf16.msra.mxu1 %v11022_v18  ;;  %v13879_v18 = vand.u32 4294901760, %v11436_v60  ;;  %vm13885_vm7 = vmmov %vm13884_vm6  ;;  %v11579_v51 = vpack.c.bf16 %v13894_v32, %v13893_v58  ;;  %v13904_v58 = vand.u32 4294901760, %v11408_v22 }
 0x5e9   : > { %13867 = vst [vmem:[#allocation6_spill] sm:$0xff] %v11481_v45  ;;  %v11506_v6 = vsel %vm13875_vm9, %v5549_v35, 0.0  ;;  %7272 = vmatprep.subr.bf16.mxu1 %v11024_v62  ;;  %v5514_v62 = vsel %vm13839_vm0, %v11160_v25, %v11218_v5  ;;  %v5544_v35 = vsel %vm13884_vm6, %v11308_v29, %v11399_v54  ;;  %v5548_v25 = vsel %vm13885_vm7, %v11399_v54, %v11308_v29  ;;  %vm13887_vm15 = vmmov %vm13839_vm0 }
 0x5ea   : > { %13876 = vst [vmem:[#allocation29_spill] sm:$0xff] %v11506_v6  ;;  %v11524_v50 = vsub.f32 %v11436_v60, %v13879_v18  ;;  %v11541_v18 = vsel %vm9391_vm4, %v5483_v34, 0.0  ;;  %vm13886_vm4 = vmmov %vm13839_vm0  ;;  %v5519_v5 = vsel %vm13887_vm15, %v11385_v14, %v11292_v42  ;;  %v13921_v57 = vand.u32 4294901760, %v11506_v6 }
 0x5eb   : > { %13882 = vst [vmem:[#allocation2_spill] sm:$0xff] %v11541_v18  ;;  %v5515_v63 = vsel %vm13886_vm4, %v11292_v42, %v11385_v14  ;;  %vm13891_vm8 = vmmov %vm13884_vm6  ;;  %v13897_v42 = vand.u32 4294901760, %v11208_v30  ;;  %v13003_v53 = vand.u32 4294901760, %v11541_v18 }
 0x5ec   : > { %13880 = vst [vmem:[#allocation66_spill] sm:$0xff] %v11524_v50  ;;  %7274 = vmatpush1.bf16.msra.mxu1 %v11028_v16  ;;  %v13889_v16 = vand.u32 4294901760, %v11184_v10  ;;  %v5547_v29 = vsel %vm13891_vm8, %v5535_v55, %v5543_v43  ;;  %vm13892_vm1 = vmmov %vm13884_vm6  ;;  %vm14020_vm6 = vcmp.lt.s32.totalorder %v13754_v23, 15 }
 0x5ed   : > { %7276 = vmatprep.subr.bf16.mxu1 %v10651_v49  ;;  %v5551_v54 = vsel %vm13892_vm1, %v5543_v43, %v5535_v55  ;;  %13895 = vst [vmem:[#allocation17_spill] sm:$0xff] %v11579_v51  ;;  %v13896_v49 = vand.u32 4294901760, %v11313_v2  ;;  %vm13899_vm2 = vmmov %vm13892_vm1  ;;  %v13901_v55 = vand.u32 4294901760, %v11365_v0  ;;  %v13902_v43 = vand.u32 4294901760, %v11416_v61 }
 0x5ee   : > { %v11569_v34 = vpack.c.bf16 %v13889_v16, %v13888_v59  ;;  %v5546_v59 = vsel %vm13899_vm2, %v5533_v40, %v5541_v12  ;;  %vm13900_vm0 = vmmov %vm13892_vm1  ;;  %v11632_v21 = vsel %vm9615_vm13, %v5547_v29, 0.0  ;;  %v11691_v29 = vsub.f32 %v11541_v18, %v13003_v53 }
 0x5ef   : > { %v11585_v14 = vpack.c.bf16 %v13897_v42, %v13896_v49  ;;  %v5550_v16 = vsel %vm13900_vm0, %v5541_v12, %v5533_v40  ;;  %4410 = vmatmul.mubr.f32.vlgmr.msra.gmra.mrb[0].mxu1 %v10692_v28  ;;  %v11596_v32 = vpack.c.bf16 %v13902_v43, %v13901_v55  ;;  %v11602_v49 = vpack.c.bf16 %v13905_v31, %v13904_v58  ;;  %vm14025_vm4 = vmmov %vm14020_vm6 }
 0x5f0   : > { %13890 = vst [vmem:[#allocation40_spill] sm:$0xff] %v11569_v34  ;;  %v11606_v42 = vsel %vm13852_vm3, %v5514_v62, 0.0  ;;  %v11610_v12 = vsel %vm13875_vm9, %v5548_v25, 0.0  ;;  %v11614_v40 = vsel %vm13852_vm3, %v5515_v63, 0.0  ;;  %v11618_v55 = vsel %vm9363_vm12, %v5519_v5, 0.0  ;;  %7278 = vmatpush1.bf16.msra.mxu1 %v10653_v4  ;;  %4415 = vmatprep.mubr.f32.mxu1 %v13156_v46  ;;  %13913 = vst [vmem:[#allocation45_spill] sm:$0xff] %v11632_v21 }
 0x5f1   : > { %13898 = vst [vmem:[#allocation54_spill] sm:$0xff] %v11585_v14  ;;  %13903 = vst [vmem:[#allocation28_spill] sm:$0xff] %v11596_v32  ;;  %v11624_v31 = vsel %vm9363_vm12, %v5518_v37, 0.0  ;;  %v11628_v62 = vsel %vm9615_vm13, %v5544_v35, 0.0  ;;  %v11636_v25 = vsel %vm13875_vm9, %v5551_v54, 0.0  ;;  %7280 = vmatprep.subr.bf16.mxu1 %v13750_v3  ;;  %v13002_v4 = vand.u32 4294901760, %v11545_v8 }
 0x5f2   : > { %13906 = vst [vmem:[#allocation38_spill] sm:$0xff] %v11602_v49  ;;  %13907 = vst [vmem:[#allocation11_spill] sm:$0xff] %v11606_v42  ;;  %v11643_v37 = vsel %vm9615_vm13, %v5546_v59, 0.0  ;;  %v11647_v35 = vsel %vm13875_vm9, %v5550_v16, 0.0  ;;  %v13004_v63 = vand.u32 4294901760, %v11606_v42  ;;  %v13006_v5 = vand.u32 4294901760, %v11610_v12 }
 0x5f3   : > { %13908 = vst [vmem:[#allocation23_spill] sm:$0xff] %v11610_v12  ;;  %13909 = vst [vmem:[#allocation4_spill] sm:$0xff] %v11614_v40  ;;  %4417 = vmatmul.mubr.f32.gmra.mrb[2].mxu1 %v10721_v19  ;;  %v13917_v54 = vand.u32 4294901760, %v11492_v36  ;;  %v13919_v43 = vand.u32 4294901760, %v11496_v52  ;;  %v11676_v16 = vsub.f32 %v11506_v6, %v13921_v57  ;;  %v13933_v3 = vand.u32 4294901760, %v11628_v62 }
 0x5f4   : > { %13910 = vst [vmem:[#allocation26_spill] sm:$0xff] %v11618_v55  ;;  %13911 = vst [vmem:[#allocation50_spill] sm:$0xff] %v11624_v31  ;;  %7282 = vmatpush1.bf16.msra.mxu1 %v13752_v33  ;;  %4422 = vmatprep.mubr.f32.mxu1 %v13156_v46  ;;  %v13923_v33 = vand.u32 4294901760, %v11502_v27  ;;  %v11701_v57 = vsub.f32 %v11610_v12, %v13006_v5  ;;  %v13935_v5 = vand.u32 4294901760, %v11636_v25  ;;  %vm13992_vm12 = vcmp.lt.s32.totalorder %v13754_v23, 17 }
 0x5f5   : > { %13912 = vst [vmem:[#allocation70_spill] sm:$0xff] %v11628_v62  ;;  %13914 = vst [vmem:[#allocation46_spill] sm:$0xff] %v11636_v25  ;;  %v11657_v7 = vsub.f32 %v11492_v36, %v13917_v54  ;;  %v11667_v58 = vsub.f32 %v11496_v52, %v13919_v43  ;;  %7284 = vmatprep.subr.bf16.mxu1 %v13753_v15  ;;  %v11686_v43 = vsub.f32 %v11545_v8, %v13002_v4 }
 0x5f6   : > { %13915 = vst [vmem:[#allocation72_spill] sm:$0xff] %v11643_v37  ;;  %13916 = vst [vmem:[#allocation18_spill] sm:$0xff] %v11647_v35  ;;  %v11681_v59 = vsub.f32 %v11502_v27, %v13923_v33  ;;  %v11696_v15 = vsub.f32 %v11606_v42, %v13004_v63  ;;  %v13929_v33 = vand.u32 4294901760, %v11618_v55  ;;  %v13931_v54 = vand.u32 4294901760, %v11614_v40 }
 0x5f7   : > { %13918 = vst [vmem:[#allocation7_spill] sm:$0xff] %v11657_v7  ;;  %13920 = vst [vmem:[#allocation63_spill] sm:$0xff] %v11667_v58  ;;  %4424 = vmatmul.mubr.f32.gmra.mrb[4].mxu1 %v10761_v44  ;;  %v11718_v27 = vsub.f32 %v11628_v62, %v13933_v3  ;;  %v11723_v6 = vsub.f32 %v11636_v25, %v13935_v5  ;;  %v13939_v63 = vand.u32 4294901760, %v11624_v31  ;;  %v13941_v62 = vand.u32 4294901760, %v11647_v35 }
 0x5f8   : > { %13922 = vst [vmem:[#allocation16_spill] sm:$0xff] %v11676_v16  ;;  %13924 = vst [vmem:[#allocation10_spill] sm:$0xff] %v11681_v59  ;;  %v11706_v4 = vsub.f32 %v11618_v55, %v13929_v33  ;;  %v11711_v53 = vsub.f32 %v11614_v40, %v13931_v54  ;;  %v13937_v33 = vand.u32 4294901760, %v11632_v21  ;;  %7286 = vmatpush1.bf16.msra.mxu1 %v13756_v39  ;;  %4429 = vmatprep.mubr.f32.mxu1 %v13156_v46  ;;  %v13945_v39 = vld [vmem:[#allocation27_spill] sm:$0xff] }
 0x5f9   : > { %13925 = vst [vmem:[#allocation31_spill] sm:$0xff] %v11686_v43  ;;  %13926 = vst [vmem:[#allocation15_spill] sm:$0xff] %v11691_v29  ;;  %v11736_v3 = vsub.f32 %v11624_v31, %v13939_v63  ;;  %v11741_v5 = vsub.f32 %v11647_v35, %v13941_v62  ;;  %v13943_v25 = vand.u32 4294901760, %v11643_v37  ;;  %7288 = vmatprep.subr.bf16.mxu1 %v13945_v39  ;;  %v13948_v35 = vld [vmem:[#allocation36_spill] sm:$0xff]  ;;  %v13949_v39 = vand.u32 4294901760, %v11427_v17 }
 0x5fa   : > { %13927 = vst [vmem:[#allocation62_spill] sm:$0xff] %v11696_v15  ;;  %13928 = vst [vmem:[#allocation85_spill] sm:$0xff] %v11701_v57  ;;  %v11728_v12 = vsub.f32 %v11632_v21, %v13937_v33  ;;  %v13950_v21 = vand.u32 4294901760, %v11444_v38  ;;  %v13952_v40 = vand.u32 4294901760, %v11432_v47  ;;  %v13955_v42 = vand.u32 4294901760, %v11464_v48  ;;  %v14016_v48 = vld [vmem:[#allocation52_spill] sm:$0xff] }
 0x5fb   : > { %13930 = vst [vmem:[#allocation86_spill] sm:$0xff] %v11706_v4  ;;  %13932 = vst [vmem:[#allocation87_spill] sm:$0xff] %v11711_v53  ;;  %v11746_v33 = vsub.f32 %v11643_v37, %v13943_v25  ;;  %v13946_v25 = vld [vmem:[#allocation35_spill] sm:$0xff]  ;;  %v13947_v37 = vld [vmem:[#allocation22_spill] sm:$0xff]  ;;  %v13956_v62 = vand.u32 4294901760, %v11686_v43  ;;  %v13959_v55 = vand.u32 4294901760, %v11691_v29 }
 0x5fc   : > { %13934 = vst [vmem:[#allocation88_spill] sm:$0xff] %v11718_v27  ;;  %13936 = vst [vmem:[#allocation89_spill] sm:$0xff] %v11723_v6  ;;  %4431 = vmatmul.mubr.f32.gmra.mrb[6].mxu1 %v13946_v25  ;;  %v11772_v63 = vpack.c.bf16 %v13950_v21, %v13949_v39  ;;  %v13961_v21 = vand.u32 4294901760, %v11667_v58  ;;  %v13962_v39 = vand.u32 4294901760, %v11488_v11  ;;  %vm13996_vm13 = vcmp.lt.s32.totalorder %v13754_v23, 16  ;;  %v14019_v43 = vld [vmem:[#allocation56_spill] sm:$0xff] }
 0x5fd   : > { %13938 = vst [vmem:[#allocation90_spill] sm:$0xff] %v11728_v12  ;;  %13940 = vst [vmem:[#allocation91_spill] sm:$0xff] %v11736_v3  ;;  %7290 = vmatpush1.bf16.msra.mxu1 %v13947_v37  ;;  %4525 = vmatprep.mubr.f32.mxu1 %v13156_v46  ;;  %v13953_v37 = vand.u32 4294901760, %v11449_v41  ;;  %v11784_v31 = vpack.c.bf16 %v13956_v62, %v13955_v42  ;;  %v13967_v42 = vand.u32 4294901760, %v11736_v3  ;;  %v13968_v62 = vand.u32 4294901760, %v11706_v4  ;;  %v14008_v4 = vld [vmem:[#allocation55_spill] sm:$0xff] }
 0x5fe   : > { %13942 = vst [vmem:[#allocation92_spill] sm:$0xff] %v11741_v5  ;;  %13944 = vst [vmem:[#allocation93_spill] sm:$0xff] %v11746_v33  ;;  %7292 = vmatprep.subr.bf16.mxu1 %v13948_v35  ;;  %v13958_v35 = vand.u32 4294901760, %v11481_v45  ;;  %v14014_v45 = vld [vmem:[#allocation60_spill] sm:$0xff]  ;;  %v14017_v29 = vand.u32 4294901760, %v14016_v48  ;;  %v14029_v38 = vld [vmem:[#allocation3_spill] sm:$0xff] }
 0x5ff   : > { %13951 = vst [vmem:[#allocation27_spill] sm:$0xff] %v11772_v63  ;;  %v11778_v54 = vpack.c.bf16 %v13953_v37, %v13952_v40  ;;  %13957 = vst [vmem:[#allocation22_spill] sm:$0xff] %v11784_v31  ;;  %v11796_v63 = vpack.c.bf16 %v13962_v39, %v13961_v21  ;;  %v13964_v40 = vand.u32 4294901760, %v11657_v7  ;;  %v13965_v37 = vand.u32 4294901760, %v11524_v50 }
 0x600   : > { %v11790_v17 = vpack.c.bf16 %v13959_v55, %v13958_v35  ;;  %v11808_v31 = vpack.c.bf16 %v13968_v62, %v13967_v42  ;;  %v13970_v55 = vand.u32 4294901760, %v11696_v15  ;;  %v13971_v35 = vand.u32 4294901760, %v11711_v53 }
 0x601   : > { %13954 = vst [vmem:[#allocation35_spill] sm:$0xff] %v11778_v54  ;;  %13963 = vst [vmem:[#allocation94_spill] sm:$0xff] %v11796_v63  ;;  %v11802_v54 = vpack.c.bf16 %v13965_v37, %v13964_v40  ;;  %v13973_v21 = vand.u32 4294901760, %v11701_v57  ;;  %v13974_v39 = vand.u32 4294901760, %v11676_v16  ;;  %v3506_v40 = vsel %vm8587_vm11, %v11282_v20, 0.0  ;;  %v13976_v37 = vld [vmem:[#allocation37_spill] sm:$0xff] }
 0x602   : > { %13960 = vst [vmem:[#allocation36_spill] sm:$0xff] %v11790_v17  ;;  %13969 = vst [vmem:[#allocation96_spill] sm:$0xff] %v11808_v31  ;;  %v11814_v17 = vpack.c.bf16 %v13971_v35, %v13970_v55  ;;  %7294 = vmatpush1.bf16.msra.mxu1 %v13976_v37  ;;  %v13977_v42 = vand.u32 4294901760, %v11718_v27  ;;  %v13978_v62 = vand.u32 4294901760, %v11681_v59  ;;  %v13980_v55 = vand.u32 4294901760, %v11741_v5  ;;  %v13990_v5 = vld [vmem:[#allocation34_spill] sm:$0xff] }
 0x603   : > { %13966 = vst [vmem:[#allocation95_spill] sm:$0xff] %v11802_v54  ;;  %v11820_v63 = vpack.c.bf16 %v13974_v39, %v13973_v21  ;;  %v13981_v35 = vand.u32 4294901760, %v11723_v6  ;;  %v13983_v21 = vand.u32 4294901760, %v11746_v33  ;;  %v13984_v39 = vand.u32 4294901760, %v11728_v12  ;;  %v13987_v54 = vld [vmem:[#allocation58_spill] sm:$0xff]  ;;  %v13991_v6 = vld [vmem:[#allocation13_spill] sm:$0xff] }
 0x604   : > { %13972 = vst [vmem:[#allocation97_spill] sm:$0xff] %v11814_v17  ;;  %v11830_v31 = vpack.c.bf16 %v13978_v62, %v13977_v42  ;;  %v3499_v37 = vsel %vm8568_vm10, %v11225_v26, 0.0  ;;  %v4566_v59 = vand.u32 4294901760, %v13987_v54  ;;  %v13988_v42 = vld [vmem:[#allocation8_spill] sm:$0xff]  ;;  %v13989_v62 = vld [vmem:[#allocation59_spill] sm:$0xff]  ;;  %v4578_v33 = vand.u32 4294901760, %v3506_v40 }
 0x605   : > { %13975 = vst [vmem:[#allocation98_spill] sm:$0xff] %v11820_v63  ;;  %v11836_v17 = vpack.c.bf16 %v13981_v35, %v13980_v55  ;;  %v11842_v63 = vpack.c.bf16 %v13984_v39, %v13983_v21  ;;  %7296 = vmatprep.subr.bf16.mxu1 %v13988_v42  ;;  %v3497_v55 = vsel %vm13992_vm12, %v13991_v6, %v13990_v5  ;;  %v13993_v35 = vld [vmem:[#allocation43_spill] sm:$0xff]  ;;  %v13998_v12 = vld [vmem:[#allocation57_spill] sm:$0xff]  ;;  %v4568_v15 = vand.u32 4294901760, %v3499_v37 }
 0x606   : > { %13979 = vst [vmem:[#allocation37_spill] sm:$0xff] %v11830_v31  ;;  %v4572_v31 = vand.u32 4294901760, %v13989_v62  ;;  %v3504_v21 = vsel %vm8587_vm11, %v13993_v35, 0.0  ;;  %v13994_v39 = vld [vmem:[#allocation67_spill] sm:$0xff]  ;;  %v13999_v27 = vand.u32 4294901760, %v13998_v12  ;;  %v3503_v5 = vsel %vm8568_vm10, %v3497_v55, 0.0  ;;  %vm14003_vm11 = vmmov %vm13996_vm13 }
 0x607   : > { %13982 = vst [vmem:[#allocation99_spill] sm:$0xff] %v11836_v17  ;;  %13985 = vst [vmem:[#allocation100_spill] sm:$0xff] %v11842_v63  ;;  %v13995_v63 = vld [vmem:[#allocation69_spill] sm:$0xff]  ;;  %v13997_v17 = vld [vmem:[#allocation79_spill] sm:$0xff]  ;;  %v11889_v55 = vsub.f32 %v3499_v37, %v4568_v15  ;;  %v4576_v50 = vand.u32 4294901760, %v3503_v5  ;;  %v14015_v58 = vand.u32 4294901760, %v14014_v45 }
 0x608   : > { %v3527_v26 = vsel %vm13996_vm13, %v13995_v63, %v13994_v39  ;;  %v3505_v42 = vsel %vm8568_vm10, %v13997_v17, 0.0  ;;  %v11866_v16 = vpack.c.bf16 %v13999_v27, %v4566_v59  ;;  %v14000_v6 = vld [vmem:[#allocation47_spill] sm:$0xff]  ;;  %v4574_v63 = vand.u32 4294901760, %v3504_v21  ;;  %v14001_v35 = vld [vmem:[#allocation24_spill] sm:$0xff]  ;;  %vm14009_vm9 = vmmov %vm14003_vm11 }
 0x609   : > { %7298 = vmatpush1.bf16.msra.mxu1 %v14000_v6  ;;  %v14002_v39 = vld [vmem:[#allocation68_spill] sm:$0xff]  ;;  %v11879_v27 = vpack.c.bf16 %v4572_v31, %v4568_v15  ;;  %v14004_v57 = vld [vmem:[#allocation39_spill] sm:$0xff]  ;;  %v4580_v53 = vand.u32 4294901760, %v3505_v42  ;;  %vm14006_vm10 = vcmask 785408   ;;  %v14010_v15 = vand.u32 4294901760, %v13998_v12  ;;  %vm14013_vm5 = vmmov %vm14009_vm9 }
 0x60a   : > { %v3528_v17 = vsel %vm14003_vm11, %v14002_v39, %v14001_v35  ;;  %7300 = vmatprep.subr.bf16.mxu1 %v11866_v16  ;;  %vm14005_vm3 = vnez %v14004_v57  ;;  %v11886_v3 = vpack.c.bf16 %v4578_v33, %v4574_v63  ;;  %v4555_v20 = vsel %vm14006_vm10, %v3571_v56, 0  ;;  %v14007_v39 = vld [vmem:[#allocation42_spill] sm:$0xff]  ;;  %vm14021_vm7 = vmmov %vm14006_vm10  ;;  %v14027_v45 = vld [vmem:[#allocation53_spill] sm:$0xff] }
 0x60b   : > { %v11883_v6 = vsel %vm14005_vm3, %v3527_v26, 0.0  ;;  %v11893_v35 = vsel %vm14005_vm3, %v3528_v17, 0.0  ;;  %v3530_v26 = vsel %vm14009_vm9, %v14008_v4, %v14007_v39  ;;  %v11907_v37 = vsub.f32 %v13998_v12, %v14010_v15  ;;  %v3572_v4 = vld [vmem:[%s12694_s4 + $0x8] sm:$0xff]  ;;  %v14011_v17 = vld [vmem:[#allocation25_spill] sm:$0xff]  ;;  %v14012_v39 = vld [vmem:[#allocation74_spill] sm:$0xff] }
 0x60c   : > { %4527 = vmatmul.mubr.f32.vlgmr.msra.gmra.mrb[0].mxu1 %v10692_v28  ;;  %v11902_v28 = vsub.f32 %v13987_v54, %v4566_v59  ;;  %v4584_v56 = vand.u32 4294901760, %v11883_v6  ;;  %v3529_v11 = vsel %vm14013_vm5, %v14012_v39, %v14011_v17  ;;  %v11918_v59 = vpack.c.bf16 %v4580_v53, %v4576_v50  ;;  %v14018_v39 = vld [vmem:[#allocation32_spill] sm:$0xff]  ;;  %vm14032_vm15 = vmmov %vm14021_vm7  ;;  %v14039_v57 = vld [vmem:[#allocation61_spill] sm:$0xff] }
 0x60d   : > { %7302 = vmatpush1.bf16.msra.mxu1 %v11879_v27  ;;  %4532 = vmatprep.mubr.f32.mxu1 %v13156_v46  ;;  %v11920_v54 = vand.u32 4294901760, %v4555_v20  ;;  %v11923_v12 = vsub.f32 %v13989_v62, %v4572_v31  ;;  %v13062_v15 = vand.u32 4294901760, %v11893_v35  ;;  %v11928_v7 = vsel %vm14005_vm3, %v3530_v26, 0.0  ;;  %v14024_v26 = vld [vmem:[#allocation73_spill] sm:$0xff]  ;;  %vm14111_vm8 = vmmov %vm14021_vm7 }
 0x60e   : > { %7304 = vmatprep.subr.bf16.mxu1 %v11886_v3  ;;  %v11934_v47 = vpack.c.bf16 %v14017_v29, %v14015_v58  ;;  %v3559_v31 = vsel %vm14020_vm6, %v14019_v43, %v14018_v39  ;;  %v4558_v62 = vsel %vm14021_vm7, %v3572_v4, 0  ;;  %v11953_v29 = vsel %vm14005_vm3, %v3529_v11, 0.0  ;;  %v3573_v58 = vld [vmem:[%s12694_s4 + $0x10] sm:$0xff]  ;;  %v14023_v43 = vld [vmem:[#allocation71_spill] sm:$0xff]  ;;  %vm14120_vm1 = vmmov %vm14021_vm7 }
 0x60f   : > { %v3560_v4 = vsel %vm14025_vm4, %v14024_v26, %v14023_v43  ;;  %v11963_v39 = vsub.f32 %v3506_v40, %v4578_v33  ;;  %v11967_v17 = vsub.f32 %v4555_v20, %v11920_v54  ;;  %v11972_v48 = vsel %vm8805_vm14, %v3559_v31, 0.0  ;;  %v14037_v26 = vld [vmem:[#allocation9_spill] sm:$0xff]  ;;  %vm14129_vm2 = vmmov %vm14120_vm1 }
 0x610   : > { %4534 = vmatmul.mubr.f32.gmra.mrb[2].mxu1 %v10721_v19  ;;  %v11949_v19 = vpack.c.bf16 %v13062_v15, %v4584_v56  ;;  %v4596_v15 = vand.u32 4294901760, %v11928_v7  ;;  %v14028_v41 = vand.u32 4294901760, %v14027_v45  ;;  %v14030_v60 = vand.u32 4294901760, %v14029_v38  ;;  %vm14142_vm0 = vmmov %vm14120_vm1 }
 0x611   : > { %7306 = vmatpush1.bf16.msra.mxu1 %v11918_v59  ;;  %4539 = vmatprep.mubr.f32.mxu1 %v13156_v46  ;;  %v11981_v23 = vand.u32 4294901760, %v4558_v62  ;;  %v11983_v33 = vsub.f32 %v3504_v21, %v4574_v63  ;;  %v11985_v40 = vsub.f32 %v3503_v5, %v4576_v50  ;;  %v4592_v20 = vand.u32 4294901760, %v11953_v29  ;;  %v3574_v5 = vld [vmem:[%s12694_s4 + $0x18] sm:$0xff] }
 0x612   : > { %14022 = vst [vmem:[#allocation41_spill] sm:$0xff] %v11949_v19  ;;  %7308 = vmatprep.subr.bf16.mxu1 %v11934_v47  ;;  %v11978_v36 = vpack.c.bf16 %v14030_v60, %v14028_v41  ;;  %v4561_v31 = vsel %vm14032_vm15, %v3573_v58, 0  ;;  %v11993_v38 = vsel %vm8805_vm14, %v3560_v4, 0.0  ;;  %v11995_v41 = vsub.f32 %v3505_v42, %v4580_v53  ;;  %vm14043_vm14 = vmmov %vm14021_vm7 }
 0x613   : > { %v14034_v50 = vand.u32 4294901760, %v11907_v37  ;;  %v4600_v45 = vand.u32 4294901760, %v11972_v48  ;;  %v12009_v53 = vpack.c.bf16 %v4596_v15, %v4592_v20  ;;  %v14036_v58 = vand.u32 4294901760, %v11889_v55 }
 0x614   : > { %14031 = vst [vmem:[#allocation58_spill] sm:$0xff] %v11978_v36  ;;  %4541 = vmatmul.mubr.f32.gmra.mrb[4].mxu1 %v10761_v44  ;;  %v14033_v44 = vand.u32 4294901760, %v11902_v28  ;;  %v14038_v4 = vand.u32 4294901760, %v14037_v26  ;;  %v12023_v63 = vsub.f32 %v4558_v62, %v11981_v23  ;;  %v12025_v11 = vand.u32 4294901760, %v4561_v31 }
 0x615   : > { %7310 = vmatpush1.bf16.msra.mxu1 %v11949_v19  ;;  %4546 = vmatprep.mubr.f32.mxu1 %v13156_v46  ;;  %v4714_v21 = vsub.f32 %v11907_v37, %v14034_v50  ;;  %14035 = vst [vmem:[#allocation8_spill] sm:$0xff] %v12009_v53  ;;  %v4708_v43 = vsub.f32 %v11889_v55, %v14036_v58  ;;  %v14042_v52 = vand.u32 4294901760, %v11923_v12  ;;  %v4604_v58 = vand.u32 4294901760, %v11993_v38 }
 0x616   : > { %7312 = vmatprep.subr.bf16.mxu1 %v11978_v36  ;;  %v4702_v60 = vsub.f32 %v11902_v28, %v14033_v44  ;;  %v14040_v44 = vand.u32 4294901760, %v14039_v57  ;;  %v4564_v26 = vsel %vm14043_vm14, %v3574_v5, 0  ;;  %v12037_v62 = vsub.f32 %v11883_v6, %v4584_v56  ;;  %v14049_v6 = vld [vmem:[#allocation48_spill] sm:$0xff] }
 0x617   : > { %v4720_v42 = vsub.f32 %v11923_v12, %v14042_v52  ;;  %v4715_v52 = vand.u32 4294901760, %v4714_v21  ;;  %v12041_v57 = vpack.c.bf16 %v4604_v58, %v4600_v45  ;;  %v14045_v18 = vand.u32 4294901760, %v11967_v17 }
 0x618   : > { %v12019_v50 = vpack.c.bf16 %v14040_v44, %v14038_v4  ;;  %4548 = vmatmul.mubr.f32.gmra.mrb[6].mxu1 %v13946_v25  ;;  %v4703_v44 = vand.u32 4294901760, %v4702_v60  ;;  %v14046_v49 = vand.u32 4294901760, %v11963_v39  ;;  %v14047_v25 = vld [vmem:[#allocation21_spill] sm:$0xff]  ;;  %v14050_v56 = vand.u32 4294901760, %v14049_v6 }
 0x619   : > { %7314 = vmatpush1.bf16.msra.mxu1 %v12009_v53  ;;  %4654 = vmatprep.mubr.f32.mxu1 %v13156_v46  ;;  %14044 = vst [vmem:[#allocation34_spill] sm:$0xff] %v12041_v57  ;;  %v4658_v8 = vsub.f32 %v11967_v17, %v14045_v18  ;;  %v14048_v32 = vand.u32 4294901760, %v14047_v25  ;;  %v12057_v21 = vsub.f32 %v4561_v31, %v12025_v11  ;;  %v12059_v60 = vand.u32 4294901760, %v4564_v26 }
 0x61a   : > { %14041 = vst [vmem:[#allocation59_spill] sm:$0xff] %v12019_v50  ;;  %7316 = vmatprep.subr.bf16.mxu1 %v12019_v50  ;;  %v4738_v5 = vsub.f32 %v11963_v39, %v14046_v49  ;;  %v4709_v51 = vand.u32 4294901760, %v4708_v43  ;;  %v4721_v34 = vand.u32 4294901760, %v4720_v42  ;;  %v14052_v18 = vand.u32 4294901760, %v11893_v35 }
 0x61b   : > { %v12053_v14 = vpack.c.bf16 %v14050_v56, %v14048_v32  ;;  %v14053_v49 = vand.u32 4294901760, %v11983_v33  ;;  %v14054_v25 = vand.u32 4294901760, %v11985_v40  ;;  %v14055_v43 = vand.u32 4294901760, %v11995_v41 }
 0x61c   : > { %v12064_v50 = vsub.f32 %v11893_v35, %v14052_v18  ;;  %v7323_v35 = vpack.c.bf16 %v4715_v52, %v4703_v44  ;;  %v12079_v56 = vsub.f32 %v11928_v7, %v4596_v15  ;;  %v14056_v18 = vld [vmem:[#allocation33_spill] sm:$0xff]  ;;  %v4739_v36 = vand.u32 4294901760, %v4738_v5 }
 0x61d   : > { %14051 = vst [vmem:[#allocation13_spill] sm:$0xff] %v12053_v14  ;;  %7318 = vmatpush1.bf16.msra.mxu1 %v12041_v57  ;;  %v4726_v32 = vsub.f32 %v11983_v33, %v14053_v49  ;;  %v4732_v31 = vsub.f32 %v11985_v40, %v14054_v25  ;;  %v4744_v42 = vsub.f32 %v11995_v41, %v14055_v43  ;;  %v14057_v4 = vand.u32 4294901760, %v14056_v18  ;;  %v14058_v57 = vld [vmem:[#allocation49_spill] sm:$0xff] }
 0x61e   : > { %7320 = vmatprep.subr.bf16.mxu1 %v12053_v14  ;;  %v14059_v49 = vand.u32 4294901760, %v14058_v57  ;;  %v14060_v25 = vand.u32 4294901760, %v11201_v24  ;;  %v4659_v19 = vand.u32 4294901760, %v4658_v8  ;;  %v14061_v43 = vand.u32 4294901760, %v12023_v63 }
 0x61f   : > { %v4679_v52 = vand.u32 4294901760, %v12057_v21  ;;  %v12095_v7 = vsub.f32 %v4564_v26, %v12059_v60  ;;  %v4727_v57 = vand.u32 4294901760, %v4726_v32  ;;  %v14062_v44 = vand.u32 4294901760, %v11184_v10 }
 0x620   : > { %v12085_v53 = vpack.c.bf16 %v14059_v49, %v14057_v4  ;;  %v4750_v6 = vsub.f32 %v11201_v24, %v14060_v25  ;;  %v4669_v14 = vsub.f32 %v12023_v63, %v14061_v43  ;;  %v12099_v4 = vsub.f32 %v11953_v29, %v4592_v20 }
 0x621   : > { %v4762_v8 = vsub.f32 %v11184_v10, %v14062_v44  ;;  %v4733_v5 = vand.u32 4294901760, %v4732_v31  ;;  %v14063_v18 = vand.u32 4294901760, %v12037_v62  ;;  %v12109_v26 = vsub.f32 %v11972_v48, %v4600_v45 }
 0x622   : > { %7322 = vmatpush1.bf16.msra.mxu1 %v12085_v53  ;;  %v7325_v25 = vpack.c.bf16 %v4721_v34, %v4709_v51  ;;  %v4745_v43 = vand.u32 4294901760, %v4744_v42  ;;  %v13084_v29 = vand.u32 4294901760, %v12079_v56  ;;  %v7327_v20 = vpack.c.bf16 %v4739_v36, %v4727_v57 }
 0x623   : > { %v4756_v49 = vsub.f32 %v12037_v62, %v14063_v18  ;;  %7324 = vmatprep.subr.bf16.mxu1 %v7323_v35  ;;  %v4751_v15 = vand.u32 4294901760, %v4750_v6  ;;  %v14064_v32 = vand.u32 4294901760, %v11332_v13  ;;  %v4670_v31 = vand.u32 4294901760, %v4669_v14 }
 0x624   : > { %v4680_v18 = vsub.f32 %v12057_v21, %v4679_v52  ;;  %v13085_v48 = vand.u32 4294901760, %v12095_v7  ;;  %v14065_v45 = vand.u32 4294901760, %v12064_v50  ;;  %v12123_v34 = vsub.f32 %v11993_v38, %v4604_v58 }
 0x625   : > { %4660 = vmatmul.mubr.f32.vlgmr.msra.gmra.mrb[0].mxu1 %v4659_v19  ;;  %v4786_v44 = vsub.f32 %v11332_v13, %v14064_v32  ;;  %v4779_v36 = vand.u32 4294901760, %v12099_v4  ;;  %v4763_v19 = vand.u32 4294901760, %v4762_v8  ;;  %v4757_v14 = vand.u32 4294901760, %v4756_v49 }
 0x626   : > { %v4768_v51 = vsub.f32 %v12064_v50, %v14065_v45  ;;  %7326 = vmatpush1.bf16.msra.mxu1 %v7325_v25  ;;  %4665 = vmatprep.mubr.f32.mxu1 %v13156_v46  ;;  %v14066_v6 = vand.u32 4294901760, %v11234_v9  ;;  %v4803_v35 = vand.u32 4294901760, %v12109_v26  ;;  %v4792_v57 = vsub.f32 %v12079_v56, %v13084_v29 }
 0x627   : > { %7328 = vmatprep.subr.bf16.mxu1 %v7327_v20  ;;  %v7329_v38 = vpack.c.bf16 %v4745_v43, %v4733_v5  ;;  %v7331_v58 = vpack.c.bf16 %v4763_v19, %v4751_v15  ;;  %v4787_v32 = vand.u32 4294901760, %v4786_v44  ;;  %v14067_v8 = vand.u32 4294901760, %v11313_v2 }
 0x628   : > { %v4774_v42 = vsub.f32 %v11234_v9, %v14066_v6  ;;  %v4681_v49 = vand.u32 4294901760, %v4680_v18  ;;  %v4691_v20 = vsub.f32 %v12095_v7, %v13085_v48  ;;  %v4769_v45 = vand.u32 4294901760, %v4768_v51 }
 0x629   : > { %4671 = vmatmul.mubr.f32.gmra.mrb[2].mxu1 %v4670_v31  ;;  %v4798_v25 = vsub.f32 %v11313_v2, %v14067_v8  ;;  %v13086_v6 = vand.u32 4294901760, %v12123_v34  ;;  %v4780_v29 = vsub.f32 %v12099_v4, %v4779_v36  ;;  %v14068_v5 = vand.u32 4294901760, %v11208_v30 }
 0x62a   : > { %7330 = vmatpush1.bf16.msra.mxu1 %v7329_v38  ;;  %4676 = vmatprep.mubr.f32.mxu1 %v13156_v46  ;;  %v4775_v15 = vand.u32 4294901760, %v4774_v42  ;;  %v4804_v44 = vsub.f32 %v12109_v26, %v4803_v35  ;;  %v4793_v31 = vand.u32 4294901760, %v4792_v57  ;;  %v7333_v18 = vpack.c.bf16 %v4769_v45, %v4757_v14 }
 0x62b   : > { %7332 = vmatprep.subr.bf16.mxu1 %v7331_v58  ;;  %v4810_v43 = vsub.f32 %v11208_v30, %v14068_v5  ;;  %v4799_v19 = vand.u32 4294901760, %v4798_v25  ;;  %v14069_v8 = vand.u32 4294901760, %v11416_v61  ;;  %v4692_v48 = vand.u32 4294901760, %v4691_v20 }
 0x62c   : > { %v7335_v51 = vpack.c.bf16 %v4787_v32, %v4775_v15  ;;  %v4816_v42 = vsub.f32 %v12123_v34, %v13086_v6  ;;  %v4781_v58 = vand.u32 4294901760, %v4780_v29  ;;  %v14070_v14 = vand.u32 4294901760, %v11365_v0 }
 0x62d   : > { %4682 = vmatmul.mubr.f32.gmra.mrb[4].mxu1 %v4681_v49  ;;  %v4834_v38 = vsub.f32 %v11416_v61, %v14069_v8  ;;  %v4811_v5 = vand.u32 4294901760, %v4810_v43  ;;  %v4805_v32 = vand.u32 4294901760, %v4804_v44  ;;  %v14071_v25 = vand.u32 4294901760, %v11421_v1 }
 0x62e   : > { %7334 = vmatpush1.bf16.msra.mxu1 %v7333_v18  ;;  %4687 = vmatprep.mubr.f32.mxu1 %v13156_v46  ;;  %v4822_v57 = vsub.f32 %v11365_v0, %v14070_v14  ;;  %v7337_v20 = vpack.c.bf16 %v4793_v31, %v4781_v58  ;;  %v4817_v8 = vand.u32 4294901760, %v4816_v42  ;;  %v14072_v29 = vand.u32 4294901760, %v11408_v22 }
 0x62f   : > { %7336 = vmatprep.subr.bf16.mxu1 %v7335_v51  ;;  %v4840_v49 = vsub.f32 %v11421_v1, %v14071_v25  ;;  %v7339_v45 = vpack.c.bf16 %v4811_v5, %v4799_v19  ;;  %v4835_v15 = vand.u32 4294901760, %v4834_v38  ;;  %v7349_v19 = vpack.c.bf16 %v11923_v12, %v11889_v55 }
 0x630   : > { %v4828_v18 = vsub.f32 %v11408_v22, %v14072_v29  ;;  %v4823_v43 = vand.u32 4294901760, %v4822_v57  ;;  %v7341_v44 = vpack.c.bf16 %v4817_v8, %v4805_v32  ;;  %v7351_v38 = vpack.c.bf16 %v11963_v39, %v11983_v33 }
 0x631   : > { %4693 = vmatmul.mubr.f32.gmra.mrb[6].mxu1 %v4692_v48  ;;  %v4841_v51 = vand.u32 4294901760, %v4840_v49  ;;  %v7347_v48 = vpack.c.bf16 %v11907_v37, %v11902_v28  ;;  %v7355_v42 = vpack.c.bf16 %v11184_v10, %v11201_v24  ;;  %v7357_v58 = vpack.c.bf16 %v12064_v50, %v12037_v62 }
 0x632   : > { %7338 = vmatpush1.bf16.msra.mxu1 %v7337_v20  ;;  %4883 = vmatprep.mubr.f32.mxu1 %v13156_v46  ;;  %v7343_v14 = vpack.c.bf16 %v4835_v15, %v4823_v43  ;;  %v4829_v6 = vand.u32 4294901760, %v4828_v18  ;;  %v7359_v5 = vpack.c.bf16 %v11332_v13, %v11234_v9  ;;  %v7361_v10 = vpack.c.bf16 %v12079_v56, %v12099_v4  ;;  %v14098_v4 = vld [vmem:[#allocation38_spill] sm:$0xff] }
 0x633   : > { %7340 = vmatprep.subr.bf16.mxu1 %v7339_v45  ;;  %v7363_v24 = vpack.c.bf16 %v11208_v30, %v11313_v2  ;;  %v7365_v9 = vpack.c.bf16 %v12123_v34, %v12109_v26  ;;  %v7367_v13 = vpack.c.bf16 %v11416_v61, %v11365_v0  ;;  %v7369_v57 = vpack.c.bf16 %v11421_v1, %v11408_v22  ;;  %v14073_v2 = vld [vmem:[#allocation41_spill] sm:$0xff]  ;;  %v14074_v30 = vld [vmem:[#allocation58_spill] sm:$0xff]  ;;  %v14075_v0 = vld [vmem:[#allocation8_spill] sm:$0xff] }
 0x634   : > { %v7345_v31 = vpack.c.bf16 %v4841_v51, %v4829_v6  ;;  %v7353_v6 = vpack.c.bf16 %v11995_v41, %v11985_v40  ;;  %v14076_v22 = vld [vmem:[#allocation59_spill] sm:$0xff]  ;;  %v14077_v1 = vld [vmem:[#allocation34_spill] sm:$0xff]  ;;  %v14078_v61 = vld [vmem:[#allocation13_spill] sm:$0xff]  ;;  %v14079_v32 = vand.u32 4294901760, %v11902_v28  ;;  %v14080_v25 = vand.u32 4294901760, %v11907_v37 }
 0x635   : > { %v14081_v20 = vand.u32 4294901760, %v11889_v55  ;;  %v14082_v45 = vand.u32 4294901760, %v11923_v12  ;;  %v14083_v8 = vand.u32 4294901760, %v11967_v17  ;;  %v14084_v29 = vand.u32 4294901760, %v11983_v33 }
 0x636   : > { %7342 = vmatpush1.bf16.msra.mxu1 %v7341_v44  ;;  %v7395_v49 = vpack.c.bf16 %v14080_v25, %v14079_v32  ;;  %v14085_v18 = vand.u32 4294901760, %v11963_v39  ;;  %v14086_v28 = vand.u32 4294901760, %v11985_v40  ;;  %v14087_v37 = vand.u32 4294901760, %v11995_v41  ;;  %v14092_v40 = vld [vmem:[#allocation17_spill] sm:$0xff]  ;;  %v14123_v32 = vld [vmem:[#allocation84_spill] sm:$0xff] }
 0x637   : > { %7344 = vmatprep.subr.bf16.mxu1 %v7343_v14  ;;  %v7397_v15 = vpack.c.bf16 %v14082_v45, %v14081_v20  ;;  %v14088_v12 = vand.u32 4294901760, %v12023_v63  ;;  %v14090_v39 = vand.u32 4294901760, %v12037_v62  ;;  %v14091_v33 = vand.u32 4294901760, %v12064_v50  ;;  %v14095_v50 = vld [vmem:[#allocation54_spill] sm:$0xff] }
 0x638   : > { %v7399_v43 = vpack.c.bf16 %v14085_v18, %v14084_v29  ;;  %v7401_v55 = vpack.c.bf16 %v14087_v37, %v14086_v28  ;;  %v14093_v41 = vand.u32 4294901760, %v12079_v56  ;;  %v14094_v44 = vand.u32 4294901760, %v12095_v7  ;;  %v6715_v56 = vld [vmem:[%s12694_s4 + $0x40] sm:$0xff]  ;;  %v6718_v28 = vld [vmem:[%s12694_s4 + $0x58] sm:$0xff]  ;;  %v14130_v37 = vld [vmem:[#allocation11_spill] sm:$0xff] }
 0x639   : > { %v7405_v51 = vpack.c.bf16 %v14091_v33, %v14090_v39  ;;  %v14096_v62 = vand.u32 4294901760, %v12123_v34  ;;  %v14105_v34 = vld [vmem:[#allocation76_spill] sm:$0xff]  ;;  %v14107_v14 = vld [vmem:[#allocation78_spill] sm:$0xff]  ;;  %v14124_v25 = vand.u32 4294901760, %v14123_v32 }
 0x63a   : > { %7346 = vmatpush1.bf16.msra.mxu1 %v7345_v31  ;;  %v14108_v31 = vand.u32 4294901760, %v14107_v14  ;;  %v14127_v45 = vld [vmem:[#allocation26_spill] sm:$0xff] }
 0x63b   : > { %7348 = vmatprep.subr.bf16.mxu1 %v7347_v48  ;;  %v14109_v48 = vld [vmem:[#allocation64_spill] sm:$0xff]  ;;  %v14134_v39 = vld [vmem:[#allocation30_spill] sm:$0xff] }
 0x63c   : > { %v14135_v33 = vand.u32 4294901760, %v14134_v39 }
 0x63d   : > { %4885 = vmatmul.mubr.f32.vlgmr.msra.gmra.mrb[0].mxu1 %v11920_v54 }
 0x63e   : > { %7350 = vmatpush1.bf16.msra.mxu1 %v7349_v19  ;;  %4890 = vmatprep.mubr.f32.mxu1 %v13156_v46  ;;  %v14110_v19 = vand.u32 4294901760, %v14109_v48 }
 0x63f   : > { %7352 = vmatprep.subr.bf16.mxu1 %v7351_v38 }
 0x640   : > { %v12306_v38 = vpack.c.bf16 %v14110_v19, %v14108_v31  ;;  %v14150_v31 = vld [vmem:[#allocation18_spill] sm:$0xff] }
 0x641   : > { %4892 = vmatmul.mubr.f32.gmra.mrb[2].mxu1 %v11981_v23  ;;  %v14151_v48 = vand.u32 4294901760, %v14150_v31  ;;  %v14152_v19 = vld [vmem:[#allocation46_spill] sm:$0xff] }
 0x642   : > { %7354 = vmatpush1.bf16.msra.mxu1 %v7353_v6  ;;  %4897 = vmatprep.mubr.f32.mxu1 %v13156_v46  ;;  %v6716_v6 = vld [vmem:[%s12694_s4 + $0x48] sm:$0xff] }
 0x643   : > { %7356 = vmatprep.subr.bf16.mxu1 %v7355_v42  ;;  %v14112_v42 = vld [vmem:[#allocation80_spill] sm:$0xff] }
 0x645   : > { %4899 = vmatmul.mubr.f32.gmra.mrb[4].mxu1 %v12025_v11 }
 0x646   : > { %7358 = vmatpush1.bf16.msra.mxu1 %v7357_v58  ;;  %4904 = vmatprep.mubr.f32.mxu1 %v13156_v46  ;;  %v14114_v58 = vld [vmem:[#allocation2_spill] sm:$0xff] }
 0x647   : > { %7360 = vmatprep.subr.bf16.mxu1 %v7359_v5  ;;  %v14115_v5 = vand.u32 4294901760, %v14114_v58 }
 0x649   : > { %4906 = vmatmul.mubr.f32.gmra.mrb[6].mxu1 %v12059_v60 }
 0x64a   : > { %7362 = vmatpush1.bf16.msra.mxu1 %v7361_v10  ;;  %5024 = vmatprep.mubr.f32.mxu1 %v13156_v46 }
 0x64b   : > { %7364 = vmatprep.subr.bf16.mxu1 %v7363_v24  ;;  %v14116_v24 = vld [vmem:[#allocation65_spill] sm:$0xff] }
 0x64e   : > { %7366 = vmatpush1.bf16.msra.mxu1 %v7365_v9  ;;  %v14117_v9 = vand.u32 4294901760, %v14116_v24 }
 0x64f   : > { %7368 = vmatprep.subr.bf16.mxu1 %v7367_v13  ;;  %v14118_v13 = vld [vmem:[#allocation81_spill] sm:$0xff] }
 0x652   : > { %7370 = vmatpush1.bf16.msra.mxu1 %v7369_v57  ;;  %v14119_v57 = vand.u32 4294901760, %v14118_v13 }
 0x653   : > { %7372 = vmatprep.subr.bf16.mxu1 %v11866_v16 }
 0x655   : > { %5027 = vmatmul.mubr.f32.vlgmr.msra.gmra.mrb[0].mxu1 %v11967_v17  ;;  %v14089_v17 = vld [vmem:[#allocation40_spill] sm:$0xff] }
 0x656   : > { %7374 = vmatpush1.bf16.msra.mxu1 %v11879_v27  ;;  %5032 = vmatprep.mubr.f32.mxu1 %v13156_v46 }
 0x657   : > { %7376 = vmatprep.subr.bf16.mxu1 %v11886_v3 }
 0x659   : > { %5035 = vmatmul.mubr.f32.gmra.mrb[2].mxu1 %v12023_v63  ;;  %v7409_v63 = vpack.c.bf16 %v14093_v41, %v4779_v36  ;;  %v14106_v36 = vand.u32 4294901760, %v14105_v34  ;;  %v14147_v34 = vld [vmem:[#allocation12_spill] sm:$0xff] }
 0x65a   : > { %7378 = vmatpush1.bf16.msra.mxu1 %v11918_v59  ;;  %5040 = vmatprep.mubr.f32.mxu1 %v13156_v46 }
 0x65b   : > { %7380 = vmatprep.subr.bf16.mxu1 %v11934_v47 }
 0x65d   : > { %5043 = vmatmul.mubr.f32.gmra.mrb[4].mxu1 %v12057_v21  ;;  %v7413_v21 = vpack.c.bf16 %v14096_v62, %v4803_v35 }
 0x65e   : > { %7382 = vmatpush1.bf16.msra.mxu1 %v14073_v2  ;;  %5048 = vmatprep.mubr.f32.mxu1 %v13156_v46 }
 0x65f   : > { %7384 = vmatprep.subr.bf16.mxu1 %v14074_v30 }
 0x661   : > { %5051 = vmatmul.mubr.f32.gmra.mrb[6].mxu1 %v12095_v7  ;;  %v14103_v7 = vld [vmem:[#allocation44_spill] sm:$0xff] }
 0x662   : > { %7386 = vmatpush1.bf16.msra.mxu1 %v14075_v0  ;;  %5145 = vmatprep.mubr.f32.mxu1 %v13156_v46  ;;  %v14104_v26 = vand.u32 4294901760, %v14103_v7  ;;  %v14145_v7 = vld [vmem:[#allocation70_spill] sm:$0xff] }
 0x663   : > { %7388 = vmatprep.subr.bf16.mxu1 %v14076_v22 }
 0x664   : > { %v12299_v35 = vpack.c.bf16 %v14106_v36, %v14104_v26  ;;  %v14146_v26 = vand.u32 4294901760, %v14145_v7  ;;  %v14148_v36 = vand.u32 4294901760, %v14147_v34  ;;  %v14170_v7 = vld [vmem:[#allocation6_spill] sm:$0xff] }
 0x666   : > { %7390 = vmatpush1.bf16.msra.mxu1 %v14077_v1  ;;  %v12398_v14 = vpack.c.bf16 %v14148_v36, %v14146_v26  ;;  %v14171_v26 = vand.u32 4294901760, %v14170_v7  ;;  %v14172_v36 = vld [vmem:[#allocation7_spill] sm:$0xff] }
 0x667   : > { %7392 = vmatprep.subr.bf16.mxu1 %v14078_v61  ;;  %v14173_v31 = vand.u32 4294901760, %v14172_v36 }
 0x668   : > { %14149 = vst [vmem:[#allocation43_spill] sm:$0xff] %v12398_v14  ;;  %v5743_v34 = vsub.f32 %v14170_v7, %v14171_v26 }
 0x66a   : > { %7394 = vmatpush1.bf16.msra.mxu1 %v12085_v53 }
 0x66b   : > { %7396 = vmatprep.subr.bf16.mxu1 %v7395_v49 }
 0x66d   : > { %5149 = vmatmul.mubr.f32.vlgmr.msra.gmra.mrb[0].mxu1 %v14083_v8 }
 0x66e   : > { %7398 = vmatpush1.bf16.msra.mxu1 %v7397_v15  ;;  %5154 = vmatprep.mubr.f32.mxu1 %v13156_v46  ;;  %v14128_v15 = vand.u32 4294901760, %v14127_v45  ;;  %v14161_v45 = vld [vmem:[#allocation5_spill] sm:$0xff] }
 0x66f   : > { %7400 = vmatprep.subr.bf16.mxu1 %v7399_v43 }
 0x671   : > { %5158 = vmatmul.mubr.f32.gmra.mrb[2].mxu1 %v14088_v12 }
 0x672   : > { %7402 = vmatpush1.bf16.msra.mxu1 %v7401_v55  ;;  %5163 = vmatprep.mubr.f32.mxu1 %v13156_v46  ;;  %v14131_v55 = vand.u32 4294901760, %v14130_v37 }
 0x673   : > { %7404 = vmatprep.subr.bf16.mxu1 %v14089_v17 }
 0x675   : > { %5167 = vmatmul.mubr.f32.gmra.mrb[4].mxu1 %v4679_v52  ;;  %v14097_v52 = vld [vmem:[#allocation28_spill] sm:$0xff] }
 0x676   : > { %7406 = vmatpush1.bf16.msra.mxu1 %v7405_v51  ;;  %5172 = vmatprep.mubr.f32.mxu1 %v13156_v46  ;;  %v5725_v51 = vsub.f32 %v14134_v39, %v14135_v33 }
 0x677   : > { %7408 = vmatprep.subr.bf16.mxu1 %v14092_v40  ;;  %v14136_v40 = vld [vmem:[#allocation23_spill] sm:$0xff] }
 0x678   : > { %v14137_v41 = vand.u32 4294901760, %v14136_v40  ;;  %v14168_v40 = vld [vmem:[#allocation63_spill] sm:$0xff] }
 0x679   : > { %5176 = vmatmul.mubr.f32.gmra.mrb[6].mxu1 %v14094_v44 }
 0x67a   : > { %7410 = vmatpush1.bf16.msra.mxu1 %v7409_v63  ;;  %5318 = vmatprep.mubr.f32.mxu1 %v13156_v46  ;;  %v14138_v63 = vld [vmem:[#allocation29_spill] sm:$0xff] }
 0x67b   : > { %7412 = vmatprep.subr.bf16.mxu1 %v14095_v50  ;;  %v14139_v44 = vand.u32 4294901760, %v14138_v63 }
 0x67d   : > { %v12375_v50 = vpack.c.bf16 %v14139_v44, %v14137_v41  ;;  %v14169_v41 = vand.u32 4294901760, %v14168_v40 }
 0x67e   : > { %7414 = vmatpush1.bf16.msra.mxu1 %v7413_v21 }
 0x67f   : > { %7416 = vmatprep.subr.bf16.mxu1 %v14097_v52  ;;  %v5761_v63 = vsub.f32 %v14168_v40, %v14169_v41 }
 0x682   : > { %7418 = vmatpush1.bf16.msra.mxu1 %v14098_v4  ;;  %v14140_v4 = vld [vmem:[#allocation82_spill] sm:$0xff] }
 0x683   : > { %7420 = vmatprep.subr.bf16.mxu1 %v11866_v16 }
 0x685   : > { %5320 = vmatmul.mubr.f32.vlgmr.msra.gmra.mrb[0].mxu1 %v11920_v54 }
 0x686   : > { %7422 = vmatpush1.bf16.msra.mxu1 %v11879_v27  ;;  %5325 = vmatprep.mubr.f32.mxu1 %v13156_v46 }
 0x687   : > { %7424 = vmatprep.subr.bf16.mxu1 %v11886_v3  ;;  %v14101_v3 = vld [vmem:[#allocation77_spill] sm:$0xff] }
 0x688   : > { %v14102_v27 = vand.u32 4294901760, %v14101_v3  ;;  %v5575_v3 = vsel %vm14142_vm0, %v6718_v28, 0  ;;  %v14163_v28 = vld [vmem:[#allocation72_spill] sm:$0xff] }
 0x689   : > { %5327 = vmatmul.mubr.f32.gmra.mrb[2].mxu1 %v11981_v23  ;;  %v14164_v37 = vand.u32 4294901760, %v14163_v28 }
 0x68a   : > { %7426 = vmatpush1.bf16.msra.mxu1 %v11918_v59  ;;  %5332 = vmatprep.mubr.f32.mxu1 %v13156_v46 }
 0x68b   : > { %7428 = vmatprep.subr.bf16.mxu1 %v11934_v47  ;;  %v14099_v47 = vld [vmem:[#allocation75_spill] sm:$0xff] }
 0x68c   : > { %v14100_v16 = vand.u32 4294901760, %v14099_v47  ;;  %v14141_v47 = vand.u32 4294901760, %v14140_v4 }
 0x68d   : > { %5334 = vmatmul.mubr.f32.gmra.mrb[4].mxu1 %v12025_v11 }
 0x68e   : > { %7430 = vmatpush1.bf16.msra.mxu1 %v14073_v2  ;;  %5339 = vmatprep.mubr.f32.mxu1 %v13156_v46  ;;  %v12288_v59 = vpack.c.bf16 %v14102_v27, %v14100_v16  ;;  %v12325_v2 = vpack.c.bf16 %v14119_v57, %v14117_v9  ;;  %v5713_v16 = vsub.f32 %v14140_v4, %v14141_v47  ;;  %v14143_v27 = vld [vmem:[#allocation14_spill] sm:$0xff]  ;;  %v12416_v57 = vand.u32 4294901760, %v5575_v3 }
 0x68f   : > { %7432 = vmatprep.subr.bf16.mxu1 %v14074_v30 }
 0x691   : > { %5341 = vmatmul.mubr.f32.gmra.mrb[6].mxu1 %v12059_v60 }
 0x692   : > { %7434 = vmatpush1.bf16.msra.mxu1 %v14075_v0  ;;  %5435 = vmatprep.mubr.f32.mxu1 %v13156_v46  ;;  %v5569_v0 = vsel %vm14120_vm1, %v6716_v6, 0 }
 0x693   : > { %7436 = vmatprep.subr.bf16.mxu1 %v14076_v22  ;;  %v6717_v22 = vld [vmem:[%s12694_s4 + $0x50] sm:$0xff]  ;;  %v12353_v18 = vand.u32 4294901760, %v5569_v0 }
 0x694   : > { %v5572_v43 = vsel %vm14129_vm2, %v6717_v22, 0 }
 0x695   : > { %v12380_v21 = vsub.f32 %v5569_v0, %v12353_v18  ;;  %v12382_v52 = vand.u32 4294901760, %v5572_v43  ;;  %v14157_v0 = vld [vmem:[#allocation83_spill] sm:$0xff] }
 0x696   : > { %7438 = vmatpush1.bf16.msra.mxu1 %v14077_v1  ;;  %v14121_v1 = vld [vmem:[#allocation19_spill] sm:$0xff]  ;;  %v14158_v22 = vand.u32 4294901760, %v14157_v0 }
 0x697   : > { %7440 = vmatprep.subr.bf16.mxu1 %v14078_v61  ;;  %v14122_v61 = vand.u32 4294901760, %v14121_v1  ;;  %v13089_v9 = vand.u32 4294901760, %v12380_v21  ;;  %v12414_v13 = vsub.f32 %v5572_v43, %v12382_v52 }
 0x698   : > { %v5719_v1 = vsub.f32 %v14157_v0, %v14158_v22  ;;  %v14176_v22 = vld [vmem:[#allocation86_spill] sm:$0xff] }
 0x699   : > { %v12341_v49 = vpack.c.bf16 %v14124_v25, %v14122_v61  ;;  %v5714_v61 = vand.u32 4294901760, %v5713_v16  ;;  %v14159_v25 = vld [vmem:[#allocation15_spill] sm:$0xff]  ;;  %v5680_v47 = vsub.f32 %v12380_v21, %v13089_v9  ;;  %v13088_v16 = vand.u32 4294901760, %v12414_v13 }
 0x69a   : > { %7442 = vmatpush1.bf16.msra.mxu1 %v12085_v53  ;;  %v5566_v53 = vsel %vm14111_vm8, %v6715_v56, 0  ;;  %v14144_v56 = vand.u32 4294901760, %v14143_v27 }
 0x69b   : > { %7444 = vmatprep.subr.bf16.mxu1 %v12288_v59  ;;  %v12328_v30 = vand.u32 4294901760, %v5566_v53  ;;  %v5691_v28 = vsub.f32 %v12414_v13, %v13088_v16  ;;  %v14192_v16 = vld [vmem:[#allocation89_spill] sm:$0xff] }
 0x69d   : > { %5437 = vmatmul.mubr.f32.vlgmr.msra.gmra.mrb[0].mxu1 %v11920_v54  ;;  %v14113_v54 = vand.u32 4294901760, %v14112_v42  ;;  %v12351_v29 = vsub.f32 %v5566_v53, %v12328_v30  ;;  %v14153_v53 = vand.u32 4294901760, %v14152_v19  ;;  %v5726_v42 = vand.u32 4294901760, %v5725_v51 }
 0x69e   : > { %7446 = vmatpush1.bf16.msra.mxu1 %v12299_v35  ;;  %5442 = vmatprep.mubr.f32.mxu1 %v13156_v46 }
 0x69f   : > { %7448 = vmatprep.subr.bf16.mxu1 %v12306_v38  ;;  %v12319_v10 = vpack.c.bf16 %v14115_v5, %v14113_v54  ;;  %v13090_v62 = vand.u32 4294901760, %v12351_v29  ;;  %v12404_v6 = vpack.c.bf16 %v14153_v53, %v14151_v48  ;;  %v14155_v54 = vld [vmem:[#allocation31_spill] sm:$0xff]  ;;  %v7467_v33 = vpack.c.bf16 %v5726_v42, %v5714_v61  ;;  %v14174_v53 = vld [vmem:[#allocation20_spill] sm:$0xff] }
 0x6a0   : > { %v14156_v58 = vand.u32 4294901760, %v14155_v54  ;;  %v5767_v48 = vsub.f32 %v14172_v36, %v14173_v31  ;;  %v14175_v42 = vand.u32 4294901760, %v14174_v53 }
 0x6a1   : > { %5444 = vmatmul.mubr.f32.gmra.mrb[2].mxu1 %v11981_v23  ;;  %v14125_v23 = vld [vmem:[#allocation50_spill] sm:$0xff]  ;;  %14154 = vst [vmem:[#allocation67_spill] sm:$0xff] %v12404_v6  ;;  %v5669_v24 = vsub.f32 %v12351_v29, %v13090_v62 }
 0x6a2   : > { %7450 = vmatpush1.bf16.msra.mxu1 %v12319_v10  ;;  %5449 = vmatprep.mubr.f32.mxu1 %v13156_v46  ;;  %v14126_v20 = vand.u32 4294901760, %v14125_v23  ;;  %v5749_v5 = vsub.f32 %v14155_v54, %v14156_v58  ;;  %v14160_v23 = vand.u32 4294901760, %v14159_v25  ;;  %v5773_v58 = vsub.f32 %v14174_v53, %v14175_v42 }
 0x6a3   : > { %7452 = vmatprep.subr.bf16.mxu1 %v12325_v2  ;;  %v5670_v44 = vand.u32 4294901760, %v5669_v24  ;;  %v5762_v24 = vand.u32 4294901760, %v5761_v63  ;;  %v5768_v63 = vand.u32 4294901760, %v5767_v48 }
 0x6a4   : > { %v12347_v8 = vpack.c.bf16 %v14128_v15, %v14126_v20  ;;  %v5755_v20 = vsub.f32 %v14159_v25, %v14160_v23  ;;  %v14162_v15 = vand.u32 4294901760, %v14161_v45  ;;  %v5750_v51 = vand.u32 4294901760, %v5749_v5 }
 0x6a5   : > { %5451 = vmatmul.mubr.f32.gmra.mrb[4].mxu1 %v12025_v11  ;;  %v14132_v11 = vld [vmem:[#allocation4_spill] sm:$0xff] }
 0x6a6   : > { %7454 = vmatpush1.bf16.msra.mxu1 %v12341_v49  ;;  %5456 = vmatprep.mubr.f32.mxu1 %v13156_v46  ;;  %v14133_v12 = vand.u32 4294901760, %v14132_v11  ;;  %v5737_v43 = vsub.f32 %v14161_v45, %v14162_v15  ;;  %v5756_v5 = vand.u32 4294901760, %v5755_v20  ;;  %v5681_v15 = vand.u32 4294901760, %v5680_v47 }
 0x6a7   : > { %7456 = vmatprep.subr.bf16.mxu1 %v12347_v8 }
 0x6a8   : > { %v12366_v17 = vpack.c.bf16 %v14133_v12, %v14131_v55  ;;  %v14165_v55 = vld [vmem:[#allocation45_spill] sm:$0xff]  ;;  %v5738_v19 = vand.u32 4294901760, %v5737_v43 }
 0x6a9   : > { %5458 = vmatmul.mubr.f32.gmra.mrb[6].mxu1 %v12059_v60  ;;  %v5731_v60 = vsub.f32 %v14143_v27, %v14144_v56  ;;  %v14166_v11 = vand.u32 4294901760, %v14165_v55  ;;  %v12443_v56 = vsub.f32 %v5575_v3, %v12416_v57  ;;  %v14178_v55 = vld [vmem:[#allocation66_spill] sm:$0xff] }
 0x6aa   : > { %7458 = vmatpush1.bf16.msra.mxu1 %v12366_v17  ;;  %5665 = vmatprep.mubr.f32.mxu1 %v13156_v46  ;;  %v7471_v23 = vpack.c.bf16 %v5750_v51, %v5738_v19 }
 0x6ab   : > { %7460 = vmatprep.subr.bf16.mxu1 %v12375_v50  ;;  %v5732_v32 = vand.u32 4294901760, %v5731_v60  ;;  %v12433_v12 = vpack.c.bf16 %v14166_v11, %v14164_v37  ;;  %v5720_v60 = vand.u32 4294901760, %v5719_v1  ;;  %v14177_v1 = vand.u32 4294901760, %v14176_v22 }
 0x6ac   : > { %v13087_v43 = vand.u32 4294901760, %v12443_v56  ;;  %v5744_v37 = vand.u32 4294901760, %v5743_v34  ;;  %v14179_v11 = vand.u32 4294901760, %v14178_v55  ;;  %v14184_v34 = vld [vmem:[#allocation85_spill] sm:$0xff] }
 0x6ad   : > { %14167 = vst [vmem:[#allocation69_spill] sm:$0xff] %v12433_v12  ;;  %v7469_v3 = vpack.c.bf16 %v5732_v32, %v5720_v60  ;;  %v5797_v61 = vsub.f32 %v14176_v22, %v14177_v1  ;;  %v5774_v32 = vand.u32 4294901760, %v5773_v58  ;;  %v14185_v31 = vand.u32 4294901760, %v14184_v34 }
 0x6ae   : > { %7462 = vmatpush1.bf16.msra.mxu1 %v12398_v14  ;;  %v5779_v20 = vsub.f32 %v14178_v55, %v14179_v11  ;;  %v7473_v26 = vpack.c.bf16 %v5756_v5, %v5744_v37  ;;  %v5692_v1 = vand.u32 4294901760, %v5691_v28  ;;  %v5702_v58 = vsub.f32 %v12443_v56, %v13087_v43  ;;  %v14186_v11 = vld [vmem:[#allocation62_spill] sm:$0xff]  ;;  %v14188_v37 = vld [vmem:[#allocation16_spill] sm:$0xff] }
 0x6af   : > { %7464 = vmatprep.subr.bf16.mxu1 %v12404_v6  ;;  %v5809_v19 = vsub.f32 %v14184_v34, %v14185_v31  ;;  %v7475_v42 = vpack.c.bf16 %v5774_v32, %v5762_v24  ;;  %v14187_v48 = vand.u32 4294901760, %v14186_v11 }
 0x6b0   : > { %v5703_v9 = vand.u32 4294901760, %v5702_v58 }
 0x6b1   : > { %v5810_v43 = vand.u32 4294901760, %v5809_v19 }
 0x6b2   : > { %7466 = vmatpush1.bf16.msra.mxu1 %v12433_v12 }
 0x6b3   : > { %7468 = vmatprep.subr.bf16.mxu1 %v7467_v33  ;;  %v14180_v33 = vld [vmem:[#allocation91_spill] sm:$0xff] }
 0x6b4   : > { %v14181_v41 = vand.u32 4294901760, %v14180_v33 }
 0x6b5   : > { %5671 = vmatmul.mubr.f32.vlgmr.msra.gmra.mrb[0].mxu1 %v5670_v44  ;;  %v14182_v44 = vld [vmem:[#allocation87_spill] sm:$0xff] }
 0x6b6   : > { %7470 = vmatpush1.bf16.msra.mxu1 %v7469_v3  ;;  %5676 = vmatprep.mubr.f32.mxu1 %v13156_v46  ;;  %v5785_v51 = vsub.f32 %v14180_v33, %v14181_v41  ;;  %v14183_v47 = vand.u32 4294901760, %v14182_v44  ;;  %v5798_v3 = vand.u32 4294901760, %v5797_v61  ;;  %v5791_v41 = vsub.f32 %v14186_v11, %v14187_v48  ;;  %v14190_v61 = vld [vmem:[#allocation88_spill] sm:$0xff] }
 0x6b7   : > { %7472 = vmatprep.subr.bf16.mxu1 %v7471_v23  ;;  %v5780_v23 = vand.u32 4294901760, %v5779_v20  ;;  %v14193_v48 = vand.u32 4294901760, %v14192_v16 }
 0x6b8   : > { %v5803_v60 = vsub.f32 %v14182_v44, %v14183_v47  ;;  %v5786_v5 = vand.u32 4294901760, %v5785_v51  ;;  %v14189_v47 = vand.u32 4294901760, %v14188_v37  ;;  %v5792_v12 = vand.u32 4294901760, %v5791_v41  ;;  %v14200_v41 = vld [vmem:[#allocation93_spill] sm:$0xff] }
 0x6b9   : > { %5682 = vmatmul.mubr.f32.gmra.mrb[2].mxu1 %v5681_v15  ;;  %v14191_v15 = vand.u32 4294901760, %v14190_v61  ;;  %v7477_v31 = vpack.c.bf16 %v5780_v23, %v5768_v63 }
 0x6ba   : > { %7474 = vmatpush1.bf16.msra.mxu1 %v7473_v26  ;;  %5687 = vmatprep.mubr.f32.mxu1 %v13156_v46  ;;  %v5821_v24 = vsub.f32 %v14188_v37, %v14189_v47  ;;  %v5804_v32 = vand.u32 4294901760, %v5803_v60  ;;  %v7479_v20 = vpack.c.bf16 %v5798_v3, %v5786_v5  ;;  %v5845_v26 = vsub.f32 %v14192_v16, %v14193_v48  ;;  %v14196_v60 = vld [vmem:[#allocation92_spill] sm:$0xff] }
 0x6bb   : > { %7476 = vmatprep.subr.bf16.mxu1 %v7475_v42  ;;  %v5815_v28 = vsub.f32 %v14190_v61, %v14191_v15  ;;  %v14194_v42 = vld [vmem:[#allocation10_spill] sm:$0xff]  ;;  %v14197_v63 = vand.u32 4294901760, %v14196_v60 }
 0x6bc   : > { %v14195_v51 = vand.u32 4294901760, %v14194_v42  ;;  %v5822_v47 = vand.u32 4294901760, %v5821_v24  ;;  %v7481_v58 = vpack.c.bf16 %v5804_v32, %v5792_v12  ;;  %v5846_v48 = vand.u32 4294901760, %v5845_v26  ;;  %v14217_v32 = vld [vmem:[#allocation98_spill] sm:$0xff]  ;;  %v14218_v26 = vld [vmem:[#allocation37_spill] sm:$0xff] }
 0x6bd   : > { %5693 = vmatmul.mubr.f32.gmra.mrb[4].mxu1 %v5692_v1  ;;  %v5833_v19 = vsub.f32 %v14196_v60, %v14197_v63  ;;  %v5816_v3 = vand.u32 4294901760, %v5815_v28  ;;  %v14198_v1 = vld [vmem:[#allocation90_spill] sm:$0xff] }
 0x6be   : > { %v5827_v62 = vsub.f32 %v14194_v42, %v14195_v51  ;;  %7478 = vmatpush1.bf16.msra.mxu1 %v7477_v31  ;;  %5698 = vmatprep.mubr.f32.mxu1 %v13156_v46  ;;  %v14199_v23 = vand.u32 4294901760, %v14198_v1  ;;  %v7483_v15 = vpack.c.bf16 %v5822_v47, %v5810_v43  ;;  %v14201_v31 = vand.u32 4294901760, %v14200_v41 }
 0x6bf   : > { %7480 = vmatprep.subr.bf16.mxu1 %v7479_v20  ;;  %v5834_v24 = vand.u32 4294901760, %v5833_v19  ;;  %v7495_v43 = vpack.c.bf16 %v14155_v54, %v14161_v45  ;;  %v7507_v54 = vpack.c.bf16 %v14188_v37, %v14184_v34  ;;  %v7513_v45 = vpack.c.bf16 %v14198_v1, %v14200_v41  ;;  %v14211_v34 = vld [vmem:[#allocation94_spill] sm:$0xff]  ;;  %v14214_v37 = vld [vmem:[#allocation96_spill] sm:$0xff] }
 0x6c0   : > { %v5851_v5 = vsub.f32 %v14198_v1, %v14199_v23  ;;  %v5828_v51 = vand.u32 4294901760, %v5827_v62  ;;  %v5839_v6 = vsub.f32 %v14200_v41, %v14201_v31  ;;  %v7493_v62 = vpack.c.bf16 %v14143_v27, %v14157_v0 }
 0x6c1   : > { %5704 = vmatmul.mubr.f32.gmra.mrb[6].mxu1 %v5703_v9  ;;  %v7487_v63 = vpack.c.bf16 %v5846_v48, %v5834_v24  ;;  %v7491_v9 = vpack.c.bf16 %v14134_v39, %v14140_v4  ;;  %v7499_v39 = vpack.c.bf16 %v14174_v53, %v14168_v40  ;;  %v7501_v4 = vpack.c.bf16 %v14178_v55, %v14172_v36  ;;  %v14202_v40 = vld [vmem:[#allocation43_spill] sm:$0xff]  ;;  %v14208_v55 = vld [vmem:[#allocation22_spill] sm:$0xff] }
 0x6c2   : > { %7482 = vmatpush1.bf16.msra.mxu1 %v7481_v58  ;;  %5894 = vmatprep.mubr.f32.mxu1 %v13156_v46  ;;  %v5852_v20 = vand.u32 4294901760, %v5851_v5  ;;  %v7485_v28 = vpack.c.bf16 %v5828_v51, %v5816_v3  ;;  %v5840_v14 = vand.u32 4294901760, %v5839_v6  ;;  %v7503_v27 = vpack.c.bf16 %v14176_v22, %v14180_v33  ;;  %v14205_v36 = vld [vmem:[#allocation27_spill] sm:$0xff] }
 0x6c3   : > { %7484 = vmatprep.subr.bf16.mxu1 %v7483_v15  ;;  %v7505_v6 = vpack.c.bf16 %v14182_v44, %v14186_v11  ;;  %v7509_v0 = vpack.c.bf16 %v14194_v42, %v14190_v61  ;;  %v14206_v53 = vand.u32 4294901760, %v12351_v29  ;;  %v14207_v22 = vld [vmem:[#allocation35_spill] sm:$0xff]  ;;  %v14209_v33 = vand.u32 4294901760, %v12380_v21  ;;  %v14210_v44 = vld [vmem:[#allocation36_spill] sm:$0xff] }
 0x6c4   : > { %v7489_v12 = vpack.c.bf16 %v5852_v20, %v5840_v14  ;;  %v7497_v14 = vpack.c.bf16 %v14159_v25, %v14170_v7  ;;  %v7511_v25 = vpack.c.bf16 %v14192_v16, %v14196_v60  ;;  %v14203_v16 = vld [vmem:[#allocation67_spill] sm:$0xff]  ;;  %v14204_v7 = vld [vmem:[#allocation69_spill] sm:$0xff]  ;;  %v14212_v11 = vand.u32 4294901760, %v12414_v13 }
 0x6c5   : > { %v14215_v61 = vand.u32 4294901760, %v12443_v56  ;;  %v14219_v42 = vld [vmem:[#allocation99_spill] sm:$0xff] }
 0x6c6   : > { %7486 = vmatpush1.bf16.msra.mxu1 %v7485_v28 }
 0x6c7   : > { %7488 = vmatprep.subr.bf16.mxu1 %v7487_v63 }
 0x6ca   : > { %7490 = vmatpush1.bf16.msra.mxu1 %v7489_v12 }
 0x6cb   : > { %7492 = vmatprep.subr.bf16.mxu1 %v7491_v9 }
 0x6cd   : > { %5896 = vmatmul.mubr.f32.vlgmr.msra.gmra.mrb[0].mxu1 %v12328_v30 }
 0x6ce   : > { %7494 = vmatpush1.bf16.msra.mxu1 %v7493_v62  ;;  %5901 = vmatprep.mubr.f32.mxu1 %v13156_v46 }
 0x6cf   : > { %7496 = vmatprep.subr.bf16.mxu1 %v7495_v43 }
 0x6d1   : > { %5903 = vmatmul.mubr.f32.gmra.mrb[2].mxu1 %v12353_v18 }
 0x6d2   : > { %7498 = vmatpush1.bf16.msra.mxu1 %v7497_v14  ;;  %5908 = vmatprep.mubr.f32.mxu1 %v13156_v46 }
 0x6d3   : > { %7500 = vmatprep.subr.bf16.mxu1 %v7499_v39 }
 0x6d5   : > { %5910 = vmatmul.mubr.f32.gmra.mrb[4].mxu1 %v12382_v52 }
 0x6d6   : > { %7502 = vmatpush1.bf16.msra.mxu1 %v7501_v4  ;;  %5915 = vmatprep.mubr.f32.mxu1 %v13156_v46 }
 0x6d7   : > { %7504 = vmatprep.subr.bf16.mxu1 %v7503_v27 }
 0x6d9   : > { %5917 = vmatmul.mubr.f32.gmra.mrb[6].mxu1 %v12416_v57 }
 0x6da   : > { %7506 = vmatpush1.bf16.msra.mxu1 %v7505_v6  ;;  %6035 = vmatprep.mubr.f32.mxu1 %v13156_v46  ;;  %v6576_v6 = vld [vmem:[%s12696_s6 + $0x8] sm:$0xff] }
 0x6db   : > { %7508 = vmatprep.subr.bf16.mxu1 %v7507_v54  ;;  %v6575_v54 = vld [vmem:[%s12696_s6] sm:$0xff] }
 0x6de   : > { %7510 = vmatpush1.bf16.msra.mxu1 %v7509_v0 }
 0x6df   : > { %7512 = vmatprep.subr.bf16.mxu1 %v7511_v25 }
 0x6e2   : > { %7514 = vmatpush1.bf16.msra.mxu1 %v7513_v45 }
 0x6e3   : > { %7516 = vmatprep.subr.bf16.mxu1 %v12288_v59 }
 0x6e5   : > { %6038 = vmatmul.mubr.f32.vlgmr.msra.gmra.mrb[0].mxu1 %v12351_v29  ;;  %v14213_v29 = vld [vmem:[#allocation95_spill] sm:$0xff] }
 0x6e6   : > { %7518 = vmatpush1.bf16.msra.mxu1 %v12299_v35  ;;  %6043 = vmatprep.mubr.f32.mxu1 %v13156_v46 }
 0x6e7   : > { %7520 = vmatprep.subr.bf16.mxu1 %v12306_v38 }
 0x6e9   : > { %6046 = vmatmul.mubr.f32.gmra.mrb[2].mxu1 %v12380_v21  ;;  %v14216_v21 = vld [vmem:[#allocation97_spill] sm:$0xff] }
 0x6ea   : > { %7522 = vmatpush1.bf16.msra.mxu1 %v12319_v10  ;;  %6051 = vmatprep.mubr.f32.mxu1 %v13156_v46 }
 0x6eb   : > { %7524 = vmatprep.subr.bf16.mxu1 %v12325_v2 }
 0x6ed   : > { %6054 = vmatmul.mubr.f32.gmra.mrb[4].mxu1 %v12414_v13  ;;  %v14220_v13 = vld [vmem:[#allocation100_spill] sm:$0xff] }
 0x6ee   : > { %7526 = vmatpush1.bf16.msra.mxu1 %v12341_v49  ;;  %6059 = vmatprep.mubr.f32.mxu1 %v13156_v46 }
 0x6ef   : > { %7528 = vmatprep.subr.bf16.mxu1 %v12347_v8 }
 0x6f1   : > { %6062 = vmatmul.mubr.f32.gmra.mrb[6].mxu1 %v12443_v56 }
 0x6f2   : > { %7530 = vmatpush1.bf16.msra.mxu1 %v12366_v17  ;;  %6156 = vmatprep.mubr.f32.mxu1 %v13156_v46 }
 0x6f3   : > { %7532 = vmatprep.subr.bf16.mxu1 %v12375_v50 }
 0x6f6   : > { %7534 = vmatpush1.bf16.msra.mxu1 %v14202_v40 }
 0x6f7   : > { %7536 = vmatprep.subr.bf16.mxu1 %v14203_v16 }
 0x6fa   : > { %7538 = vmatpush1.bf16.msra.mxu1 %v14204_v7 }
 0x6fb   : > { %7540 = vmatprep.subr.bf16.mxu1 %v14205_v36 }
 0x6fd   : > { %6160 = vmatmul.mubr.f32.vlgmr.msra.gmra.mrb[0].mxu1 %v14206_v53 }
 0x6fe   : > { %7542 = vmatpush1.bf16.msra.mxu1 %v14207_v22  ;;  %6165 = vmatprep.mubr.f32.mxu1 %v13156_v46 }
 0x6ff   : > { %7544 = vmatprep.subr.bf16.mxu1 %v14208_v55 }
 0x701   : > { %6169 = vmatmul.mubr.f32.gmra.mrb[2].mxu1 %v14209_v33 }
 0x702   : > { %7546 = vmatpush1.bf16.msra.mxu1 %v14210_v44  ;;  %6174 = vmatprep.mubr.f32.mxu1 %v13156_v46  ;;  %v6531_v44 = vld [vmem:[%s12695_s5] sm:$0xff] }
 0x703   : > { %7548 = vmatprep.subr.bf16.mxu1 %v14211_v34 }
 0x705   : > { %6178 = vmatmul.mubr.f32.gmra.mrb[4].mxu1 %v14212_v11 }
 0x706   : > { %7550 = vmatpush1.bf16.msra.mxu1 %v14213_v29  ;;  %6183 = vmatprep.mubr.f32.mxu1 %v13156_v46 }
 0x707   : > { %7552 = vmatprep.subr.bf16.mxu1 %v14214_v37  ;;  %v6532_v37 = vld [vmem:[%s12695_s5 + $0x8] sm:$0xff] }
 0x709   : > { %6187 = vmatmul.mubr.f32.gmra.mrb[6].mxu1 %v14215_v61 }
 0x70a   : > { %7554 = vmatpush1.bf16.msra.mxu1 %v14216_v21  ;;  %6329 = vmatprep.mubr.f32.mxu1 %v13156_v46 }
 0x70b   : > { %7556 = vmatprep.subr.bf16.mxu1 %v14217_v32  ;;  %v6533_v32 = vld [vmem:[%s12695_s5 + $0x10] sm:$0xff] }
 0x70e   : > { %7558 = vmatpush1.bf16.msra.mxu1 %v14218_v26 }
 0x70f   : > { %7560 = vmatprep.subr.bf16.mxu1 %v14219_v42  ;;  %v6577_v42 = vld [vmem:[%s12696_s6 + $0x10] sm:$0xff] }
 0x712   : > { %7562 = vmatpush1.bf16.msra.mxu1 %v14220_v13 }
 0x713   : > { %7564 = vmatprep.subr.bf16.mxu1 %v12288_v59 }
 0x715   : > { %6331 = vmatmul.mubr.f32.vlgmr.msra.gmra.mrb[0].mxu1 %v12328_v30 }
 0x716   : > { %7566 = vmatpush1.bf16.msra.mxu1 %v12299_v35  ;;  %6336 = vmatprep.mubr.f32.mxu1 %v13156_v46 }
 0x717   : > { %7568 = vmatprep.subr.bf16.mxu1 %v12306_v38 }
 0x719   : > { %6338 = vmatmul.mubr.f32.gmra.mrb[2].mxu1 %v12353_v18 }
 0x71a   : > { %7570 = vmatpush1.bf16.msra.mxu1 %v12319_v10  ;;  %6343 = vmatprep.mubr.f32.mxu1 %v13156_v46 }
 0x71b   : > { %7572 = vmatprep.subr.bf16.mxu1 %v12325_v2 }
 0x71d   : > { %6345 = vmatmul.mubr.f32.gmra.mrb[4].mxu1 %v12382_v52 }
 0x71e   : > { %7574 = vmatpush1.bf16.msra.mxu1 %v12341_v49  ;;  %6350 = vmatprep.mubr.f32.mxu1 %v13156_v46 }
 0x71f   : > { %7576 = vmatprep.subr.bf16.mxu1 %v12347_v8 }
 0x721   : > { %6352 = vmatmul.mubr.f32.gmra.mrb[6].mxu1 %v12416_v57 }
 0x722   : > { %7578 = vmatpush1.bf16.msra.mxu1 %v12366_v17  ;;  %6446 = vmatprep.mubr.f32.mxu1 %v13156_v46 }
 0x723   : > { %7580 = vmatprep.subr.bf16.mxu1 %v12375_v50 }
 0x726   : > { %7582 = vmatpush1.bf16.msra.mxu1 %v14202_v40 }
 0x727   : > { %7584 = vmatprep.subr.bf16.mxu1 %v14203_v16 }
 0x72a   : > { %7586 = vmatpush1.bf16.msra.mxu1 %v14204_v7 }
 0x72d   : > { %6448 = vmatmul.mubr.f32.vlgmr.msra.gmra.mrb[0].mxu1 %v12328_v30 }
 0x72e   : > { %6453 = vmatprep.mubr.f32.mxu1 %v13156_v46 }
 0x731   : > { %6455 = vmatmul.mubr.f32.gmra.mrb[2].mxu1 %v12353_v18 }
 0x732   : > { %6460 = vmatprep.mubr.f32.mxu1 %v13156_v46 }
 0x735   : > { %6462 = vmatmul.mubr.f32.gmra.mrb[4].mxu1 %v12382_v52 }
 0x736   : > { %6467 = vmatprep.mubr.f32.mxu1 %v13156_v46 }
 0x739   : > { %6469 = vmatmul.mubr.f32.gmra.mrb[6].mxu1 %v12416_v57 }
 0x800   : > { %v6449_v59 = vpop.f32.mrb[0].mxu1 }
 0x801   : > { %v6451_v35 = vpop.f32.mrb[1].mxu1 }
 0x802   : > { %v6483_v38 = vadd.f32 %v6451_v35, %v6449_v59 }
 0x804   : > { %6484 = vadd.xlane.f32.xlu0 %v6483_v38  ;;  %v6456_v10 = vpop.f32.mrb[2].mxu1 }
 0x805   : > { %v6458_v2 = vpop.f32.mrb[3].mxu1 }
 0x806   : > { %v6486_v49 = vadd.f32 %v6458_v2, %v6456_v10 }
 0x808   : > { %6487 = vadd.xlane.f32.xlu1 %v6486_v49  ;;  %v6463_v30 = vpop.f32.mrb[4].mxu1 }
 0x809   : > { %v6465_v8 = vpop.f32.mrb[5].mxu1 }
 0x80a   : > { %v6489_v17 = vadd.f32 %v6465_v8, %v6463_v30 }
 0x80c   : > { %6490 = vadd.xlane.f32.xlu0 %v6489_v17  ;;  %v6470_v18 = vpop.f32.mrb[6].mxu1 }
 0x80d   : > { %v6472_v50 = vpop.f32.mrb[7].mxu1 }
 0x80e   : > { %v6492_v56 = vadd.f32 %v6472_v50, %v6470_v18 }
 0x810   : > { %6493 = vadd.xlane.f32.xlu0 %v6492_v56 }
 0x891   : > { %v6485_v52 = vpop.xlane.xlu0 %6484 }
 0x892   : > { %v6495_v46 = vmul.f32 0.00390625, %v6485_v52 }
 0x894   : > { %v12608_v47 = vsub.f32 %v6449_v59, %v6495_v46  ;;  %v12610_v57 = vsub.f32 %v6451_v35, %v6495_v46  ;;  %v6534_v59 = vld [vmem:[%s12695_s5 + $0x18] sm:$0xff] }
 0x895   : > { %v6488_v60 = vpop.xlane.xlu1 %6487 }
 0x896   : > { %v6507_v19 = vmul.f32 %v12608_v47, %v12608_v47  ;;  %v6508_v3 = vmul.f32 %v12610_v57, %v12610_v57  ;;  %v6496_v1 = vmul.f32 0.00390625, %v6488_v60 }
 0x898   : > { %v12616_v23 = vsub.f32 %v6456_v10, %v6496_v1  ;;  %v12618_v5 = vsub.f32 %v6458_v2, %v6496_v1  ;;  %v6515_v58 = vadd.f32 %v6508_v3, %v6507_v19  ;;  %v6578_v10 = vld [vmem:[%s12696_s6 + $0x18] sm:$0xff] }
 0x899   : > { %v6491_v15 = vpop.xlane.xlu0 %6490 }
 0x89a   : > { %v6509_v48 = vmul.f32 %v12616_v23, %v12616_v23  ;;  %v6510_v51 = vmul.f32 %v12618_v5, %v12618_v5  ;;  %v6497_v41 = vmul.f32 0.00390625, %v6491_v15  ;;  %6516 = vadd.xlane.f32.xlu1 %v6515_v58 }
 0x89c   : > { %v12624_v31 = vsub.f32 %v6463_v30, %v6497_v41  ;;  %v12626_v24 = vsub.f32 %v6465_v8, %v6497_v41  ;;  %v6518_v20 = vadd.f32 %v6510_v51, %v6509_v48 }
 0x89d   : > { %v6494_v28 = vpop.xlane.xlu0 %6493 }
 0x89e   : > { %v6511_v63 = vmul.f32 %v12624_v31, %v12624_v31  ;;  %v6512_v12 = vmul.f32 %v12626_v24, %v12626_v24  ;;  %v6498_v9 = vmul.f32 0.00390625, %v6494_v28  ;;  %6519 = vadd.xlane.f32.xlu0 %v6518_v20 }
 0x8a0   : > { %v12632_v62 = vsub.f32 %v6470_v18, %v6498_v9  ;;  %v12634_v43 = vsub.f32 %v6472_v50, %v6498_v9  ;;  %v6521_v14 = vadd.f32 %v6512_v12, %v6511_v63 }
 0x8a2   : > { %v6513_v39 = vmul.f32 %v12632_v62, %v12632_v62  ;;  %v6514_v4 = vmul.f32 %v12634_v43, %v12634_v43  ;;  %6522 = vadd.xlane.f32.xlu1 %v6521_v14 }
 0x8a4   : > { %v6524_v27 = vadd.f32 %v6514_v4, %v6513_v39 }
 0x8a6   : > { %6525 = vadd.xlane.f32.xlu0 %v6524_v27 }
 0x8b3   : > { %6586 = vperm.xlu1 %7877, %v6576_v6  }
 0x8bc   : > { %6581 = vperm.xlu0 %7878, %v6575_v54  }
 0x927   : > { %v6517_v0 = vpop.xlane.xlu1 %6516 }
 0x928   : > { %v6527_v25 = vmul.f32 0.00390625, %v6517_v0 }
 0x92a   : > { %v6535_v45 = vadd.f32 1e-05, %v6527_v25 }
 0x92b   : > { %v6520_v40 = vpop.xlane.xlu0 %6519 }
 0x92c   : > { %7887 = vrsqrt.f32 %v6535_v45  ;;  %v6528_v16 = vmul.f32 0.00390625, %v6520_v40 }
 0x92e   : > { %v6536_v7 = vadd.f32 1e-05, %v6528_v16 }
 0x92f   : > { %v6523_v36 = vpop.xlane.xlu1 %6522 }
 0x930   : > { %7889 = vrsqrt.f32 %v6536_v7  ;;  %v6529_v53 = vmul.f32 0.00390625, %v6523_v36 }
 0x932   : > { %v6537_v22 = vadd.f32 1e-05, %v6529_v53 }
 0x933   : > { %v6526_v55 = vpop.xlane.xlu0 %6525  ;;  %v6587_v2 = vpop.permute.xlu1 %6586 }
 0x934   : > { %7891 = vrsqrt.f32 %v6537_v22  ;;  %v6530_v33 = vmul.f32 0.00390625, %v6526_v55 }
 0x936   : > { %v7888_v34 = vpop.eup %7887  ;;  %v6538_v11 = vadd.f32 1e-05, %v6530_v33 }
 0x937   : > { %v6543_v29 = vmul.f32 %v7888_v34, %v6531_v44 }
 0x938   : > { %7893 = vrsqrt.f32 %v6538_v11 }
 0x939   : > { %6549 = vperm.xlu1 %7877, %v6543_v29  }
 0x93a   : > { %v7890_v61 = vpop.eup %7889 }
 0x93b   : > { %v6544_v21 = vmul.f32 %v7890_v61, %v6532_v37  ;;  %v6582_v49 = vpop.permute.xlu0 %6581 }
 0x93d   : > { %6554 = vperm.xlu0 %7878, %v6544_v21  }
 0x93e   : > { %v7892_v26 = vpop.eup %7891 }
 0x93f   : > { %v6545_v13 = vmul.f32 %v7892_v26, %v6533_v32 }
 0x941   : > { %6559 = vperm.xlu1 %7877, %v6545_v13   ;;  %6591 = vperm.xlu0 %7878, %v6577_v42  }
 0x942   : > { %v7894_v35 = vpop.eup %7893 }
 0x943   : > { %v6546_v38 = vmul.f32 %v7894_v35, %v6534_v59 }
 0x945   : > { %6564 = vperm.xlu1 %7877, %v6546_v38  }
 0x949   : > { %6596 = vperm.xlu1 %7877, %v6578_v10  }
 0x9b8   : > { %v6550_v30 = vpop.permute.xlu1 %6549 }
 0x9b9   : > { %v6567_v8 = vmul.f32 %v6550_v30, %v12608_v47  ;;  %v6568_v17 = vmul.f32 %v6550_v30, %v12610_v57 }
 0x9bb   : > { %v6599_v18 = vadd.f32 %v6582_v49, %v6567_v8  ;;  %v6600_v50 = vadd.f32 %v6582_v49, %v6568_v17 }
 0x9bc   : > { %v6555_v56 = vpop.permute.xlu0 %6554 }
 0x9bd   : > { %vm6607_vm12 = vcmp.ge.f32.partialorder %v6599_v18, 0.0  ;;  %vm6608_vm13 = vcmp.ge.f32.partialorder %v6600_v50, 0.0  ;;  %v6615_v52 = vmul.f32 0.01, %v6599_v18  ;;  %v6616_v46 = vmul.f32 0.01, %v6600_v50 }
 0x9be   : > { %v6569_v60 = vmul.f32 %v6555_v56, %v12616_v23  ;;  %v6570_v47 = vmul.f32 %v6555_v56, %v12618_v5 }
 0x9bf   : > { %v6623_v57 = vsel %vm6607_vm12, %v6599_v18, %v6615_v52  ;;  %v6624_v19 = vsel %vm6608_vm13, %v6600_v50, %v6616_v46 }
 0x9c0   : > { %6631 = vst [vmem:[%s12671_s9] sm:$0xff] %v6623_v57  ;;  %6632 = vst [vmem:[%s12671_s9 + $0x8] sm:$0xff] %v6624_v19  ;;  %v6601_v3 = vadd.f32 %v6587_v2, %v6569_v60  ;;  %v6602_v1 = vadd.f32 %v6587_v2, %v6570_v47  ;;  %v6560_v58 = vpop.permute.xlu1 %6559  ;;  %v6592_v23 = vpop.permute.xlu0 %6591 }
 0x9c1   : > { %v6571_v15 = vmul.f32 %v6560_v58, %v12624_v31  ;;  %v6572_v48 = vmul.f32 %v6560_v58, %v12626_v24 }
 0x9c2   : > { %vm6609_vm11 = vcmp.ge.f32.partialorder %v6601_v3, 0.0  ;;  %vm6610_vm3 = vcmp.ge.f32.partialorder %v6602_v1, 0.0  ;;  %v6617_v51 = vmul.f32 0.01, %v6601_v3  ;;  %v6618_v41 = vmul.f32 0.01, %v6602_v1 }
 0x9c3   : > { %v6603_v5 = vadd.f32 %v6592_v23, %v6571_v15  ;;  %v6604_v20 = vadd.f32 %v6592_v23, %v6572_v48 }
 0x9c4   : > { %v6625_v28 = vsel %vm6609_vm11, %v6601_v3, %v6617_v51  ;;  %v6626_v63 = vsel %vm6610_vm3, %v6602_v1, %v6618_v41  ;;  %v6565_v12 = vpop.permute.xlu1 %6564 }
 0x9c5   : > { %6633 = vst [vmem:[%s12671_s9 + $0x10] sm:$0xff] %v6625_v28  ;;  %6634 = vst [vmem:[%s12671_s9 + $0x18] sm:$0xff] %v6626_v63  ;;  %vm6611_vm10 = vcmp.ge.f32.partialorder %v6603_v5, 0.0  ;;  %vm6612_vm9 = vcmp.ge.f32.partialorder %v6604_v20, 0.0  ;;  %v6619_v9 = vmul.f32 0.01, %v6603_v5  ;;  %v6573_v39 = vmul.f32 %v6565_v12, %v12632_v62 }
 0x9c6   : > { %v6620_v31 = vmul.f32 0.01, %v6604_v20  ;;  %v6574_v4 = vmul.f32 %v6565_v12, %v12634_v43 }
 0x9c7   : > { %v6627_v24 = vsel %vm6611_vm10, %v6603_v5, %v6619_v9 }
 0x9c8   : > { %v6628_v14 = vsel %vm6612_vm9, %v6604_v20, %v6620_v31  ;;  %6635 = vst [vmem:[%s12671_s9 + $0x20] sm:$0xff] %v6627_v24  ;;  %v6597_v27 = vpop.permute.xlu1 %6596 }
 0x9c9   : > { %6636 = vst [vmem:[%s12671_s9 + $0x28] sm:$0xff] %v6628_v14  ;;  %v6605_v6 = vadd.f32 %v6597_v27, %v6573_v39  ;;  %v6606_v54 = vadd.f32 %v6597_v27, %v6574_v4 }
 0x9cb   : > { %vm6613_vm5 = vcmp.ge.f32.partialorder %v6605_v6, 0.0  ;;  %vm6614_vm6 = vcmp.ge.f32.partialorder %v6606_v54, 0.0  ;;  %v6621_v0 = vmul.f32 0.01, %v6605_v6  ;;  %v6622_v25 = vmul.f32 0.01, %v6606_v54 }
 0x9cd   : > { %v6629_v45 = vsel %vm6613_vm5, %v6605_v6, %v6621_v0  ;;  %v6630_v40 = vsel %vm6614_vm6, %v6606_v54, %v6622_v25 }
 0x9ce   : > { %6637 = vst [vmem:[%s12671_s9 + $0x30] sm:$0xff] %v6629_v45  ;;  %6638 = vst [vmem:[%s12671_s9 + $0x38] sm:$0xff] %v6630_v40 }
 0x9cf PF: > { %s17_s24 = sadd.s32 1, %s7901_s24  }
 0x9d0   : > { %p14_p4 = scmp.ge.s32.totalorder %s17_s24, 10  }
 0x9d2   :  { %16 = sbr.rel (!%p14_p4) target bundleno = 1 (0x1), region = 82 }

</bundles_post_ra>
